<compile_context>
chip_gen: v6e
topology: v6e:2x2x1
jax: 0.10.0
libtpu: 0.0.40
codegen_flags: <defaults>
</compile_context>

<pallas_src>
import functools
import jax
import jax.numpy as jnp
from jax.experimental import pallas as pl
from jax.experimental.pallas import tpu as pltpu

# ---- scaled-down model dims (wav2vec2-base uses E=768, 12 layers, 12 heads) ----
B = 2            # batch
L = 256          # waveform samples
K = 16           # feature-extractor conv kernel
S = 16           # conv stride (== K, so im2col is a contiguous reshape)
T = (L - K) // S + 1     # 16 frames
C = 32           # feature-extractor channels
E = 32           # embed_size
H = 4            # attention heads
DH = E // H      # head dim
FF = 64          # feed-forward hidden
TCLS = T + 1     # sequence length after prepended CLS token
LN_EPS = 1e-5


# ---------------- fused Pallas kernel ----------------

def _layer_norm(x, g_ref, b_ref):
    mu = jnp.mean(x, axis=-1, keepdims=True)
    var = jnp.mean((x - mu) ** 2, axis=-1, keepdims=True)
    return (x - mu) * jax.lax.rsqrt(var + LN_EPS) * g_ref[...] + b_ref[...]


def _sv_fused_kernel(frames_ref, conv_w_ref, conv_b_ref,
                     fp_g_ref, fp_b_ref, fp_w_ref, fp_bias_ref,
                     wqkv_ref, bqkv_ref, wo_ref, bo_ref,
                     ln1g_ref, ln1b_ref,
                     w1_ref, b1_ref, w2_ref, b2_ref,
                     ln2g_ref, ln2b_ref,
                     out_ref,
                     seq_ref, y_ref):
    # ---- feature_extractor: 1-D conv (stride == kernel) as matmul + GELU ----
    # TODO(synk): torch default GELU is exact erf; tanh approximation used here.
    h = jnp.dot(frames_ref[...], conv_w_ref[...],
                preferred_element_type=jnp.float32) + conv_b_ref[...]       # [B*T, C]
    h = jax.nn.gelu(h, approximate=True)

    # ---- feature_projection: LayerNorm(C) -> Linear(C, E) ----
    xn = _layer_norm(h, fp_g_ref, fp_b_ref)
    feats = jnp.dot(xn, fp_w_ref[...],
                    preferred_element_type=jnp.float32) + fp_bias_ref[...]  # [B*T, E]

    # ---- _insert_tokens_ce: prepend an all-ones CLS token per batch item ----
    for b in range(B):
        seq_ref[pl.ds(b * TCLS, 1), :] = jnp.ones((1, E), jnp.float32)
        seq_ref[pl.ds(b * TCLS + 1, T), :] = feats[b * T:(b + 1) * T, :]
    x = seq_ref[...]                                                        # [B*TCLS, E]

    # ---- transformer encoder layer (post-norm), fused QKV projection ----
    qkv = jnp.dot(x, wqkv_ref[...],
                  preferred_element_type=jnp.float32) + bqkv_ref[...]       # [B*TCLS, 3E]
    wo = wo_ref[...]
    scale = 1.0 / (DH ** 0.5)

    for b in range(B):                       # static batch loop (attention is per-item)
        r0 = b * TCLS
        xb = x[r0:r0 + TCLS, :]                                             # [TCLS, E]
        acc = jnp.zeros((TCLS, E), jnp.float32)
        for hh in range(H):                  # static head loop (DH = 8, kept small & safe)
            c0 = hh * DH
            qh = qkv[r0:r0 + TCLS, c0:c0 + DH]
            kh = qkv[r0:r0 + TCLS, E + c0:E + c0 + DH]
            vh = qkv[r0:r0 + TCLS, 2 * E + c0:2 * E + c0 + DH]
            # scores: contract last dims directly (no explicit kh.T transpose)
            s = jax.lax.dot_general(qh, kh, (((1,), (1,)), ((), ())),
                                    preferred_element_type=jnp.float32) * scale
            p = jax.nn.softmax(s, axis=-1)
            ctx = jnp.dot(p, vh, preferred_element_type=jnp.float32)        # [TCLS, DH]
            # concat-free output projection: ctx @ wo == sum_h ctx_h @ wo[h*DH:(h+1)*DH]
            acc = acc + jnp.dot(ctx, wo[c0:c0 + DH, :],
                                preferred_element_type=jnp.float32)
        attn_b = acc + bo_ref[...]
        y_b = _layer_norm(xb + attn_b, ln1g_ref, ln1b_ref)                  # [TCLS, E]
        y_ref[pl.ds(r0, TCLS), :] = y_b

    # feed-forward on the full flattened sequence (one matmul each)
    y = y_ref[...]                                                          # [B*TCLS, E]
    h1 = jax.nn.gelu(jnp.dot(y, w1_ref[...], preferred_element_type=jnp.float32)
                     + b1_ref[...], approximate=True)
    ffn = jnp.dot(h1, w2_ref[...], preferred_element_type=jnp.float32) + b2_ref[...]
    z = _layer_norm(y + ffn, ln2g_ref, ln2b_ref)                            # [B*TCLS, E]

    # ---- CLS embedding + F.normalize(dim=-1) via rsqrt ----
    for b in range(B):
        emb = z[b * TCLS:b * TCLS + 1, :]                                   # [1, E]
        ssq = jnp.sum(emb * emb, axis=-1, keepdims=True)
        # x / max(||x||, 1e-12) == x * rsqrt(max(||x||^2, 1e-24))
        out_ref[pl.ds(b, 1), :] = emb * jax.lax.rsqrt(jnp.maximum(ssq, 1e-24))


# ---------------- wrapper (glue) ----------------

def _full_spec(shape):
    n = len(shape)
    return pl.BlockSpec(shape, lambda *_: (0,) * n)


def sv_model_forward(waveforms, params):
    p = params
    # im2col: conv stride == kernel width, so frames are a pure contiguous reshape
    # (frames[b*T+t, k] == waveforms[b, t*S + k]); zero-cost on the XLA side.
    frames = waveforms.reshape(B * T, K)
    args = (frames,
            p["conv_w"], p["conv_b"],
            p["fp_ln_g"], p["fp_ln_b"], p["fp_w"], p["fp_b"],
            p["wqkv"], p["bqkv"], p["wo"], p["bo"],
            p["ln1_g"], p["ln1_b"],
            p["w1"], p["b1"], p["w2"], p["b2"],
            p["ln2_g"], p["ln2_b"])
    return pl.pallas_call(
        _sv_fused_kernel,
        out_shape=jax.ShapeDtypeStruct((B, E), jnp.float32),
        in_specs=[_full_spec(a.shape) for a in args],
        out_specs=_full_spec((B, E)),
        scratch_shapes=[pltpu.VMEM((B * TCLS, E), jnp.float32),   # CLS-prepended sequence
                        pltpu.VMEM((B * TCLS, E), jnp.float32)],  # post-attention activations
    )(*args)


# ---------------- deterministic parameter init ----------------

def init_params(key):
    ks = jax.random.split(key, 8)

    def dense(k, fan_in, shape):
        return (jax.random.normal(k, shape, jnp.float32) / jnp.sqrt(fan_in)).astype(jnp.float32)

    return {
        "conv_w": dense(ks[0], K, (K, C)),
        "conv_b": jnp.zeros((1, C), jnp.float32),
        "fp_ln_g": jnp.ones((1, C), jnp.float32),
        "fp_ln_b": jnp.zeros((1, C), jnp.float32),
        "fp_w": dense(ks[1], C, (C, E)),
        "fp_b": jnp.zeros((1, E), jnp.float32),
        # fused Q/K/V projection: columns [0:E)=Q, [E:2E)=K, [2E:3E)=V
        "wqkv": dense(ks[2], E, (E, 3 * E)),
        "bqkv": jnp.zeros((1, 3 * E), jnp.float32),
        "wo": dense(ks[3], E, (E, E)),
        "bo": jnp.zeros((1, E), jnp.float32),
        "ln1_g": jnp.ones((1, E), jnp.float32),
        "ln1_b": jnp.zeros((1, E), jnp.float32),
        "w1": dense(ks[4], E, (E, FF)),
        "b1": jnp.zeros((1, FF), jnp.float32),
        "w2": dense(ks[5], FF, (FF, E)),
        "b2": jnp.zeros((1, E), jnp.float32),
        "ln2_g": jnp.ones((1, E), jnp.float32),
        "ln2_b": jnp.zeros((1, E), jnp.float32),
    }


if __name__ == "__main__":
    key = jax.random.PRNGKey(0)
    pkey, xkey = jax.random.split(key)
    params = init_params(pkey)
    waveforms = jax.random.normal(xkey, (B, L), jnp.float32)

    out = jax.jit(functools.partial(sv_model_forward, params=params))(waveforms)
    out = jax.block_until_ready(out)

    assert out.shape == (B, E)
    assert jnp.all(jnp.isfinite(out))
    # embeddings must be unit-norm (F.normalize semantics)
    assert jnp.allclose(jnp.linalg.norm(out, axis=-1), 1.0, atol=1e-4)
    print("KERNEL_OK")
</pallas_src>

<mosaic_0001>
module attributes {stable_mosaic.version = 11 : i64} {
  func.func @_sv_fused_kernel(%arg0: memref<32x16xf32, #tpu.memory_space<vmem>>, %arg1: memref<16x32xf32, #tpu.memory_space<vmem>>, %arg2: memref<1x32xf32, #tpu.memory_space<vmem>>, %arg3: memref<1x32xf32, #tpu.memory_space<vmem>>, %arg4: memref<1x32xf32, #tpu.memory_space<vmem>>, %arg5: memref<32x32xf32, #tpu.memory_space<vmem>>, %arg6: memref<1x32xf32, #tpu.memory_space<vmem>>, %arg7: memref<32x96xf32, #tpu.memory_space<vmem>>, %arg8: memref<1x96xf32, #tpu.memory_space<vmem>>, %arg9: memref<32x32xf32, #tpu.memory_space<vmem>>, %arg10: memref<1x32xf32, #tpu.memory_space<vmem>>, %arg11: memref<1x32xf32, #tpu.memory_space<vmem>>, %arg12: memref<1x32xf32, #tpu.memory_space<vmem>>, %arg13: memref<32x64xf32, #tpu.memory_space<vmem>>, %arg14: memref<1x64xf32, #tpu.memory_space<vmem>>, %arg15: memref<64x32xf32, #tpu.memory_space<vmem>>, %arg16: memref<1x32xf32, #tpu.memory_space<vmem>>, %arg17: memref<1x32xf32, #tpu.memory_space<vmem>>, %arg18: memref<1x32xf32, #tpu.memory_space<vmem>>, %arg19: memref<2x32xf32, #tpu.memory_space<vmem>>, %arg20: memref<34x32xf32, #tpu.memory_space<vmem>>, %arg21: memref<34x32xf32, #tpu.memory_space<vmem>>) attributes {dimension_semantics = [], scalar_prefetch = 0 : i64, scratch_operands = 2 : i64, tpu.core_type = #tpu.core_type<tc>} {
    %c0 = arith.constant 0 : index
    %c0_0 = arith.constant 0 : index
    %0 = vector.load %arg0[%c0, %c0_0] : memref<32x16xf32, #tpu.memory_space<vmem>>, vector<32x16xf32>
    %c0_1 = arith.constant 0 : index
    %c0_2 = arith.constant 0 : index
    %1 = vector.load %arg1[%c0_1, %c0_2] : memref<16x32xf32, #tpu.memory_space<vmem>>, vector<16x32xf32>
    %cst = arith.constant dense<0.000000e+00> : vector<32x32xf32>
    %2 = tpu.matmul %0, %1, %cst {dimension_numbers = #tpu.dot_dimension_numbers<[1], [0], [0], [1], [0, 0, 1, 1], [], []>} : vector<32x16xf32>, vector<16x32xf32>, vector<32x32xf32> -> vector<32x32xf32>
    %c0_3 = arith.constant 0 : index
    %c0_4 = arith.constant 0 : index
    %3 = vector.load %arg2[%c0_3, %c0_4] : memref<1x32xf32, #tpu.memory_space<vmem>>, vector<1x32xf32>
    %4 = vector.broadcast %3 : vector<1x32xf32> to vector<32x32xf32>
    %5 = arith.addf %2, %4 : vector<32x32xf32>
    %6 = arith.mulf %5, %5 : vector<32x32xf32>
    %7 = arith.mulf %5, %6 : vector<32x32xf32>
    %cst_5 = arith.constant 4.471500e-02 : f32
    %8 = vector.broadcast %cst_5 : f32 to vector<32x32xf32>
    %9 = arith.mulf %8, %7 : vector<32x32xf32>
    %10 = arith.addf %5, %9 : vector<32x32xf32>
    %cst_6 = arith.constant 0.797884583 : f32
    %11 = vector.broadcast %cst_6 : f32 to vector<32x32xf32>
    %12 = arith.mulf %11, %10 : vector<32x32xf32>
    %13 = math.tanh %12 : vector<32x32xf32>
    %cst_7 = arith.constant 1.000000e+00 : f32
    %14 = vector.broadcast %cst_7 : f32 to vector<32x32xf32>
    %15 = arith.addf %14, %13 : vector<32x32xf32>
    %cst_8 = arith.constant 5.000000e-01 : f32
    %16 = vector.broadcast %cst_8 : f32 to vector<32x32xf32>
    %17 = arith.mulf %16, %15 : vector<32x32xf32>
    %18 = arith.mulf %5, %17 : vector<32x32xf32>
    %cst_9 = arith.constant dense<0.000000e+00> : vector<32xf32>
    %19 = vector.multi_reduction <add>, %18, %cst_9 [1] : vector<32x32xf32> to vector<32xf32>
    %20 = vector.shape_cast %19 : vector<32xf32> to vector<32x1xf32>
    %cst_10 = arith.constant 3.200000e+01 : f32
    %21 = vector.broadcast %cst_10 : f32 to vector<32x1xf32>
    %22 = arith.divf %20, %21 : vector<32x1xf32>
    %23 = vector.broadcast %22 : vector<32x1xf32> to vector<32x32xf32>
    %24 = arith.subf %18, %23 : vector<32x32xf32>
    %25 = arith.mulf %24, %24 : vector<32x32xf32>
    %cst_11 = arith.constant dense<0.000000e+00> : vector<32xf32>
    %26 = vector.multi_reduction <add>, %25, %cst_11 [1] : vector<32x32xf32> to vector<32xf32>
    %27 = vector.shape_cast %26 : vector<32xf32> to vector<32x1xf32>
    %cst_12 = arith.constant 3.200000e+01 : f32
    %28 = vector.broadcast %cst_12 : f32 to vector<32x1xf32>
    %29 = arith.divf %27, %28 : vector<32x1xf32>
    %30 = vector.broadcast %22 : vector<32x1xf32> to vector<32x32xf32>
    %31 = arith.subf %18, %30 : vector<32x32xf32>
    %cst_13 = arith.constant 9.99999974E-6 : f32
    %32 = vector.broadcast %cst_13 : f32 to vector<32x1xf32>
    %33 = arith.addf %29, %32 : vector<32x1xf32>
    %34 = math.rsqrt %33 : vector<32x1xf32>
    %35 = vector.broadcast %34 : vector<32x1xf32> to vector<32x32xf32>
    %36 = arith.mulf %31, %35 : vector<32x32xf32>
    %c0_14 = arith.constant 0 : index
    %c0_15 = arith.constant 0 : index
    %37 = vector.load %arg3[%c0_14, %c0_15] : memref<1x32xf32, #tpu.memory_space<vmem>>, vector<1x32xf32>
    %38 = vector.broadcast %37 : vector<1x32xf32> to vector<32x32xf32>
    %39 = arith.mulf %36, %38 : vector<32x32xf32>
    %c0_16 = arith.constant 0 : index
    %c0_17 = arith.constant 0 : index
    %40 = vector.load %arg4[%c0_16, %c0_17] : memref<1x32xf32, #tpu.memory_space<vmem>>, vector<1x32xf32>
    %41 = vector.broadcast %40 : vector<1x32xf32> to vector<32x32xf32>
    %42 = arith.addf %39, %41 : vector<32x32xf32>
    %c0_18 = arith.constant 0 : index
    %c0_19 = arith.constant 0 : index
    %43 = vector.load %arg5[%c0_18, %c0_19] : memref<32x32xf32, #tpu.memory_space<vmem>>, vector<32x32xf32>
    %cst_20 = arith.constant dense<0.000000e+00> : vector<32x32xf32>
    %44 = tpu.matmul %42, %43, %cst_20 {dimension_numbers = #tpu.dot_dimension_numbers<[1], [0], [0], [1], [0, 0, 1, 1], [], []>} : vector<32x32xf32>, vector<32x32xf32>, vector<32x32xf32> -> vector<32x32xf32>
    %c0_21 = arith.constant 0 : index
    %c0_22 = arith.constant 0 : index
    %45 = vector.load %arg6[%c0_21, %c0_22] : memref<1x32xf32, #tpu.memory_space<vmem>>, vector<1x32xf32>
    %46 = vector.broadcast %45 : vector<1x32xf32> to vector<32x32xf32>
    %47 = arith.addf %44, %46 : vector<32x32xf32>
    %cst_23 = arith.constant 1.000000e+00 : f32
    %48 = vector.broadcast %cst_23 : f32 to vector<1x32xf32>
    %c0_24 = arith.constant 0 : index
    %c0_25 = arith.constant 0 : index
    %49 = vector.load %arg20[%c0_24, %c0_25] : memref<34x32xf32, #tpu.memory_space<vmem>>, vector<1x32xf32>
    tpu.vector_store %arg20[%c0_24, %c0_25], %48 {strides = array<i32>} : memref<34x32xf32, #tpu.memory_space<vmem>>, vector<1x32xf32>,
    %50 = vector.extract_strided_slice %47 {offsets = [0, 0], sizes = [16, 32], strides = [1, 1]} : vector<32x32xf32> to vector<16x32xf32>
    %c1 = arith.constant 1 : index
    %c0_26 = arith.constant 0 : index
    %51 = vector.load %arg20[%c1, %c0_26] : memref<34x32xf32, #tpu.memory_space<vmem>>, vector<16x32xf32>
    tpu.vector_store %arg20[%c1, %c0_26], %50 {strides = array<i32>} : memref<34x32xf32, #tpu.memory_space<vmem>>, vector<16x32xf32>,
    %cst_27 = arith.constant 1.000000e+00 : f32
    %52 = vector.broadcast %cst_27 : f32 to vector<1x32xf32>
    %c17 = arith.constant 17 : index
    %c0_28 = arith.constant 0 : index
    %53 = vector.load %arg20[%c17, %c0_28] : memref<34x32xf32, #tpu.memory_space<vmem>>, vector<1x32xf32>
    tpu.vector_store %arg20[%c17, %c0_28], %52 {strides = array<i32>} : memref<34x32xf32, #tpu.memory_space<vmem>>, vector<1x32xf32>,
    %54 = vector.extract_strided_slice %47 {offsets = [16, 0], sizes = [16, 32], strides = [1, 1]} : vector<32x32xf32> to vector<16x32xf32>
    %c18 = arith.constant 18 : index
    %c0_29 = arith.constant 0 : index
    %55 = vector.load %arg20[%c18, %c0_29] : memref<34x32xf32, #tpu.memory_space<vmem>>, vector<16x32xf32>
    tpu.vector_store %arg20[%c18, %c0_29], %54 {strides = array<i32>} : memref<34x32xf32, #tpu.memory_space<vmem>>, vector<16x32xf32>,
    %c0_30 = arith.constant 0 : index
    %c0_31 = arith.constant 0 : index
    %56 = vector.load %arg20[%c0_30, %c0_31] : memref<34x32xf32, #tpu.memory_space<vmem>>, vector<34x32xf32>
    %c0_32 = arith.constant 0 : index
    %c0_33 = arith.constant 0 : index
    %57 = vector.load %arg7[%c0_32, %c0_33] : memref<32x96xf32, #tpu.memory_space<vmem>>, vector<32x96xf32>
    %cst_34 = arith.constant dense<0.000000e+00> : vector<34x96xf32>
    %58 = tpu.matmul %56, %57, %cst_34 {dimension_numbers = #tpu.dot_dimension_numbers<[1], [0], [0], [1], [0, 0, 1, 1], [], []>} : vector<34x32xf32>, vector<32x96xf32>, vector<34x96xf32> -> vector<34x96xf32>
    %c0_35 = arith.constant 0 : index
    %c0_36 = arith.constant 0 : index
    %59 = vector.load %arg8[%c0_35, %c0_36] : memref<1x96xf32, #tpu.memory_space<vmem>>, vector<1x96xf32>
    %60 = vector.broadcast %59 : vector<1x96xf32> to vector<34x96xf32>
    %61 = arith.addf %58, %60 : vector<34x96xf32>
    %c0_37 = arith.constant 0 : index
    %c0_38 = arith.constant 0 : index
    %62 = vector.load %arg9[%c0_37, %c0_38] : memref<32x32xf32, #tpu.memory_space<vmem>>, vector<32x32xf32>
    %63 = vector.extract_strided_slice %56 {offsets = [0, 0], sizes = [17, 32], strides = [1, 1]} : vector<34x32xf32> to vector<17x32xf32>
    %cst_39 = arith.constant 0.000000e+00 : f32
    %64 = vector.broadcast %cst_39 : f32 to vector<17x32xf32>
    %65 = vector.extract_strided_slice %61 {offsets = [0, 0], sizes = [17, 8], strides = [1, 1]} : vector<34x96xf32> to vector<17x8xf32>
    %66 = vector.extract_strided_slice %61 {offsets = [0, 32], sizes = [17, 8], strides = [1, 1]} : vector<34x96xf32> to vector<17x8xf32>
    %67 = vector.extract_strided_slice %61 {offsets = [0, 64], sizes = [17, 8], strides = [1, 1]} : vector<34x96xf32> to vector<17x8xf32>
    %cst_40 = arith.constant dense<0.000000e+00> : vector<17x17xf32>
    %68 = tpu.matmul %65, %66, %cst_40 {dimension_numbers = #tpu.dot_dimension_numbers<[1], [1], [0], [0], [0, 0, 1, 0], [], []>} : vector<17x8xf32>, vector<17x8xf32>, vector<17x17xf32> -> vector<17x17xf32>
    %cst_41 = arith.constant 0.353553385 : f32
    %69 = vector.broadcast %cst_41 : f32 to vector<17x17xf32>
    %70 = arith.mulf %68, %69 : vector<17x17xf32>
    %cst_42 = arith.constant dense<0xFF800000> : vector<17xf32>
    %71 = vector.multi_reduction <maximumf>, %70, %cst_42 [1] : vector<17x17xf32> to vector<17xf32>
    %cst_43 = arith.constant 0xFF800000 : f32
    %72 = vector.broadcast %cst_43 : f32 to vector<17xf32>
    %73 = arith.maximumf %72, %71 : vector<17xf32>
    %74 = vector.shape_cast %73 : vector<17xf32> to vector<17x1xf32>
    %75 = vector.broadcast %74 : vector<17x1xf32> to vector<17x17xf32>
    %76 = arith.subf %70, %75 : vector<17x17xf32>
    %77 = math.exp %76 : vector<17x17xf32>
    %cst_44 = arith.constant dense<0.000000e+00> : vector<17xf32>
    %78 = vector.multi_reduction <add>, %77, %cst_44 [1] : vector<17x17xf32> to vector<17xf32>
    %79 = vector.shape_cast %78 : vector<17xf32> to vector<17x1xf32>
    %80 = vector.broadcast %79 : vector<17x1xf32> to vector<17x17xf32>
    %81 = arith.divf %77, %80 : vector<17x17xf32>
    %cst_45 = arith.constant dense<0.000000e+00> : vector<17x8xf32>
    %82 = tpu.matmul %81, %67, %cst_45 {dimension_numbers = #tpu.dot_dimension_numbers<[1], [0], [0], [1], [0, 0, 1, 1], [], []>} : vector<17x17xf32>, vector<17x8xf32>, vector<17x8xf32> -> vector<17x8xf32>
    %83 = vector.extract_strided_slice %62 {offsets = [0, 0], sizes = [8, 32], strides = [1, 1]} : vector<32x32xf32> to vector<8x32xf32>
    %cst_46 = arith.constant dense<0.000000e+00> : vector<17x32xf32>
    %84 = tpu.matmul %82, %83, %cst_46 {dimension_numbers = #tpu.dot_dimension_numbers<[1], [0], [0], [1], [0, 0, 1, 1], [], []>} : vector<17x8xf32>, vector<8x32xf32>, vector<17x32xf32> -> vector<17x32xf32>
    %85 = arith.addf %64, %84 : vector<17x32xf32>
    %86 = vector.extract_strided_slice %61 {offsets = [0, 8], sizes = [17, 8], strides = [1, 1]} : vector<34x96xf32> to vector<17x8xf32>
    %87 = vector.extract_strided_slice %61 {offsets = [0, 40], sizes = [17, 8], strides = [1, 1]} : vector<34x96xf32> to vector<17x8xf32>
    %88 = vector.extract_strided_slice %61 {offsets = [0, 72], sizes = [17, 8], strides = [1, 1]} : vector<34x96xf32> to vector<17x8xf32>
    %cst_47 = arith.constant dense<0.000000e+00> : vector<17x17xf32>
    %89 = tpu.matmul %86, %87, %cst_47 {dimension_numbers = #tpu.dot_dimension_numbers<[1], [1], [0], [0], [0, 0, 1, 0], [], []>} : vector<17x8xf32>, vector<17x8xf32>, vector<17x17xf32> -> vector<17x17xf32>
    %cst_48 = arith.constant 0.353553385 : f32
    %90 = vector.broadcast %cst_48 : f32 to vector<17x17xf32>
    %91 = arith.mulf %89, %90 : vector<17x17xf32>
    %cst_49 = arith.constant dense<0xFF800000> : vector<17xf32>
    %92 = vector.multi_reduction <maximumf>, %91, %cst_49 [1] : vector<17x17xf32> to vector<17xf32>
    %cst_50 = arith.constant 0xFF800000 : f32
    %93 = vector.broadcast %cst_50 : f32 to vector<17xf32>
    %94 = arith.maximumf %93, %92 : vector<17xf32>
    %95 = vector.shape_cast %94 : vector<17xf32> to vector<17x1xf32>
    %96 = vector.broadcast %95 : vector<17x1xf32> to vector<17x17xf32>
    %97 = arith.subf %91, %96 : vector<17x17xf32>
    %98 = math.exp %97 : vector<17x17xf32>
    %cst_51 = arith.constant dense<0.000000e+00> : vector<17xf32>
    %99 = vector.multi_reduction <add>, %98, %cst_51 [1] : vector<17x17xf32> to vector<17xf32>
    %100 = vector.shape_cast %99 : vector<17xf32> to vector<17x1xf32>
    %101 = vector.broadcast %100 : vector<17x1xf32> to vector<17x17xf32>
    %102 = arith.divf %98, %101 : vector<17x17xf32>
    %cst_52 = arith.constant dense<0.000000e+00> : vector<17x8xf32>
    %103 = tpu.matmul %102, %88, %cst_52 {dimension_numbers = #tpu.dot_dimension_numbers<[1], [0], [0], [1], [0, 0, 1, 1], [], []>} : vector<17x17xf32>, vector<17x8xf32>, vector<17x8xf32> -> vector<17x8xf32>
    %104 = vector.extract_strided_slice %62 {offsets = [8, 0], sizes = [8, 32], strides = [1, 1]} : vector<32x32xf32> to vector<8x32xf32>
    %cst_53 = arith.constant dense<0.000000e+00> : vector<17x32xf32>
    %105 = tpu.matmul %103, %104, %cst_53 {dimension_numbers = #tpu.dot_dimension_numbers<[1], [0], [0], [1], [0, 0, 1, 1], [], []>} : vector<17x8xf32>, vector<8x32xf32>, vector<17x32xf32> -> vector<17x32xf32>
    %106 = arith.addf %85, %105 : vector<17x32xf32>
    %107 = vector.extract_strided_slice %61 {offsets = [0, 16], sizes = [17, 8], strides = [1, 1]} : vector<34x96xf32> to vector<17x8xf32>
    %108 = vector.extract_strided_slice %61 {offsets = [0, 48], sizes = [17, 8], strides = [1, 1]} : vector<34x96xf32> to vector<17x8xf32>
    %109 = vector.extract_strided_slice %61 {offsets = [0, 80], sizes = [17, 8], strides = [1, 1]} : vector<34x96xf32> to vector<17x8xf32>
    %cst_54 = arith.constant dense<0.000000e+00> : vector<17x17xf32>
    %110 = tpu.matmul %107, %108, %cst_54 {dimension_numbers = #tpu.dot_dimension_numbers<[1], [1], [0], [0], [0, 0, 1, 0], [], []>} : vector<17x8xf32>, vector<17x8xf32>, vector<17x17xf32> -> vector<17x17xf32>
    %cst_55 = arith.constant 0.353553385 : f32
    %111 = vector.broadcast %cst_55 : f32 to vector<17x17xf32>
    %112 = arith.mulf %110, %111 : vector<17x17xf32>
    %cst_56 = arith.constant dense<0xFF800000> : vector<17xf32>
    %113 = vector.multi_reduction <maximumf>, %112, %cst_56 [1] : vector<17x17xf32> to vector<17xf32>
    %cst_57 = arith.constant 0xFF800000 : f32
    %114 = vector.broadcast %cst_57 : f32 to vector<17xf32>
    %115 = arith.maximumf %114, %113 : vector<17xf32>
    %116 = vector.shape_cast %115 : vector<17xf32> to vector<17x1xf32>
    %117 = vector.broadcast %116 : vector<17x1xf32> to vector<17x17xf32>
    %118 = arith.subf %112, %117 : vector<17x17xf32>
    %119 = math.exp %118 : vector<17x17xf32>
    %cst_58 = arith.constant dense<0.000000e+00> : vector<17xf32>
    %120 = vector.multi_reduction <add>, %119, %cst_58 [1] : vector<17x17xf32> to vector<17xf32>
    %121 = vector.shape_cast %120 : vector<17xf32> to vector<17x1xf32>
    %122 = vector.broadcast %121 : vector<17x1xf32> to vector<17x17xf32>
    %123 = arith.divf %119, %122 : vector<17x17xf32>
    %cst_59 = arith.constant dense<0.000000e+00> : vector<17x8xf32>
    %124 = tpu.matmul %123, %109, %cst_59 {dimension_numbers = #tpu.dot_dimension_numbers<[1], [0], [0], [1], [0, 0, 1, 1], [], []>} : vector<17x17xf32>, vector<17x8xf32>, vector<17x8xf32> -> vector<17x8xf32>
    %125 = vector.extract_strided_slice %62 {offsets = [16, 0], sizes = [8, 32], strides = [1, 1]} : vector<32x32xf32> to vector<8x32xf32>
    %cst_60 = arith.constant dense<0.000000e+00> : vector<17x32xf32>
    %126 = tpu.matmul %124, %125, %cst_60 {dimension_numbers = #tpu.dot_dimension_numbers<[1], [0], [0], [1], [0, 0, 1, 1], [], []>} : vector<17x8xf32>, vector<8x32xf32>, vector<17x32xf32> -> vector<17x32xf32>
    %127 = arith.addf %106, %126 : vector<17x32xf32>
    %128 = vector.extract_strided_slice %61 {offsets = [0, 24], sizes = [17, 8], strides = [1, 1]} : vector<34x96xf32> to vector<17x8xf32>
    %129 = vector.extract_strided_slice %61 {offsets = [0, 56], sizes = [17, 8], strides = [1, 1]} : vector<34x96xf32> to vector<17x8xf32>
    %130 = vector.extract_strided_slice %61 {offsets = [0, 88], sizes = [17, 8], strides = [1, 1]} : vector<34x96xf32> to vector<17x8xf32>
    %cst_61 = arith.constant dense<0.000000e+00> : vector<17x17xf32>
    %131 = tpu.matmul %128, %129, %cst_61 {dimension_numbers = #tpu.dot_dimension_numbers<[1], [1], [0], [0], [0, 0, 1, 0], [], []>} : vector<17x8xf32>, vector<17x8xf32>, vector<17x17xf32> -> vector<17x17xf32>
    %cst_62 = arith.constant 0.353553385 : f32
    %132 = vector.broadcast %cst_62 : f32 to vector<17x17xf32>
    %133 = arith.mulf %131, %132 : vector<17x17xf32>
    %cst_63 = arith.constant dense<0xFF800000> : vector<17xf32>
    %134 = vector.multi_reduction <maximumf>, %133, %cst_63 [1] : vector<17x17xf32> to vector<17xf32>
    %cst_64 = arith.constant 0xFF800000 : f32
    %135 = vector.broadcast %cst_64 : f32 to vector<17xf32>
    %136 = arith.maximumf %135, %134 : vector<17xf32>
    %137 = vector.shape_cast %136 : vector<17xf32> to vector<17x1xf32>
    %138 = vector.broadcast %137 : vector<17x1xf32> to vector<17x17xf32>
    %139 = arith.subf %133, %138 : vector<17x17xf32>
    %140 = math.exp %139 : vector<17x17xf32>
    %cst_65 = arith.constant dense<0.000000e+00> : vector<17xf32>
    %141 = vector.multi_reduction <add>, %140, %cst_65 [1] : vector<17x17xf32> to vector<17xf32>
    %142 = vector.shape_cast %141 : vector<17xf32> to vector<17x1xf32>
    %143 = vector.broadcast %142 : vector<17x1xf32> to vector<17x17xf32>
    %144 = arith.divf %140, %143 : vector<17x17xf32>
    %cst_66 = arith.constant dense<0.000000e+00> : vector<17x8xf32>
    %145 = tpu.matmul %144, %130, %cst_66 {dimension_numbers = #tpu.dot_dimension_numbers<[1], [0], [0], [1], [0, 0, 1, 1], [], []>} : vector<17x17xf32>, vector<17x8xf32>, vector<17x8xf32> -> vector<17x8xf32>
    %146 = vector.extract_strided_slice %62 {offsets = [24, 0], sizes = [8, 32], strides = [1, 1]} : vector<32x32xf32> to vector<8x32xf32>
    %cst_67 = arith.constant dense<0.000000e+00> : vector<17x32xf32>
    %147 = tpu.matmul %145, %146, %cst_67 {dimension_numbers = #tpu.dot_dimension_numbers<[1], [0], [0], [1], [0, 0, 1, 1], [], []>} : vector<17x8xf32>, vector<8x32xf32>, vector<17x32xf32> -> vector<17x32xf32>
    %148 = arith.addf %127, %147 : vector<17x32xf32>
    %c0_68 = arith.constant 0 : index
    %c0_69 = arith.constant 0 : index
    %149 = vector.load %arg10[%c0_68, %c0_69] : memref<1x32xf32, #tpu.memory_space<vmem>>, vector<1x32xf32>
    %150 = vector.broadcast %149 : vector<1x32xf32> to vector<17x32xf32>
    %151 = arith.addf %148, %150 : vector<17x32xf32>
    %152 = arith.addf %63, %151 : vector<17x32xf32>
    %cst_70 = arith.constant dense<0.000000e+00> : vector<17xf32>
    %153 = vector.multi_reduction <add>, %152, %cst_70 [1] : vector<17x32xf32> to vector<17xf32>
    %154 = vector.shape_cast %153 : vector<17xf32> to vector<17x1xf32>
    %cst_71 = arith.constant 3.200000e+01 : f32
    %155 = vector.broadcast %cst_71 : f32 to vector<17x1xf32>
    %156 = arith.divf %154, %155 : vector<17x1xf32>
    %157 = vector.broadcast %156 : vector<17x1xf32> to vector<17x32xf32>
    %158 = arith.subf %152, %157 : vector<17x32xf32>
    %159 = arith.mulf %158, %158 : vector<17x32xf32>
    %cst_72 = arith.constant dense<0.000000e+00> : vector<17xf32>
    %160 = vector.multi_reduction <add>, %159, %cst_72 [1] : vector<17x32xf32> to vector<17xf32>
    %161 = vector.shape_cast %160 : vector<17xf32> to vector<17x1xf32>
    %cst_73 = arith.constant 3.200000e+01 : f32
    %162 = vector.broadcast %cst_73 : f32 to vector<17x1xf32>
    %163 = arith.divf %161, %162 : vector<17x1xf32>
    %164 = vector.broadcast %156 : vector<17x1xf32> to vector<17x32xf32>
    %165 = arith.subf %152, %164 : vector<17x32xf32>
    %cst_74 = arith.constant 9.99999974E-6 : f32
    %166 = vector.broadcast %cst_74 : f32 to vector<17x1xf32>
    %167 = arith.addf %163, %166 : vector<17x1xf32>
    %168 = math.rsqrt %167 : vector<17x1xf32>
    %169 = vector.broadcast %168 : vector<17x1xf32> to vector<17x32xf32>
    %170 = arith.mulf %165, %169 : vector<17x32xf32>
    %c0_75 = arith.constant 0 : index
    %c0_76 = arith.constant 0 : index
    %171 = vector.load %arg11[%c0_75, %c0_76] : memref<1x32xf32, #tpu.memory_space<vmem>>, vector<1x32xf32>
    %172 = vector.broadcast %171 : vector<1x32xf32> to vector<17x32xf32>
    %173 = arith.mulf %170, %172 : vector<17x32xf32>
    %c0_77 = arith.constant 0 : index
    %c0_78 = arith.constant 0 : index
    %174 = vector.load %arg12[%c0_77, %c0_78] : memref<1x32xf32, #tpu.memory_space<vmem>>, vector<1x32xf32>
    %175 = vector.broadcast %174 : vector<1x32xf32> to vector<17x32xf32>
    %176 = arith.addf %173, %175 : vector<17x32xf32>
    %c0_79 = arith.constant 0 : index
    %c0_80 = arith.constant 0 : index
    %177 = vector.load %arg21[%c0_79, %c0_80] : memref<34x32xf32, #tpu.memory_space<vmem>>, vector<17x32xf32>
    tpu.vector_store %arg21[%c0_79, %c0_80], %176 {strides = array<i32>} : memref<34x32xf32, #tpu.memory_space<vmem>>, vector<17x32xf32>,
    %178 = vector.extract_strided_slice %56 {offsets = [17, 0], sizes = [17, 32], strides = [1, 1]} : vector<34x32xf32> to vector<17x32xf32>
    %cst_81 = arith.constant 0.000000e+00 : f32
    %179 = vector.broadcast %cst_81 : f32 to vector<17x32xf32>
    %180 = vector.extract_strided_slice %61 {offsets = [17, 0], sizes = [17, 8], strides = [1, 1]} : vector<34x96xf32> to vector<17x8xf32>
    %181 = vector.extract_strided_slice %61 {offsets = [17, 32], sizes = [17, 8], strides = [1, 1]} : vector<34x96xf32> to vector<17x8xf32>
    %182 = vector.extract_strided_slice %61 {offsets = [17, 64], sizes = [17, 8], strides = [1, 1]} : vector<34x96xf32> to vector<17x8xf32>
    %cst_82 = arith.constant dense<0.000000e+00> : vector<17x17xf32>
    %183 = tpu.matmul %180, %181, %cst_82 {dimension_numbers = #tpu.dot_dimension_numbers<[1], [1], [0], [0], [0, 0, 1, 0], [], []>} : vector<17x8xf32>, vector<17x8xf32>, vector<17x17xf32> -> vector<17x17xf32>
    %cst_83 = arith.constant 0.353553385 : f32
    %184 = vector.broadcast %cst_83 : f32 to vector<17x17xf32>
    %185 = arith.mulf %183, %184 : vector<17x17xf32>
    %cst_84 = arith.constant dense<0xFF800000> : vector<17xf32>
    %186 = vector.multi_reduction <maximumf>, %185, %cst_84 [1] : vector<17x17xf32> to vector<17xf32>
    %cst_85 = arith.constant 0xFF800000 : f32
    %187 = vector.broadcast %cst_85 : f32 to vector<17xf32>
    %188 = arith.maximumf %187, %186 : vector<17xf32>
    %189 = vector.shape_cast %188 : vector<17xf32> to vector<17x1xf32>
    %190 = vector.broadcast %189 : vector<17x1xf32> to vector<17x17xf32>
    %191 = arith.subf %185, %190 : vector<17x17xf32>
    %192 = math.exp %191 : vector<17x17xf32>
    %cst_86 = arith.constant dense<0.000000e+00> : vector<17xf32>
    %193 = vector.multi_reduction <add>, %192, %cst_86 [1] : vector<17x17xf32> to vector<17xf32>
    %194 = vector.shape_cast %193 : vector<17xf32> to vector<17x1xf32>
    %195 = vector.broadcast %194 : vector<17x1xf32> to vector<17x17xf32>
    %196 = arith.divf %192, %195 : vector<17x17xf32>
    %cst_87 = arith.constant dense<0.000000e+00> : vector<17x8xf32>
    %197 = tpu.matmul %196, %182, %cst_87 {dimension_numbers = #tpu.dot_dimension_numbers<[1], [0], [0], [1], [0, 0, 1, 1], [], []>} : vector<17x17xf32>, vector<17x8xf32>, vector<17x8xf32> -> vector<17x8xf32>
    %198 = vector.extract_strided_slice %62 {offsets = [0, 0], sizes = [8, 32], strides = [1, 1]} : vector<32x32xf32> to vector<8x32xf32>
    %cst_88 = arith.constant dense<0.000000e+00> : vector<17x32xf32>
    %199 = tpu.matmul %197, %198, %cst_88 {dimension_numbers = #tpu.dot_dimension_numbers<[1], [0], [0], [1], [0, 0, 1, 1], [], []>} : vector<17x8xf32>, vector<8x32xf32>, vector<17x32xf32> -> vector<17x32xf32>
    %200 = arith.addf %179, %199 : vector<17x32xf32>
    %201 = vector.extract_strided_slice %61 {offsets = [17, 8], sizes = [17, 8], strides = [1, 1]} : vector<34x96xf32> to vector<17x8xf32>
    %202 = vector.extract_strided_slice %61 {offsets = [17, 40], sizes = [17, 8], strides = [1, 1]} : vector<34x96xf32> to vector<17x8xf32>
    %203 = vector.extract_strided_slice %61 {offsets = [17, 72], sizes = [17, 8], strides = [1, 1]} : vector<34x96xf32> to vector<17x8xf32>
    %cst_89 = arith.constant dense<0.000000e+00> : vector<17x17xf32>
    %204 = tpu.matmul %201, %202, %cst_89 {dimension_numbers = #tpu.dot_dimension_numbers<[1], [1], [0], [0], [0, 0, 1, 0], [], []>} : vector<17x8xf32>, vector<17x8xf32>, vector<17x17xf32> -> vector<17x17xf32>
    %cst_90 = arith.constant 0.353553385 : f32
    %205 = vector.broadcast %cst_90 : f32 to vector<17x17xf32>
    %206 = arith.mulf %204, %205 : vector<17x17xf32>
    %cst_91 = arith.constant dense<0xFF800000> : vector<17xf32>
    %207 = vector.multi_reduction <maximumf>, %206, %cst_91 [1] : vector<17x17xf32> to vector<17xf32>
    %cst_92 = arith.constant 0xFF800000 : f32
    %208 = vector.broadcast %cst_92 : f32 to vector<17xf32>
    %209 = arith.maximumf %208, %207 : vector<17xf32>
    %210 = vector.shape_cast %209 : vector<17xf32> to vector<17x1xf32>
    %211 = vector.broadcast %210 : vector<17x1xf32> to vector<17x17xf32>
    %212 = arith.subf %206, %211 : vector<17x17xf32>
    %213 = math.exp %212 : vector<17x17xf32>
    %cst_93 = arith.constant dense<0.000000e+00> : vector<17xf32>
    %214 = vector.multi_reduction <add>, %213, %cst_93 [1] : vector<17x17xf32> to vector<17xf32>
    %215 = vector.shape_cast %214 : vector<17xf32> to vector<17x1xf32>
    %216 = vector.broadcast %215 : vector<17x1xf32> to vector<17x17xf32>
    %217 = arith.divf %213, %216 : vector<17x17xf32>
    %cst_94 = arith.constant dense<0.000000e+00> : vector<17x8xf32>
    %218 = tpu.matmul %217, %203, %cst_94 {dimension_numbers = #tpu.dot_dimension_numbers<[1], [0], [0], [1], [0, 0, 1, 1], [], []>} : vector<17x17xf32>, vector<17x8xf32>, vector<17x8xf32> -> vector<17x8xf32>
    %219 = vector.extract_strided_slice %62 {offsets = [8, 0], sizes = [8, 32], strides = [1, 1]} : vector<32x32xf32> to vector<8x32xf32>
    %cst_95 = arith.constant dense<0.000000e+00> : vector<17x32xf32>
    %220 = tpu.matmul %218, %219, %cst_95 {dimension_numbers = #tpu.dot_dimension_numbers<[1], [0], [0], [1], [0, 0, 1, 1], [], []>} : vector<17x8xf32>, vector<8x32xf32>, vector<17x32xf32> -> vector<17x32xf32>
    %221 = arith.addf %200, %220 : vector<17x32xf32>
    %222 = vector.extract_strided_slice %61 {offsets = [17, 16], sizes = [17, 8], strides = [1, 1]} : vector<34x96xf32> to vector<17x8xf32>
    %223 = vector.extract_strided_slice %61 {offsets = [17, 48], sizes = [17, 8], strides = [1, 1]} : vector<34x96xf32> to vector<17x8xf32>
    %224 = vector.extract_strided_slice %61 {offsets = [17, 80], sizes = [17, 8], strides = [1, 1]} : vector<34x96xf32> to vector<17x8xf32>
    %cst_96 = arith.constant dense<0.000000e+00> : vector<17x17xf32>
    %225 = tpu.matmul %222, %223, %cst_96 {dimension_numbers = #tpu.dot_dimension_numbers<[1], [1], [0], [0], [0, 0, 1, 0], [], []>} : vector<17x8xf32>, vector<17x8xf32>, vector<17x17xf32> -> vector<17x17xf32>
    %cst_97 = arith.constant 0.353553385 : f32
    %226 = vector.broadcast %cst_97 : f32 to vector<17x17xf32>
    %227 = arith.mulf %225, %226 : vector<17x17xf32>
    %cst_98 = arith.constant dense<0xFF800000> : vector<17xf32>
    %228 = vector.multi_reduction <maximumf>, %227, %cst_98 [1] : vector<17x17xf32> to vector<17xf32>
    %cst_99 = arith.constant 0xFF800000 : f32
    %229 = vector.broadcast %cst_99 : f32 to vector<17xf32>
    %230 = arith.maximumf %229, %228 : vector<17xf32>
    %231 = vector.shape_cast %230 : vector<17xf32> to vector<17x1xf32>
    %232 = vector.broadcast %231 : vector<17x1xf32> to vector<17x17xf32>
    %233 = arith.subf %227, %232 : vector<17x17xf32>
    %234 = math.exp %233 : vector<17x17xf32>
    %cst_100 = arith.constant dense<0.000000e+00> : vector<17xf32>
    %235 = vector.multi_reduction <add>, %234, %cst_100 [1] : vector<17x17xf32> to vector<17xf32>
    %236 = vector.shape_cast %235 : vector<17xf32> to vector<17x1xf32>
    %237 = vector.broadcast %236 : vector<17x1xf32> to vector<17x17xf32>
    %238 = arith.divf %234, %237 : vector<17x17xf32>
    %cst_101 = arith.constant dense<0.000000e+00> : vector<17x8xf32>
    %239 = tpu.matmul %238, %224, %cst_101 {dimension_numbers = #tpu.dot_dimension_numbers<[1], [0], [0], [1], [0, 0, 1, 1], [], []>} : vector<17x17xf32>, vector<17x8xf32>, vector<17x8xf32> -> vector<17x8xf32>
    %240 = vector.extract_strided_slice %62 {offsets = [16, 0], sizes = [8, 32], strides = [1, 1]} : vector<32x32xf32> to vector<8x32xf32>
    %cst_102 = arith.constant dense<0.000000e+00> : vector<17x32xf32>
    %241 = tpu.matmul %239, %240, %cst_102 {dimension_numbers = #tpu.dot_dimension_numbers<[1], [0], [0], [1], [0, 0, 1, 1], [], []>} : vector<17x8xf32>, vector<8x32xf32>, vector<17x32xf32> -> vector<17x32xf32>
    %242 = arith.addf %221, %241 : vector<17x32xf32>
    %243 = vector.extract_strided_slice %61 {offsets = [17, 24], sizes = [17, 8], strides = [1, 1]} : vector<34x96xf32> to vector<17x8xf32>
    %244 = vector.extract_strided_slice %61 {offsets = [17, 56], sizes = [17, 8], strides = [1, 1]} : vector<34x96xf32> to vector<17x8xf32>
    %245 = vector.extract_strided_slice %61 {offsets = [17, 88], sizes = [17, 8], strides = [1, 1]} : vector<34x96xf32> to vector<17x8xf32>
    %cst_103 = arith.constant dense<0.000000e+00> : vector<17x17xf32>
    %246 = tpu.matmul %243, %244, %cst_103 {dimension_numbers = #tpu.dot_dimension_numbers<[1], [1], [0], [0], [0, 0, 1, 0], [], []>} : vector<17x8xf32>, vector<17x8xf32>, vector<17x17xf32> -> vector<17x17xf32>
    %cst_104 = arith.constant 0.353553385 : f32
    %247 = vector.broadcast %cst_104 : f32 to vector<17x17xf32>
    %248 = arith.mulf %246, %247 : vector<17x17xf32>
    %cst_105 = arith.constant dense<0xFF800000> : vector<17xf32>
    %249 = vector.multi_reduction <maximumf>, %248, %cst_105 [1] : vector<17x17xf32> to vector<17xf32>
    %cst_106 = arith.constant 0xFF800000 : f32
    %250 = vector.broadcast %cst_106 : f32 to vector<17xf32>
    %251 = arith.maximumf %250, %249 : vector<17xf32>
    %252 = vector.shape_cast %251 : vector<17xf32> to vector<17x1xf32>
    %253 = vector.broadcast %252 : vector<17x1xf32> to vector<17x17xf32>
    %254 = arith.subf %248, %253 : vector<17x17xf32>
    %255 = math.exp %254 : vector<17x17xf32>
    %cst_107 = arith.constant dense<0.000000e+00> : vector<17xf32>
    %256 = vector.multi_reduction <add>, %255, %cst_107 [1] : vector<17x17xf32> to vector<17xf32>
    %257 = vector.shape_cast %256 : vector<17xf32> to vector<17x1xf32>
    %258 = vector.broadcast %257 : vector<17x1xf32> to vector<17x17xf32>
    %259 = arith.divf %255, %258 : vector<17x17xf32>
    %cst_108 = arith.constant dense<0.000000e+00> : vector<17x8xf32>
    %260 = tpu.matmul %259, %245, %cst_108 {dimension_numbers = #tpu.dot_dimension_numbers<[1], [0], [0], [1], [0, 0, 1, 1], [], []>} : vector<17x17xf32>, vector<17x8xf32>, vector<17x8xf32> -> vector<17x8xf32>
    %261 = vector.extract_strided_slice %62 {offsets = [24, 0], sizes = [8, 32], strides = [1, 1]} : vector<32x32xf32> to vector<8x32xf32>
    %cst_109 = arith.constant dense<0.000000e+00> : vector<17x32xf32>
    %262 = tpu.matmul %260, %261, %cst_109 {dimension_numbers = #tpu.dot_dimension_numbers<[1], [0], [0], [1], [0, 0, 1, 1], [], []>} : vector<17x8xf32>, vector<8x32xf32>, vector<17x32xf32> -> vector<17x32xf32>
    %263 = arith.addf %242, %262 : vector<17x32xf32>
    %c0_110 = arith.constant 0 : index
    %c0_111 = arith.constant 0 : index
    %264 = vector.load %arg10[%c0_110, %c0_111] : memref<1x32xf32, #tpu.memory_space<vmem>>, vector<1x32xf32>
    %265 = vector.broadcast %264 : vector<1x32xf32> to vector<17x32xf32>
    %266 = arith.addf %263, %265 : vector<17x32xf32>
    %267 = arith.addf %178, %266 : vector<17x32xf32>
    %cst_112 = arith.constant dense<0.000000e+00> : vector<17xf32>
    %268 = vector.multi_reduction <add>, %267, %cst_112 [1] : vector<17x32xf32> to vector<17xf32>
    %269 = vector.shape_cast %268 : vector<17xf32> to vector<17x1xf32>
    %cst_113 = arith.constant 3.200000e+01 : f32
    %270 = vector.broadcast %cst_113 : f32 to vector<17x1xf32>
    %271 = arith.divf %269, %270 : vector<17x1xf32>
    %272 = vector.broadcast %271 : vector<17x1xf32> to vector<17x32xf32>
    %273 = arith.subf %267, %272 : vector<17x32xf32>
    %274 = arith.mulf %273, %273 : vector<17x32xf32>
    %cst_114 = arith.constant dense<0.000000e+00> : vector<17xf32>
    %275 = vector.multi_reduction <add>, %274, %cst_114 [1] : vector<17x32xf32> to vector<17xf32>
    %276 = vector.shape_cast %275 : vector<17xf32> to vector<17x1xf32>
    %cst_115 = arith.constant 3.200000e+01 : f32
    %277 = vector.broadcast %cst_115 : f32 to vector<17x1xf32>
    %278 = arith.divf %276, %277 : vector<17x1xf32>
    %279 = vector.broadcast %271 : vector<17x1xf32> to vector<17x32xf32>
    %280 = arith.subf %267, %279 : vector<17x32xf32>
    %cst_116 = arith.constant 9.99999974E-6 : f32
    %281 = vector.broadcast %cst_116 : f32 to vector<17x1xf32>
    %282 = arith.addf %278, %281 : vector<17x1xf32>
    %283 = math.rsqrt %282 : vector<17x1xf32>
    %284 = vector.broadcast %283 : vector<17x1xf32> to vector<17x32xf32>
    %285 = arith.mulf %280, %284 : vector<17x32xf32>
    %c0_117 = arith.constant 0 : index
    %c0_118 = arith.constant 0 : index
    %286 = vector.load %arg11[%c0_117, %c0_118] : memref<1x32xf32, #tpu.memory_space<vmem>>, vector<1x32xf32>
    %287 = vector.broadcast %286 : vector<1x32xf32> to vector<17x32xf32>
    %288 = arith.mulf %285, %287 : vector<17x32xf32>
    %c0_119 = arith.constant 0 : index
    %c0_120 = arith.constant 0 : index
    %289 = vector.load %arg12[%c0_119, %c0_120] : memref<1x32xf32, #tpu.memory_space<vmem>>, vector<1x32xf32>
    %290 = vector.broadcast %289 : vector<1x32xf32> to vector<17x32xf32>
    %291 = arith.addf %288, %290 : vector<17x32xf32>
    %c17_121 = arith.constant 17 : index
    %c0_122 = arith.constant 0 : index
    %292 = vector.load %arg21[%c17_121, %c0_122] : memref<34x32xf32, #tpu.memory_space<vmem>>, vector<17x32xf32>
    tpu.vector_store %arg21[%c17_121, %c0_122], %291 {strides = array<i32>} : memref<34x32xf32, #tpu.memory_space<vmem>>, vector<17x32xf32>,
    %c0_123 = arith.constant 0 : index
    %c0_124 = arith.constant 0 : index
    %293 = vector.load %arg21[%c0_123, %c0_124] : memref<34x32xf32, #tpu.memory_space<vmem>>, vector<34x32xf32>
    %c0_125 = arith.constant 0 : index
    %c0_126 = arith.constant 0 : index
    %294 = vector.load %arg13[%c0_125, %c0_126] : memref<32x64xf32, #tpu.memory_space<vmem>>, vector<32x64xf32>
    %cst_127 = arith.constant dense<0.000000e+00> : vector<34x64xf32>
    %295 = tpu.matmul %293, %294, %cst_127 {dimension_numbers = #tpu.dot_dimension_numbers<[1], [0], [0], [1], [0, 0, 1, 1], [], []>} : vector<34x32xf32>, vector<32x64xf32>, vector<34x64xf32> -> vector<34x64xf32>
    %c0_128 = arith.constant 0 : index
    %c0_129 = arith.constant 0 : index
    %296 = vector.load %arg14[%c0_128, %c0_129] : memref<1x64xf32, #tpu.memory_space<vmem>>, vector<1x64xf32>
    %297 = vector.broadcast %296 : vector<1x64xf32> to vector<34x64xf32>
    %298 = arith.addf %295, %297 : vector<34x64xf32>
    %299 = arith.mulf %298, %298 : vector<34x64xf32>
    %300 = arith.mulf %298, %299 : vector<34x64xf32>
    %cst_130 = arith.constant 4.471500e-02 : f32
    %301 = vector.broadcast %cst_130 : f32 to vector<34x64xf32>
    %302 = arith.mulf %301, %300 : vector<34x64xf32>
    %303 = arith.addf %298, %302 : vector<34x64xf32>
    %cst_131 = arith.constant 0.797884583 : f32
    %304 = vector.broadcast %cst_131 : f32 to vector<34x64xf32>
    %305 = arith.mulf %304, %303 : vector<34x64xf32>
    %306 = math.tanh %305 : vector<34x64xf32>
    %cst_132 = arith.constant 1.000000e+00 : f32
    %307 = vector.broadcast %cst_132 : f32 to vector<34x64xf32>
    %308 = arith.addf %307, %306 : vector<34x64xf32>
    %cst_133 = arith.constant 5.000000e-01 : f32
    %309 = vector.broadcast %cst_133 : f32 to vector<34x64xf32>
    %310 = arith.mulf %309, %308 : vector<34x64xf32>
    %311 = arith.mulf %298, %310 : vector<34x64xf32>
    %c0_134 = arith.constant 0 : index
    %c0_135 = arith.constant 0 : index
    %312 = vector.load %arg15[%c0_134, %c0_135] : memref<64x32xf32, #tpu.memory_space<vmem>>, vector<64x32xf32>
    %cst_136 = arith.constant dense<0.000000e+00> : vector<34x32xf32>
    %313 = tpu.matmul %311, %312, %cst_136 {dimension_numbers = #tpu.dot_dimension_numbers<[1], [0], [0], [1], [0, 0, 1, 1], [], []>} : vector<34x64xf32>, vector<64x32xf32>, vector<34x32xf32> -> vector<34x32xf32>
    %c0_137 = arith.constant 0 : index
    %c0_138 = arith.constant 0 : index
    %314 = vector.load %arg16[%c0_137, %c0_138] : memref<1x32xf32, #tpu.memory_space<vmem>>, vector<1x32xf32>
    %315 = vector.broadcast %314 : vector<1x32xf32> to vector<34x32xf32>
    %316 = arith.addf %313, %315 : vector<34x32xf32>
    %317 = arith.addf %293, %316 : vector<34x32xf32>
    %cst_139 = arith.constant dense<0.000000e+00> : vector<34xf32>
    %318 = vector.multi_reduction <add>, %317, %cst_139 [1] : vector<34x32xf32> to vector<34xf32>
    %319 = vector.shape_cast %318 : vector<34xf32> to vector<34x1xf32>
    %cst_140 = arith.constant 3.200000e+01 : f32
    %320 = vector.broadcast %cst_140 : f32 to vector<34x1xf32>
    %321 = arith.divf %319, %320 : vector<34x1xf32>
    %322 = vector.broadcast %321 : vector<34x1xf32> to vector<34x32xf32>
    %323 = arith.subf %317, %322 : vector<34x32xf32>
    %324 = arith.mulf %323, %323 : vector<34x32xf32>
    %cst_141 = arith.constant dense<0.000000e+00> : vector<34xf32>
    %325 = vector.multi_reduction <add>, %324, %cst_141 [1] : vector<34x32xf32> to vector<34xf32>
    %326 = vector.shape_cast %325 : vector<34xf32> to vector<34x1xf32>
    %cst_142 = arith.constant 3.200000e+01 : f32
    %327 = vector.broadcast %cst_142 : f32 to vector<34x1xf32>
    %328 = arith.divf %326, %327 : vector<34x1xf32>
    %329 = vector.broadcast %321 : vector<34x1xf32> to vector<34x32xf32>
    %330 = arith.subf %317, %329 : vector<34x32xf32>
    %cst_143 = arith.constant 9.99999974E-6 : f32
    %331 = vector.broadcast %cst_143 : f32 to vector<34x1xf32>
    %332 = arith.addf %328, %331 : vector<34x1xf32>
    %333 = math.rsqrt %332 : vector<34x1xf32>
    %334 = vector.broadcast %333 : vector<34x1xf32> to vector<34x32xf32>
    %335 = arith.mulf %330, %334 : vector<34x32xf32>
    %c0_144 = arith.constant 0 : index
    %c0_145 = arith.constant 0 : index
    %336 = vector.load %arg17[%c0_144, %c0_145] : memref<1x32xf32, #tpu.memory_space<vmem>>, vector<1x32xf32>
    %337 = vector.broadcast %336 : vector<1x32xf32> to vector<34x32xf32>
    %338 = arith.mulf %335, %337 : vector<34x32xf32>
    %c0_146 = arith.constant 0 : index
    %c0_147 = arith.constant 0 : index
    %339 = vector.load %arg18[%c0_146, %c0_147] : memref<1x32xf32, #tpu.memory_space<vmem>>, vector<1x32xf32>
    %340 = vector.broadcast %339 : vector<1x32xf32> to vector<34x32xf32>
    %341 = arith.addf %338, %340 : vector<34x32xf32>
    %342 = vector.extract_strided_slice %341 {offsets = [0, 0], sizes = [1, 32], strides = [1, 1]} : vector<34x32xf32> to vector<1x32xf32>
    %343 = arith.mulf %342, %342 : vector<1x32xf32>
    %cst_148 = arith.constant dense<0.000000e+00> : vector<1xf32>
    %344 = vector.multi_reduction <add>, %343, %cst_148 [1] : vector<1x32xf32> to vector<1xf32>
    %345 = vector.shape_cast %344 : vector<1xf32> to vector<1x1xf32>
    %cst_149 = arith.constant 1.000000e-24 : f32
    %346 = vector.broadcast %cst_149 : f32 to vector<1x1xf32>
    %347 = arith.maximumf %345, %346 : vector<1x1xf32>
    %348 = math.rsqrt %347 : vector<1x1xf32>
    %349 = vector.broadcast %348 : vector<1x1xf32> to vector<1x32xf32>
    %350 = arith.mulf %342, %349 : vector<1x32xf32>
    %c0_150 = arith.constant 0 : index
    %c0_151 = arith.constant 0 : index
    %351 = vector.load %arg19[%c0_150, %c0_151] : memref<2x32xf32, #tpu.memory_space<vmem>>, vector<1x32xf32>
    tpu.vector_store %arg19[%c0_150, %c0_151], %350 {strides = array<i32>} : memref<2x32xf32, #tpu.memory_space<vmem>>, vector<1x32xf32>,
    %352 = vector.extract_strided_slice %341 {offsets = [17, 0], sizes = [1, 32], strides = [1, 1]} : vector<34x32xf32> to vector<1x32xf32>
    %353 = arith.mulf %352, %352 : vector<1x32xf32>
    %cst_152 = arith.constant dense<0.000000e+00> : vector<1xf32>
    %354 = vector.multi_reduction <add>, %353, %cst_152 [1] : vector<1x32xf32> to vector<1xf32>
    %355 = vector.shape_cast %354 : vector<1xf32> to vector<1x1xf32>
    %cst_153 = arith.constant 1.000000e-24 : f32
    %356 = vector.broadcast %cst_153 : f32 to vector<1x1xf32>
    %357 = arith.maximumf %355, %356 : vector<1x1xf32>
    %358 = math.rsqrt %357 : vector<1x1xf32>
    %359 = vector.broadcast %358 : vector<1x1xf32> to vector<1x32xf32>
    %360 = arith.mulf %352, %359 : vector<1x32xf32>
    %c1_154 = arith.constant 1 : index
    %c0_155 = arith.constant 0 : index
    %361 = vector.load %arg19[%c1_154, %c0_155] : memref<2x32xf32, #tpu.memory_space<vmem>>, vector<1x32xf32>
    tpu.vector_store %arg19[%c1_154, %c0_155], %360 {strides = array<i32>} : memref<2x32xf32, #tpu.memory_space<vmem>>, vector<1x32xf32>,
    return
  }
}

</mosaic_0001>

<bundles_post_ra>
// kernel: sv_model_forward.1
= control target key start
LH: loop header
LB: loop body
LE: loop exit
PB: predicated region body
PF: predicated region fallthrough
CT: control target
= control target key end

     0   :  { %s5732_s0 = inlined_call_operand.vmem [shape: f32[32,16], index: 0, kind: input, shape index: {}]   ;;  %s5733_s1 = inlined_call_operand.vmem [shape: f32[16,32], index: 1, kind: input, shape index: {}]   ;;  %s5734_s2 = inlined_call_operand.vmem [shape: f32[1,32], index: 2, kind: input, shape index: {}, may-alias: {2,4,6,10,12,16,18}]   ;;  %s5735_s3 = inlined_call_operand.vmem [shape: f32[1,32], index: 3, kind: input, shape index: {}, may-alias: {3,11,17}]   ;;  %s5736_s4 = inlined_call_operand.vmem [shape: f32[1,32], index: 4, kind: input, shape index: {}, may-alias: {2,4,6,10,12,16,18}]   ;;  %s5737_s5 = inlined_call_operand.hbm [shape: f32[32,32], index: 5, kind: input, shape index: {}]   ;;  %s5738_s6 = inlined_call_operand.vmem [shape: f32[1,32], index: 6, kind: input, shape index: {}, may-alias: {2,4,6,10,12,16,18}]   ;;  %s5739_s7 = inlined_call_operand.hbm [shape: f32[32,96], index: 7, kind: input, shape index: {}]   ;;  %s5740_s8 = inlined_call_operand.vmem [shape: f32[1,96], index: 8, kind: input, shape index: {}]   ;;  %s5741_s9 = inlined_call_operand.hbm [shape: f32[32,32], index: 9, kind: input, shape index: {}]   ;;  %s5742_s10 = inlined_call_operand.vmem [shape: f32[1,32], index: 10, kind: input, shape index: {}, may-alias: {2,4,6,10,12,16,18}]   ;;  %s5743_s11 = inlined_call_operand.vmem [shape: f32[1,32], index: 11, kind: input, shape index: {}, may-alias: {3,11,17}]   ;;  %s5744_s12 = inlined_call_operand.vmem [shape: f32[1,32], index: 12, kind: input, shape index: {}, may-alias: {2,4,6,10,12,16,18}]   ;;  %s5745_s13 = inlined_call_operand.vmem [shape: f32[32,64], index: 13, kind: input, shape index: {}]   ;;  %s5746_s14 = inlined_call_operand.vmem [shape: f32[1,64], index: 14, kind: input, shape index: {}]   ;;  %s5747_s15 = inlined_call_operand.hbm [shape: f32[64,32], index: 15, kind: input, shape index: {}]   ;;  %s5748_s16 = inlined_call_operand.vmem [shape: f32[1,32], index: 16, kind: input, shape index: {}, may-alias: {2,4,6,10,12,16,18}]   ;;  %s5749_s17 = inlined_call_operand.vmem [shape: f32[1,32], index: 17, kind: input, shape index: {}, may-alias: {3,11,17}]   ;;  %s5750_s18 = inlined_call_operand.vmem [shape: f32[1,32], index: 18, kind: input, shape index: {}, may-alias: {2,4,6,10,12,16,18}]   ;;  %s5751_s19 = inlined_call_operand.hbm [shape: f32[2,32], index: 19, kind: output, shape index: {}]  }
   0x1   :  { %5754 = sst [smem:[#allocation17_spill]] %s5732_s0 }
   0x2   :  { %5755 = sst [smem:[#allocation18_spill]] %s5733_s1 }
   0x3   :  { %5756 = sst [smem:[#allocation19_spill]] %s5734_s2 }
   0x4   :  { %5757 = sst [smem:[#allocation20_spill]] %s5735_s3 }
   0x5   :  { %24 = vsyncpa [#allocation5], 0 }
   0x6   :  { %25 = vsyncpa [#allocation8], 0 }
   0x7   :  { %26 = vsyncpa [#allocation11], 0 }
   0x8   :  { %27 = vsyncpa [#allocation6], 0  ;;  %s4775_s0 = smov [#allocation7]   ;;  %s4776_s20 = smov [#allocation4]  }
   0x9   :  { %s57_s30 = sshll.u32 %s4775_s0, 4  ;;  %s43_s21 = sshll.u32 %s4776_s20, 4  ;;  %s58_s30 = int_to_ptr.vmem [resolvable:$true] %s57_s30  ;;  %s44_s21 = int_to_ptr.vmem [resolvable:$true] %s43_s21 }
   0xa   :  { %s4675_s1 = scalar_lea.vmem %s58_s30, 512  ;;  %p4680_p1 = scmp.lt.s32.totalorder %s58_s30, %s58_s30 }
   0xb   :  { %p4676_p0 = scmp.ne.s32.totalorder %s58_s30, %s4675_s1  ;;  %p4681_p2 = scmp.lt.s32.totalorder %s4675_s1, %s4675_s1 }
   0xd   :  { %p4682_p3 = por %p4681_p2, %p4680_p1 }
   0xf   :  { %p4683_p4 = pnand %p4682_p3, %p4676_p0 }
  0x11   :  { %4686 = shalt.err (!%p4683_p4)
}
  0x12   :  { %s4777_s22 = smov 128   ;;  %s4778_s2 = smov 8  }
  0x13   :  { %63 = dma.hbm_to_vmem [thread:$0]  %s5739_s7, 512, %s58_s30, [#allocation8], %s4777_s22, %s4777_s22, %s4778_s2  }
  0x14   :  { %s4695_s25 = scalar_lea.vmem %s44_s21, 512  ;;  %p4700_p6 = scmp.lt.s32.totalorder %s44_s21, %s44_s21 }
  0x15   :  { %p4696_p5 = scmp.ne.s32.totalorder %s44_s21, %s4695_s25  ;;  %p4701_p7 = scmp.lt.s32.totalorder %s4695_s25, %s4695_s25 }
  0x17   :  { %p4702_p8 = por %p4701_p7, %p4700_p6 }
  0x19   :  { %p4703_p9 = pnand %p4702_p8, %p4696_p5 }
  0x1b   :  { %4706 = shalt.err (!%p4703_p9)
}
  0x1c   :  { %49 = dma.hbm_to_vmem [thread:$0]  %s5737_s5, 512, %s44_s21, [#allocation5], %s4777_s22, %s4777_s22, %s4778_s2  }
  0x1d   :  { %s4779_s27 = smov [#allocation9]   ;;  %s4780_s29 = smov [#allocation10]  }
  0x1e   :  { %s71_s28 = sshll.u32 %s4779_s27, 4  ;;  %s93_s0 = sshll.u32 %s4780_s29, 4  ;;  %s72_s28 = int_to_ptr.vmem [resolvable:$true] %s71_s28  ;;  %s94_s0 = int_to_ptr.vmem [resolvable:$true] %s93_s0 }
  0x1f   :  { %s4715_s7 = scalar_lea.vmem %s72_s28, 512  ;;  %p4720_p11 = scmp.lt.s32.totalorder %s72_s28, %s72_s28 }
  0x20   :  { %p4716_p10 = scmp.ne.s32.totalorder %s72_s28, %s4715_s7  ;;  %p4721_p12 = scmp.lt.s32.totalorder %s4715_s7, %s4715_s7 }
  0x22   :  { %p4722_p13 = por %p4721_p12, %p4720_p11 }
  0x24   :  { %p4723_p0 = pnand %p4722_p13, %p4716_p10 }
  0x26   :  { %4726 = shalt.err (!%p4723_p0)
}
  0x27   :  { %77 = dma.hbm_to_vmem [thread:$0]  %s5741_s9, 512, %s72_s28, [#allocation8], %s4777_s22, %s4777_s22, %s4778_s2  }
  0x28   :  { %s4735_s5 = scalar_lea.vmem %s94_s0, 1024  ;;  %p4740_p2 = scmp.lt.s32.totalorder %s94_s0, %s94_s0 }
  0x29   :  { %p4736_p1 = scmp.ne.s32.totalorder %s94_s0, %s4735_s5  ;;  %p4741_p3 = scmp.lt.s32.totalorder %s4735_s5, %s4735_s5 }
  0x2b   :  { %p4742_p4 = por %p4741_p3, %p4740_p2 }
  0x2d   :  { %p4743_p5 = pnand %p4742_p4, %p4736_p1 }
  0x2f   :  { %4746 = shalt.err (!%p4743_p5)
}
  0x30   :  { %99 = dma.hbm_to_vmem [thread:$0]  %s5747_s15, 1024, %s94_s0, [#allocation11], %s4777_s22, %s4777_s22, %s4778_s2  }
  0x31   :  { %4767 = dma.done.wait [#allocation5], 512  }
  0x32   :  { %4768 = vsyncadd [#allocation5], 4294966784 }
  0x33   :  { %4769 = dma.done.wait [#allocation8], 1024  }
  0x34   :  { %4770 = vsyncadd [#allocation8], 4294966272 }
  0x35   :  { %4771 = dma.done.wait [#allocation11], 1024  }
  0x36   :  { %4772 = vsyncadd [#allocation11], 4294966272  ;;  %vm131_vm0 = vcmask 130048   ;;  %s5758_s24 = sld [smem:[#allocation18_spill]]  ;;  %vm265_vm1 = vcmask 261120   ;;  %vm449_vm2 = vcmask 253952  }
  0x37   :  { %s5759_s28 = sld [smem:[#allocation17_spill]]  ;;  %vm4783_vm3 = vmmov 0   ;;  %s4784_s26 = smov 96   ;;  %vm590_vm4 = vcmask 64512   ;;  %vm686_vm5 = vcmask 138240   ;;  %vm693_vm6 = vcmask 131072  }
  0x38   :  { %s5760_s5 = sld [smem:[#allocation19_spill]]  ;;  %s4786_s27 = smov 120   ;;  %vm738_vm7 = vcmask 1040384   ;;  %vm1977_vm8 = vcmask 1046528   ;;  %vm3319_vm9 = vcmask 261121   ;;  %vm3564_vm10 = vcmask 523264  }
  0x39   :  { %s5761_s9 = sld [smem:[#allocation20_spill]]  ;;  %s4788_s15 = smov 56   ;;  %vm3326_vm11 = vcmask 254976   ;;  %vm3722_vm12 = vcmask 254977  }
  0x3a   :  { %s4789_s22 = smov 80   ;;  %s4790_s2 = smov 112  }
  0x3b   :  { %s4791_s29 = smov 48   ;;  %s4792_s0 = smov 72  }
  0x3c   :  { %v123_v0 = vld [vmem:[%s5758_s24 + $0x8] sm:$0xff]  ;;  %v122_v1 = vld [vmem:[%s5758_s24] sm:$0xff]  ;;  %s4793_s7 = smov 104   ;;  %s4794_s30 = smov 40  }
  0x3d   :  { %v118_v2 = vld [vmem:[%s5759_s28] sm:$0xff]  ;;  %4062 = vmatprep.subr.mxu0 %v123_v0  ;;  %v119_v3 = vld [vmem:[%s5759_s28 + $0x8] sm:$0xff]  ;;  %v120_v4 = vld [vmem:[%s5759_s28 + $0x10] sm:$0xff] }
  0x3e   :  { %4066 = vmatprep.mubr.msk.f32.mxu0 %vm131_vm0, %v118_v2  ;;  %4063 = vmatpush3.msra.mxu0 %v123_v0  ;;  %v121_v5 = vld [vmem:[%s5759_s28 + $0x18] sm:$0xff]  ;;  %v3747_v6 = vld [vmem:[%s5760_s5] ss:$0 sm:$0xff]  ;;  %s4787_s28 = smov 64  }
  0x3f   :  { %4064 = vmatprep.subr.mxu0 %v122_v1 }
  0x40   :  { %4065 = vmatpush3.msra.mxu0 %v122_v1 }
  0x41   :  { %4067 = vmatmul.mubr.msk.f32.vlgmr.msra.gmra.mxu0 %vm131_vm0, %v119_v3 }
  0x42   :  { %4069 = vmatprep.mubr.msk.f32.mxu0 %vm131_vm0, %v120_v4 }
  0x45   :  { %4070 = vmatmul.mubr.msk.f32.gmra.mxu0 %vm131_vm0, %v121_v5 }
 0x101   :  { %v4068_v7 = vpop.f32.mrf.mxu0 }
 0x102   :  { %v216_v8 = vadd.f32 %v4068_v7, %v3747_v6 }
 0x103   :  { %v210_v9 = vpop.f32.mrf.mxu0 }
 0x104   :  { %v230_v10 = vmul.f32 %v216_v8, %v216_v8  ;;  %v211_v11 = vadd.f32 %v3747_v6, %v210_v9 }
 0x105   :  { %v4071_v12 = vpop.f32.mrf.mxu0 }
 0x106   :  { %v234_v13 = vmul.f32 %v230_v10, %v216_v8  ;;  %v229_v14 = vmul.f32 %v211_v11, %v211_v11  ;;  %v226_v15 = vadd.f32 %v4071_v12, %v3747_v6  ;;  %v343_v12 = vld [vmem:[#allocation4 + $0x10] sm:$0xff] }
 0x107   :  { %v220_v16 = vpop.f32.mrf.mxu0 }
 0x108   :  { %v238_v17 = vmul.f32 0.044715, %v234_v13  ;;  %v233_v18 = vmul.f32 %v229_v14, %v211_v11  ;;  %v232_v19 = vmul.f32 %v226_v15, %v226_v15  ;;  %v221_v20 = vadd.f32 %v3747_v6, %v220_v16  ;;  %v342_v13 = vld [vmem:[#allocation4 + $0x8] sm:$0xff]  ;;  %v341_v14 = vld [vmem:[#allocation4] sm:$0xff] }
 0x10a   :  { %v242_v21 = vadd.f32 %v238_v17, %v216_v8  ;;  %v237_v22 = vmul.f32 0.044715, %v233_v18  ;;  %v236_v23 = vmul.f32 %v232_v19, %v226_v15  ;;  %v231_v24 = vmul.f32 %v221_v20, %v221_v20 }
 0x10c   :  { %v241_v25 = vadd.f32 %v237_v22, %v211_v11  ;;  %v240_v26 = vmul.f32 0.044715, %v236_v23  ;;  %v235_v27 = vmul.f32 %v231_v24, %v221_v20  ;;  %v246_v28 = vmul.f32 0.7978846, %v242_v21 }
 0x10e   :  { %v244_v29 = vadd.f32 %v240_v26, %v226_v15  ;;  %v239_v30 = vmul.f32 0.044715, %v235_v27  ;;  %v245_v31 = vmul.f32 0.7978846, %v241_v25  ;;  %4520 = vtanh.f32 %v246_v28  ;;  %v3752_v28 = vld [vmem:[%s5761_s9] ss:$0 sm:$0xff] }
 0x110   :  { %v243_v32 = vadd.f32 %v239_v30, %v221_v20  ;;  %4522 = vtanh.f32 %v245_v31  ;;  %v248_v33 = vmul.f32 0.7978846, %v244_v29  ;;  %v3753_v30 = vld [vmem:[%s5736_s4] ss:$0 sm:$0xff] }
 0x112   :  { %v247_v34 = vmul.f32 0.7978846, %v243_v32  ;;  %4524 = vtanh.f32 %v248_v33 }
 0x114   :  { %4526 = vtanh.f32 %v247_v34 }
 0x11b   :  { %v4521_v35 = vpop.eup %4520 }
 0x11c   :  { %v254_v36 = vadd.f32 1.0, %v4521_v35 }
 0x11d   :  { %v4523_v37 = vpop.eup %4522 }
 0x11e   :  { %v253_v38 = vadd.f32 1.0, %v4523_v37  ;;  %v258_v41 = vmul.f32 0.5, %v254_v36 }
 0x11f   :  { %v4525_v39 = vpop.eup %4524 }
 0x120   :  { %v257_v40 = vmul.f32 0.5, %v253_v38  ;;  %v256_v42 = vadd.f32 1.0, %v4525_v39  ;;  %v262_v48 = vmul.f32 %v258_v41, %v216_v8 }
 0x121   :  { %v4527_v43 = vpop.eup %4526 }
 0x122   :  { %v261_v44 = vmul.f32 %v257_v40, %v211_v11  ;;  %v255_v45 = vadd.f32 1.0, %v4527_v43  ;;  %v260_v49 = vmul.f32 0.5, %v256_v42  ;;  %v269_v52 = vsel %vm265_vm1, %v262_v48, 0.0  ;;  %v344_v11 = vld [vmem:[#allocation4 + $0x18] sm:$0xff] }
 0x123   :  { %4072 = vmatprep.subr.mxu1 %v344_v11 }
 0x124   :  { %v266_v46 = vsel %vm265_vm1, %v261_v44, 0.0  ;;  %v259_v47 = vmul.f32 0.5, %v255_v45  ;;  %v264_v53 = vmul.f32 %v260_v49, %v226_v15  ;;  %4073 = vmatpush3.msra.mxu1 %v344_v11  ;;  %v4781_v45 = vmov 0.0   ;;  %v462_v49 = vld [vmem:[#allocation7 + $0x8] sm:$0xff] }
 0x125   :  { %267 = vadd.xlane.f32.xlu0 %v266_v46  ;;  %4074 = vmatprep.subr.mxu1 %v343_v12  ;;  %v464_v46 = vld [vmem:[#allocation7 + $0x18] sm:$0xff] }
 0x126   :  { %v263_v50 = vmul.f32 %v259_v47, %v221_v20  ;;  %v275_v54 = vsel %vm265_vm1, %v264_v53, 0.0  ;;  %4075 = vmatpush3.msra.mxu1 %v343_v12  ;;  %4086 = vmatprep.subr.mxu0 %v4781_v45  ;;  %v4782_v47 = vmov 1.0  }
 0x127   :  { %4076 = vmatprep.subr.mxu1 %v342_v13  ;;  %450 = vst.msk [vmem:[#allocation2] sm:$0x1] %vm449_vm2, %v4782_v47  ;;  %453 = vst.msk [vmem:[#allocation2 + $0x11] sm:$0x1] %vm449_vm2, %v4782_v47  ;;  %4087 = vmatpush3.msra.mxu0 %v464_v46 }
 0x128   :  { %v272_v51 = vsel %vm265_vm1, %v263_v50, 0.0  ;;  %4077 = vmatpush3.msra.mxu1 %v342_v13  ;;  %4088 = vmatprep.subr.mxu0 %v4781_v45 }
 0x129   :  { %273 = vadd.xlane.f32.xlu1 %v272_v51  ;;  %270 = vadd.xlane.f32.xlu0 %v269_v52  ;;  %v3754_v51 = vld [vmem:[%s5738_s6] ss:$0 sm:$0xff] }
 0x12a   :  { %4078 = vmatprep.subr.mxu1 %v341_v14  ;;  %4094 = vmatprep.mubr.msk.f32.mxu0 %vm4783_vm3, %v4781_v45 }
 0x12b   :  { %4079 = vmatpush3.msra.mxu1 %v341_v14 }
 0x12c   :  { %4491 = vmatprep.subr.mxu1 %v4781_v45 }
 0x12d   :  { %276 = vadd.xlane.f32.xlu1 %v275_v54 }
 0x1ae   :  { %v268_v55 = vpop.xlane.xlu0 %267 }
 0x1af   :  { %v279_v56 = vmul.f32 0.03125, %v268_v55 }
 0x1b1   :  { %v283_v57 = vsub.f32 %v261_v44, %v279_v56 }
 0x1b2   :  { %v274_v58 = vpop.xlane.xlu1 %273  ;;  %v271_v59 = vpop.xlane.xlu0 %270 }
 0x1b3   :  { %v281_v60 = vmul.f32 0.03125, %v274_v58  ;;  %v280_v61 = vmul.f32 0.03125, %v271_v59  ;;  %v287_v62 = vmul.f32 %v283_v57, %v283_v57 }
 0x1b5   :  { %v285_v63 = vsub.f32 %v263_v50, %v281_v60  ;;  %v284_v0 = vsub.f32 %v262_v48, %v280_v61  ;;  %v291_v1 = vsel %vm265_vm1, %v287_v62, 0.0  ;;  %v463_v48 = vld [vmem:[#allocation7 + $0x10] sm:$0xff]  ;;  %v461_v50 = vld [vmem:[#allocation7] sm:$0xff] }
 0x1b6   :  { %v277_v2 = vpop.xlane.xlu1 %276  ;;  %292 = vadd.xlane.f32.xlu0 %v291_v1  ;;  %4089 = vmatpush3.msra.mxu0 %v463_v48 }
 0x1b7   :  { %v282_v3 = vmul.f32 0.03125, %v277_v2  ;;  %v289_v4 = vmul.f32 %v285_v63, %v285_v63  ;;  %v288_v5 = vmul.f32 %v284_v0, %v284_v0  ;;  %4090 = vmatprep.subr.mxu0 %v4781_v45 }
 0x1b8   :  { %4091 = vmatpush3.msra.mxu0 %v462_v49 }
 0x1b9   :  { %v286_v6 = vsub.f32 %v264_v53, %v282_v3  ;;  %v297_v7 = vsel %vm265_vm1, %v289_v4, 0.0  ;;  %v294_v8 = vsel %vm265_vm1, %v288_v5, 0.0  ;;  %4092 = vmatprep.subr.mxu0 %v4781_v45  ;;  %v3759_v3 = vld [vmem:[%s5740_s8] ss:$0 sm:$0xff]  ;;  %s4785_s8 = smov 88  }
 0x1ba   :  { %298 = vadd.xlane.f32.xlu0 %v297_v7  ;;  %295 = vadd.xlane.f32.xlu1 %v294_v8 }
 0x1bb   :  { %v290_v9 = vmul.f32 %v286_v6, %v286_v6  ;;  %4093 = vmatpush3.msra.mxu0 %v461_v50 }
 0x1bc   :  { %4124 = vmatprep.subr.mxu0 %v4781_v45 }
 0x1bd   :  { %v300_v10 = vsel %vm265_vm1, %v290_v9, 0.0 }
 0x1be   :  { %301 = vadd.xlane.f32.xlu1 %v300_v10 }
 0x23f   :  { %v293_v15 = vpop.xlane.xlu0 %292 }
 0x240   :  { %v303_v16 = vmul.f32 0.03125, %v293_v15 }
 0x242   :  { %v307_v17 = vadd.f32 1e-05, %v303_v16 }
 0x243   :  { %v296_v18 = vpop.xlane.xlu1 %295  ;;  %v299_v19 = vpop.xlane.xlu0 %298 }
 0x244   :  { %4528 = vrsqrt.f32 %v307_v17  ;;  %v304_v20 = vmul.f32 0.03125, %v296_v18  ;;  %v305_v21 = vmul.f32 0.03125, %v299_v19 }
 0x246   :  { %v308_v22 = vadd.f32 1e-05, %v304_v20  ;;  %v309_v23 = vadd.f32 1e-05, %v305_v21 }
 0x247   :  { %v302_v24 = vpop.xlane.xlu1 %301 }
 0x248   :  { %4530 = vrsqrt.f32 %v308_v22  ;;  %v306_v25 = vmul.f32 0.03125, %v302_v24 }
 0x249   :  { %4532 = vrsqrt.f32 %v309_v23 }
 0x24a   :  { %v310_v26 = vadd.f32 1e-05, %v306_v25 }
 0x24c   :  { %4534 = vrsqrt.f32 %v310_v26 }
 0x251   :  { %v4529_v27 = vpop.eup %4528 }
 0x252   :  { %v315_v29 = vmul.f32 %v4529_v27, %v283_v57 }
 0x254   :  { %v326_v31 = vmul.f32 %v3752_v28, %v315_v29 }
 0x255   :  { %v4531_v32 = vpop.eup %4530 }
 0x256   :  { %v4533_v33 = vpop.eup %4532  ;;  %v337_v34 = vadd.f32 %v3753_v30, %v326_v31  ;;  %v316_v35 = vmul.f32 %v4531_v32, %v284_v0 }
 0x257   :  { %v317_v36 = vmul.f32 %v4533_v33, %v285_v63 }
 0x258   :  { %4080 = vmatprep.mubr.msk.f32.mxu1 %vm265_vm1, %v337_v34  ;;  %v327_v37 = vmul.f32 %v3752_v28, %v316_v35 }
 0x259   :  { %v4535_v38 = vpop.eup %4534  ;;  %v328_v39 = vmul.f32 %v3752_v28, %v317_v36 }
 0x25a   :  { %v338_v40 = vadd.f32 %v3753_v30, %v327_v37  ;;  %v318_v41 = vmul.f32 %v4535_v38, %v286_v6 }
 0x25b   :  { %v339_v42 = vadd.f32 %v3753_v30, %v328_v39 }
 0x25c   :  { %4081 = vmatmul.mubr.msk.f32.vlgmr.msra.gmra.mxu1 %vm265_vm1, %v338_v40  ;;  %v329_v43 = vmul.f32 %v3752_v28, %v318_v41 }
 0x25d   :  { %4083 = vmatprep.mubr.msk.f32.mxu1 %vm265_vm1, %v339_v42  ;;  %4495 = vmatpush3.msra.mxu1 %v464_v46 }
 0x25e   :  { %v340_v44 = vadd.f32 %v3753_v30, %v329_v43  ;;  %4492 = vmatprep.subr.mxu1 %v4781_v45 }
 0x25f   :  { %4496 = vmatpush3.msra.mxu1 %v463_v48 }
 0x260   :  { %4084 = vmatmul.mubr.msk.f32.gmra.mxu1 %vm265_vm1, %v340_v44  ;;  %4493 = vmatprep.subr.mxu1 %v4781_v45 }
 0x261   :  { %4497 = vmatpush3.msra.mxu1 %v462_v49  ;;  %4100 = vmatprep.mubr.msk.f32.mxu1 %vm4783_vm3, %v4781_v45 }
 0x262   :  { %4494 = vmatprep.subr.mxu1 %v4781_v45 }
 0x263   :  { %4498 = vmatpush3.msra.mxu1 %v461_v50 }
 0x264   :  { %4109 = vmatprep.subr.mxu1 %v4781_v45 }
 0x31c   :  { %v4082_v52 = vpop.f32.mrf.mxu1 }
 0x31d   :  { %v436_v53 = vadd.f32 %v4082_v52, %v3754_v51 }
 0x31e   :  { %v430_v54 = vpop.f32.mrf.mxu1 }
 0x31f   :  { %452 = vst.msk [vmem:[#allocation2 + $0x9] sm:$0xff] %vm265_vm1, %v436_v53  ;;  %v431_v55 = vadd.f32 %v3754_v51, %v430_v54 }
 0x320   :  { %v4085_v56 = vpop.f32.mrf.mxu1 }
 0x321   :  { %451 = vst.msk [vmem:[#allocation2 + $0x1] sm:$0xff] %vm265_vm1, %v431_v55  ;;  %v446_v57 = vadd.f32 %v4085_v56, %v3754_v51 }
 0x322   :  { %v440_v58 = vpop.f32.mrf.mxu1 }
 0x323   :  { %455 = vst.msk [vmem:[#allocation2 + $0x1a] sm:$0xff] %vm265_vm1, %v446_v57  ;;  %v441_v59 = vadd.f32 %v3754_v51, %v440_v58 }
 0x325   :  { %454 = vst.msk [vmem:[#allocation2 + $0x12] sm:$0xff] %vm265_vm1, %v441_v59 }
 0x328   :  { %v456_v60 = vld [vmem:[#allocation2] sm:$0xff]  ;;  %v457_v61 = vld [vmem:[#allocation2 + $0x8] sm:$0xff] }
 0x329   :  { %4095 = vmatmul.mubr.msk.f32.vlgmr.msra.gmra.mxu0 %vm265_vm1, %v456_v60 }
 0x32a   :  { %4097 = vmatprep.mubr.msk.f32.mxu0 %vm4783_vm3, %v4781_v45  ;;  %v460_v0 = vld [vmem:[#allocation2 + $0x20] sm:$0x3] }
 0x32c   :  { %v458_v62 = vld [vmem:[#allocation2 + $0x10] sm:$0xff]  ;;  %v459_v63 = vld [vmem:[#allocation2 + $0x18] sm:$0xff] }
 0x32d   :  { %4098 = vmatmul.mubr.msk.f32.gmra.mxu0 %vm265_vm1, %v457_v61  ;;  %4101 = vmatmul.mubr.msk.f32.vlgmr.msra.gmra.mxu1 %vm265_vm1, %v458_v62 }
 0x32e   :  { %4103 = vmatprep.mubr.msk.f32.mxu1 %vm4783_vm3, %v4781_v45  ;;  %4130 = vmatprep.mubr.msk.f32.mxu0 %vm4783_vm3, %v4781_v45 }
 0x331   :  { %4104 = vmatmul.mubr.msk.f32.gmra.mxu1 %vm265_vm1, %v459_v63 }
 0x332   :  { %4106 = vmatprep.mubr.msk.f32.mxu1 %vm4783_vm3, %v4781_v45 }
 0x335   :  { %4107 = vmatmul.mubr.msk.f32.gmra.mxu1 %vm265_vm1, %v460_v0 }
 0x336   :  { %4115 = vmatprep.mubr.msk.f32.mxu1 %vm4783_vm3, %v4781_v45 }
 0x3e9   :  { %v553_v1 = vpop.f32.mrf.mxu0 }
 0x3ea   :  { %v5008_v11 = vadd.f32 %v3759_v3, %v553_v1 }
 0x3eb   :  { %v4096_v2 = vpop.f32.mrf.mxu0 }
 0x3ed   :  { %v558_v4 = vpop.f32.mrf.mxu0  ;;  %v563_v5 = vpop.f32.mrf.mxu1 }
 0x3ee   :  { %v5000_v6 = vadd.f32 %v3759_v3, %v558_v4  ;;  %v5002_v7 = vadd.f32 %v3759_v3, %v563_v5 }
 0x3ef   :  { %v4099_v8 = vpop.f32.mrf.mxu0  ;;  %v4102_v9 = vpop.f32.mrf.mxu1 }
 0x3f0   :  { %586 = vrot.lane.b32.xlu1 %v5000_v6, %s4784_s26  ;;  %588 = vrot.lane.b32.xlu0 %v5002_v7, %s4784_s26 }
 0x3f1   :  { %v568_v10 = vpop.f32.mrf.mxu1 }
 0x3f2   :  { %v5010_v12 = vadd.f32 %v3759_v3, %v568_v10 }
 0x3f3   :  { %v4105_v13 = vpop.f32.mrf.mxu1 }
 0x3f4   :  { %584 = vrot.lane.b32.xlu1 %v5008_v11, %s4784_s26  ;;  %829 = vrot.lane.b32.xlu0 %v5000_v6, %s4785_s8 }
 0x3f5   :  { %v573_v14 = vpop.f32.mrf.mxu1 }
 0x3f6   :  { %v5016_v15 = vadd.f32 %v3759_v3, %v573_v14 }
 0x3f7   :  { %v4108_v16 = vpop.f32.mrf.mxu1 }
 0x3f8   :  { %831 = vrot.lane.b32.xlu1 %v5002_v7, %s4785_s8  ;;  %821 = vrot.lane.b32.xlu0 %v5008_v11, %s4786_s27 }
 0x3fc   :  { %827 = vrot.lane.b32.xlu1 %v5008_v11, %s4785_s8  ;;  %825 = vrot.lane.b32.xlu0 %v5002_v7, %s4786_s27 }
 0x400   :  { %823 = vrot.lane.b32.xlu1 %v5000_v6, %s4786_s27 }
 0x462   :  { %v587_v17 = vpop.permute.xlu1 %586  ;;  %v589_v18 = vpop.permute.xlu0 %588 }
 0x463   :  { %4110 = vmatpush3.xpose.msk.msra.mxu1 %vm590_vm4, %v589_v18 }
 0x464   :  { %4111 = vmatprep.subr.mxu1 %v4781_v45 }
 0x466   :  { %v585_v19 = vpop.permute.xlu1 %584  ;;  %v830_v21 = vpop.permute.xlu0 %829 }
 0x467   :  { %4112 = vmatpush3.xpose.msk.msra.mxu1 %vm590_vm4, %v587_v17 }
 0x468   :  { %4113 = vmatprep.subr.mxu1 %v4781_v45 }
 0x46a   :  { %v832_v20 = vpop.permute.xlu1 %831  ;;  %v822_v23 = vpop.permute.xlu0 %821 }
 0x46b   :  { %4114 = vmatpush3.xpose.msk.msra.mxu1 %vm590_vm4, %v585_v19 }
 0x46c   :  { %4139 = vmatprep.subr.mxu1 %v4781_v45 }
 0x46e   :  { %4116 = vmatmul.mubr.msk.f32.vlgmr.msra.gmra.mxu1 %vm590_vm4, %v5008_v11  ;;  %v828_v22 = vpop.permute.xlu1 %827  ;;  %v826_v25 = vpop.permute.xlu0 %825 }
 0x46f   :  { %4140 = vmatpush3.xpose.msk.msra.mxu1 %vm590_vm4, %v832_v20  ;;  %4118 = vmatprep.mubr.msk.f32.mxu1 %vm4783_vm3, %v4781_v45 }
 0x470   :  { %4141 = vmatprep.subr.mxu1 %v4781_v45 }
 0x472   :  { %4119 = vmatmul.mubr.msk.f32.gmra.mxu1 %vm590_vm4, %v5000_v6  ;;  %v824_v24 = vpop.permute.xlu1 %823 }
 0x473   :  { %4142 = vmatpush3.xpose.msk.msra.mxu1 %vm590_vm4, %v830_v21  ;;  %4121 = vmatprep.mubr.msk.f32.mxu1 %vm4783_vm3, %v4781_v45 }
 0x474   :  { %4143 = vmatprep.subr.mxu1 %v4781_v45 }
 0x476   :  { %4122 = vmatmul.mubr.msk.f32.gmra.mxu1 %vm590_vm4, %v5002_v7 }
 0x477   :  { %4144 = vmatpush3.xpose.msk.msra.mxu1 %vm590_vm4, %v828_v22  ;;  %4145 = vmatprep.mubr.msk.f32.mxu1 %vm4783_vm3, %v4781_v45 }
 0x478   :  { %4169 = vmatprep.subr.mxu1 %v4781_v45 }
 0x47a   :  { %4146 = vmatmul.mubr.msk.f32.vlgmr.msra.gmra.mxu1 %vm590_vm4, %v822_v23 }
 0x47b   :  { %4148 = vmatprep.mubr.msk.f32.mxu1 %vm4783_vm3, %v4781_v45 }
 0x47e   :  { %4149 = vmatmul.mubr.msk.f32.gmra.mxu1 %vm590_vm4, %v824_v24 }
 0x47f   :  { %4151 = vmatprep.mubr.msk.f32.mxu1 %vm4783_vm3, %v4781_v45 }
 0x482   :  { %4152 = vmatmul.mubr.msk.f32.gmra.mxu1 %vm590_vm4, %v826_v25 }
 0x483   :  { %4171 = vmatprep.mubr.msk.f32.mxu1 %vm4783_vm3, %v4781_v45 }
 0x52e   :  { %v669_v26 = vpop.f32.mrf.mxu1 }
 0x52f   :  { %v683_v27 = vmul.f32 0.35355338, %v669_v26 }
 0x530   :  { %v4117_v28 = vpop.f32.mrf.mxu1 }
 0x531   :  { %v687_v29 = vsel %vm686_vm5, %v683_v27, -inf }
 0x532   :  { %688 = vmax.xlane.f32.xlu1 %v687_v29  ;;  %v674_v30 = vpop.f32.mrf.mxu1 }
 0x533   :  { %v684_v31 = vmul.f32 0.35355338, %v674_v30 }
 0x534   :  { %v4120_v32 = vpop.f32.mrf.mxu1 }
 0x535   :  { %v690_v33 = vsel %vm686_vm5, %v684_v31, -inf }
 0x536   :  { %691 = vmax.xlane.f32.xlu0 %v690_v33  ;;  %v679_v34 = vpop.f32.mrf.mxu1 }
 0x537   :  { %v685_v35 = vmul.f32 0.35355338, %v679_v34 }
 0x538   :  { %v4123_v36 = vpop.f32.mrf.mxu1 }
 0x539   :  { %v694_v37 = vsel %vm693_vm6, %v685_v35, -inf }
 0x53a   :  { %695 = vmax.xlane.f32.xlu0 %v694_v37  ;;  %v911_v38 = vpop.f32.mrf.mxu1 }
 0x53b   :  { %v925_v39 = vmul.f32 0.35355338, %v911_v38 }
 0x53c   :  { %v4147_v40 = vpop.f32.mrf.mxu1 }
 0x53d   :  { %v928_v41 = vsel %vm686_vm5, %v925_v39, -inf }
 0x53e   :  { %929 = vmax.xlane.f32.xlu0 %v928_v41  ;;  %v916_v42 = vpop.f32.mrf.mxu1 }
 0x53f   :  { %v926_v43 = vmul.f32 0.35355338, %v916_v42 }
 0x540   :  { %v4150_v44 = vpop.f32.mrf.mxu1 }
 0x541   :  { %v931_v46 = vsel %vm686_vm5, %v926_v43, -inf }
 0x542   :  { %932 = vmax.xlane.f32.xlu1 %v931_v46  ;;  %v921_v47 = vpop.f32.mrf.mxu1 }
 0x543   :  { %v927_v48 = vmul.f32 0.35355338, %v921_v47  ;;  %v5123_v47 = vld [vmem:[#allocation9] sm:$0xff] }
 0x544   :  { %v4153_v49 = vpop.f32.mrf.mxu1 }
 0x545   :  { %v934_v50 = vsel %vm693_vm6, %v927_v48, -inf }
 0x546   :  { %935 = vmax.xlane.f32.xlu0 %v934_v50 }
 0x553   :  { %725 = vrot.lane.b32.xlu1 %v5002_v7, %s4787_s28 }
 0x557   :  { %721 = vrot.lane.b32.xlu1 %v5008_v11, %s4787_s28 }
 0x55b   :  { %965 = vrot.lane.b32.xlu1 %v5002_v7, %s4788_s15 }
 0x55c   :  { %723 = vrot.lane.b32.xlu0 %v5000_v6, %s4787_s28 }
 0x5bb   :  { %v689_v51 = vpop.xlane.xlu1 %688 }
 0x5bc   :  { %v697_v52 = vsub.f32 %v683_v27, %v689_v51 }
 0x5be   :  { %v700_v53 = vmul.f32 1.442695, %v697_v52 }
 0x5bf   :  { %v692_v54 = vpop.xlane.xlu0 %691 }
 0x5c0   :  { %4536 = vpow2.f32 %v700_v53  ;;  %v698_v55 = vsub.f32 %v684_v31, %v692_v54 }
 0x5c2   :  { %v702_v56 = vmul.f32 1.442695, %v698_v55 }
 0x5c3   :  { %v696_v57 = vpop.xlane.xlu0 %695 }
 0x5c4   :  { %4538 = vpow2.f32 %v702_v56  ;;  %v699_v58 = vsub.f32 %v685_v35, %v696_v57 }
 0x5c6   :  { %v704_v59 = vmul.f32 1.442695, %v699_v58 }
 0x5c7   :  { %v930_v60 = vpop.xlane.xlu0 %929 }
 0x5c8   :  { %4540 = vpow2.f32 %v704_v59  ;;  %v937_v61 = vsub.f32 %v925_v39, %v930_v60 }
 0x5ca   :  { %v940_v62 = vmul.f32 1.442695, %v937_v61 }
 0x5cb   :  { %v933_v63 = vpop.xlane.xlu1 %932 }
 0x5cc   :  { %4542 = vpow2.f32 %v940_v62  ;;  %v938_v0 = vsub.f32 %v926_v43, %v933_v63 }
 0x5cd   :  { %v4537_v1 = vpop.eup %4536 }
 0x5ce   :  { %v942_v2 = vmul.f32 1.442695, %v938_v0  ;;  %v706_v3 = vsel %vm686_vm5, %v4537_v1, 0.0 }
 0x5cf   :  { %707 = vadd.xlane.f32.xlu1 %v706_v3  ;;  %v726_v4 = vpop.permute.xlu1 %725  ;;  %v936_v5 = vpop.xlane.xlu0 %935 }
 0x5d0   :  { %4544 = vpow2.f32 %v942_v2  ;;  %v939_v8 = vsub.f32 %v927_v48, %v936_v5  ;;  %4125 = vmatpush3.msk.msra.mxu0 %vm738_vm7, %v726_v4  ;;  %v5126_v48 = vld [vmem:[#allocation9 + $0x8] sm:$0xff] }
 0x5d1   :  { %v4539_v9 = vpop.eup %4538  ;;  %4126 = vmatprep.subr.mxu0 %v4781_v45  ;;  %4170 = vmatpush3.msra.mxu1 %v5126_v48 }
 0x5d2   :  { %v944_v10 = vmul.f32 1.442695, %v939_v8  ;;  %v709_v13 = vsel %vm686_vm5, %v4539_v9, 0.0  ;;  %4191 = vmatprep.subr.mxu1 %v4781_v45 }
 0x5d3   :  { %710 = vadd.xlane.f32.xlu0 %v709_v13  ;;  %v724_v14 = vpop.permute.xlu0 %723  ;;  %v722_v17 = vpop.permute.xlu1 %721 }
 0x5d4   :  { %4546 = vpow2.f32 %v944_v10  ;;  %4127 = vmatpush3.msra.mxu0 %v724_v14 }
 0x5d5   :  { %v4541_v16 = vpop.eup %4540  ;;  %4128 = vmatprep.subr.mxu0 %v4781_v45 }
 0x5d6   :  { %4129 = vmatpush3.msra.mxu0 %v722_v17  ;;  %v712_v18 = vsel %vm693_vm6, %v4541_v16, 0.0 }
 0x5d7   :  { %713 = vadd.xlane.f32.xlu1 %v712_v18  ;;  %4154 = vmatprep.subr.mxu0 %v4781_v45  ;;  %v966_v25 = vpop.permute.xlu1 %965 }
 0x5d9   :  { %v4543_v19 = vpop.eup %4542 }
 0x5da   :  { %v946_v20 = vsel %vm686_vm5, %v4543_v19, 0.0 }
 0x5db   :  { %947 = vadd.xlane.f32.xlu0 %v946_v20 }
 0x5dd   :  { %v4545_v21 = vpop.eup %4544 }
 0x5de   :  { %v949_v22 = vsel %vm686_vm5, %v4545_v21, 0.0 }
 0x5df   :  { %950 = vadd.xlane.f32.xlu1 %v949_v22 }
 0x5e1   :  { %v4547_v23 = vpop.eup %4546 }
 0x5e2   :  { %v952_v24 = vsel %vm693_vm6, %v4547_v23, 0.0 }
 0x5e3   :  { %953 = vadd.xlane.f32.xlu0 %v952_v24 }
 0x5f0   :  { %963 = vrot.lane.b32.xlu1 %v5000_v6, %s4788_s15 }
 0x5f4   :  { %1248 = vrot.lane.b32.xlu1 %v5002_v7, %s4789_s22 }
 0x5f8   :  { %1244 = vrot.lane.b32.xlu1 %v5008_v11, %s4789_s22 }
 0x5f9   :  { %961 = vrot.lane.b32.xlu0 %v5008_v11, %s4788_s15 }
 0x5fc   :  { %1240 = vrot.lane.b32.xlu1 %v5000_v6, %s4790_s2 }
 0x5fd   :  { %1246 = vrot.lane.b32.xlu0 %v5000_v6, %s4789_s22 }
 0x601   :  { %1238 = vrot.lane.b32.xlu0 %v5008_v11, %s4790_s2 }
 0x605   :  { %1242 = vrot.lane.b32.xlu0 %v5002_v7, %s4790_s2 }
 0x658   :  { %v708_v26 = vpop.xlane.xlu1 %707 }
 0x659   :  { %4548 = vrcp.f32 %v708_v26 }
 0x65c   :  { %v711_v27 = vpop.xlane.xlu0 %710 }
 0x65d   :  { %4550 = vrcp.f32 %v711_v27 }
 0x660   :  { %v714_v28 = vpop.xlane.xlu1 %713 }
 0x661   :  { %4552 = vrcp.f32 %v714_v28 }
 0x664   :  { %v948_v29 = vpop.xlane.xlu0 %947 }
 0x665   :  { %4554 = vrcp.f32 %v948_v29 }
 0x666   :  { %v4549_v30 = vpop.eup %4548 }
 0x667   :  { %v716_v31 = vmul.f32 %v4549_v30, %v4537_v1 }
 0x668   :  { %v951_v32 = vpop.xlane.xlu1 %950 }
 0x669   :  { %4556 = vrcp.f32 %v951_v32  ;;  %4131 = vmatmul.mubr.msk.f32.vlgmr.msra.gmra.mxu0 %vm686_vm5, %v716_v31 }
 0x66a   :  { %v4551_v33 = vpop.eup %4550  ;;  %4155 = vmatpush3.msk.msra.mxu0 %vm738_vm7, %v966_v25  ;;  %4133 = vmatprep.mubr.msk.f32.mxu0 %vm4783_vm3, %v4781_v45 }
 0x66b   :  { %4156 = vmatprep.subr.mxu0 %v4781_v45  ;;  %v718_v34 = vmul.f32 %v4551_v33, %v4539_v9 }
 0x66c   :  { %v964_v35 = vpop.permute.xlu1 %963  ;;  %v954_v36 = vpop.xlane.xlu0 %953 }
 0x66d   :  { %4558 = vrcp.f32 %v954_v36  ;;  %4134 = vmatmul.mubr.msk.f32.gmra.mxu0 %vm686_vm5, %v718_v34 }
 0x66e   :  { %v4553_v37 = vpop.eup %4552  ;;  %4157 = vmatpush3.msra.mxu0 %v964_v35  ;;  %4136 = vmatprep.mubr.msk.f32.mxu0 %vm4783_vm3, %v4781_v45 }
 0x66f   :  { %4158 = vmatprep.subr.mxu0 %v4781_v45  ;;  %v720_v38 = vmul.f32 %v4553_v37, %v4541_v16 }
 0x670   :  { %v962_v39 = vpop.permute.xlu0 %961  ;;  %v1249_v56 = vpop.permute.xlu1 %1248 }
 0x671   :  { %4137 = vmatmul.mubr.msk.f32.gmra.mxu0 %vm686_vm5, %v720_v38 }
 0x672   :  { %v4555_v40 = vpop.eup %4554  ;;  %4159 = vmatpush3.msra.mxu0 %v962_v39  ;;  %4160 = vmatprep.mubr.msk.f32.mxu0 %vm4783_vm3, %v4781_v45 }
 0x673   :  { %v956_v41 = vmul.f32 %v4555_v40, %v4543_v19  ;;  %4180 = vmatprep.subr.mxu0 %v4781_v45 }
 0x674   :  { %v1247_v59 = vpop.permute.xlu0 %1246  ;;  %v1245_v62 = vpop.permute.xlu1 %1244 }
 0x675   :  { %4161 = vmatmul.mubr.msk.f32.vlgmr.msra.gmra.mxu0 %vm686_vm5, %v956_v41 }
 0x676   :  { %v4557_v42 = vpop.eup %4556  ;;  %4163 = vmatprep.mubr.msk.f32.mxu0 %vm4783_vm3, %v4781_v45  ;;  %4181 = vmatpush3.msra.mxu0 %v5123_v47 }
 0x677   :  { %v958_v43 = vmul.f32 %v4557_v42, %v4545_v21  ;;  %4206 = vmatprep.subr.mxu0 %v4781_v45 }
 0x678   :  { %v1239_v0 = vpop.permute.xlu0 %1238  ;;  %v1241_v1 = vpop.permute.xlu1 %1240 }
 0x679   :  { %4164 = vmatmul.mubr.msk.f32.gmra.mxu0 %vm686_vm5, %v958_v43 }
 0x67a   :  { %v4559_v44 = vpop.eup %4558  ;;  %4166 = vmatprep.mubr.msk.f32.mxu0 %vm4783_vm3, %v4781_v45 }
 0x67b   :  { %v960_v46 = vmul.f32 %v4559_v44, %v4547_v23 }
 0x67c   :  { %v1243_v2 = vpop.permute.xlu0 %1242 }
 0x67d   :  { %4167 = vmatmul.mubr.msk.f32.gmra.mxu0 %vm686_vm5, %v960_v46 }
 0x67e   :  { %4182 = vmatprep.mubr.msk.f32.mxu0 %vm4783_vm3, %v4781_v45 }
 0x729   :  { %v807_v49 = vpop.f32.mrf.mxu0 }
 0x72a   :  { %4183 = vmatmul.mubr.msk.f32.vlgmr.msra.gmra.mxu0 %vm590_vm4, %v807_v49 }
 0x72b   :  { %v4132_v50 = vpop.f32.mrf.mxu0  ;;  %4185 = vmatprep.mubr.msk.f32.mxu0 %vm4783_vm3, %v4781_v45 }
 0x72d   :  { %v812_v51 = vpop.f32.mrf.mxu0 }
 0x72e   :  { %4186 = vmatmul.mubr.msk.f32.gmra.mxu0 %vm590_vm4, %v812_v51 }
 0x72f   :  { %v4135_v52 = vpop.f32.mrf.mxu0  ;;  %4188 = vmatprep.mubr.msk.f32.mxu0 %vm4783_vm3, %v4781_v45 }
 0x731   :  { %v817_v53 = vpop.f32.mrf.mxu0 }
 0x732   :  { %4189 = vmatmul.mubr.msk.f32.gmra.mxu0 %vm590_vm4, %v817_v53 }
 0x733   :  { %v4138_v54 = vpop.f32.mrf.mxu0  ;;  %4212 = vmatprep.mubr.msk.f32.mxu0 %vm4783_vm3, %v4781_v45 }
 0x735   :  { %v1046_v55 = vpop.f32.mrf.mxu0 }
 0x736   :  { %4172 = vmatmul.mubr.msk.f32.vlgmr.msra.gmra.mxu1 %vm590_vm4, %v1046_v55 }
 0x737   :  { %4192 = vmatpush3.xpose.msk.msra.mxu1 %vm590_vm4, %v1249_v56  ;;  %v4162_v57 = vpop.f32.mrf.mxu0  ;;  %4174 = vmatprep.mubr.msk.f32.mxu1 %vm4783_vm3, %v4781_v45 }
 0x738   :  { %4193 = vmatprep.subr.mxu1 %v4781_v45 }
 0x739   :  { %v1051_v58 = vpop.f32.mrf.mxu0 }
 0x73a   :  { %4175 = vmatmul.mubr.msk.f32.gmra.mxu1 %vm590_vm4, %v1051_v58 }
 0x73b   :  { %4194 = vmatpush3.xpose.msk.msra.mxu1 %vm590_vm4, %v1247_v59  ;;  %v4165_v60 = vpop.f32.mrf.mxu0  ;;  %4177 = vmatprep.mubr.msk.f32.mxu1 %vm4783_vm3, %v4781_v45 }
 0x73c   :  { %4195 = vmatprep.subr.mxu1 %v4781_v45 }
 0x73d   :  { %v1056_v61 = vpop.f32.mrf.mxu0 }
 0x73e   :  { %4178 = vmatmul.mubr.msk.f32.gmra.mxu1 %vm590_vm4, %v1056_v61 }
 0x73f   :  { %4196 = vmatpush3.xpose.msk.msra.mxu1 %vm590_vm4, %v1245_v62  ;;  %v4168_v63 = vpop.f32.mrf.mxu0  ;;  %4197 = vmatprep.mubr.msk.f32.mxu1 %vm4783_vm3, %v4781_v45 }
 0x740   :  { %4221 = vmatprep.subr.mxu1 %v4781_v45 }
 0x742   :  { %4198 = vmatmul.mubr.msk.f32.vlgmr.msra.gmra.mxu1 %vm590_vm4, %v1239_v0 }
 0x743   :  { %4200 = vmatprep.mubr.msk.f32.mxu1 %vm4783_vm3, %v4781_v45 }
 0x746   :  { %4201 = vmatmul.mubr.msk.f32.gmra.mxu1 %vm590_vm4, %v1241_v1 }
 0x747   :  { %4203 = vmatprep.mubr.msk.f32.mxu1 %vm4783_vm3, %v4781_v45 }
 0x74a   :  { %4204 = vmatmul.mubr.msk.f32.gmra.mxu1 %vm590_vm4, %v1243_v2 }
 0x74b   :  { %4223 = vmatprep.mubr.msk.f32.mxu1 %vm4783_vm3, %v4781_v45 }
 0x7ea   :  { %v1224_v3 = vpop.f32.mrf.mxu0 }
 0x7ec   :  { %v4184_v4 = vpop.f32.mrf.mxu0 }
 0x7ee   :  { %v1229_v5 = vpop.f32.mrf.mxu0 }
 0x7f0   :  { %v4187_v8 = vpop.f32.mrf.mxu0 }
 0x7f2   :  { %v1234_v9 = vpop.f32.mrf.mxu0 }
 0x7f4   :  { %v4190_v10 = vpop.f32.mrf.mxu0 }
 0x7f6   :  { %v1135_v13 = vpop.f32.mrf.mxu1 }
 0x7f7   :  { %v5164_v14 = vadd.f32 %v1224_v3, %v1135_v13 }
 0x7f8   :  { %v4173_v16 = vpop.f32.mrf.mxu1 }
 0x7fa   :  { %v1140_v17 = vpop.f32.mrf.mxu1 }
 0x7fb   :  { %v5166_v18 = vadd.f32 %v1229_v5, %v1140_v17 }
 0x7fc   :  { %v4176_v19 = vpop.f32.mrf.mxu1 }
 0x7fe   :  { %v1145_v20 = vpop.f32.mrf.mxu1 }
 0x7ff   :  { %v5168_v21 = vadd.f32 %v1234_v9, %v1145_v20  ;;  %v5219_v9 = vld [vmem:[#allocation9 + $0x10] sm:$0xff] }
 0x800   :  { %v4179_v22 = vpop.f32.mrf.mxu1  ;;  %4222 = vmatpush3.msra.mxu1 %v5219_v9 }
 0x801   :  { %4247 = vmatprep.subr.mxu1 %v4781_v45 }
 0x802   :  { %v1328_v23 = vpop.f32.mrf.mxu1 }
 0x803   :  { %v1342_v24 = vmul.f32 0.35355338, %v1328_v23 }
 0x804   :  { %v4199_v25 = vpop.f32.mrf.mxu1 }
 0x805   :  { %v1345_v26 = vsel %vm686_vm5, %v1342_v24, -inf }
 0x806   :  { %1346 = vmax.xlane.f32.xlu1 %v1345_v26  ;;  %v1333_v27 = vpop.f32.mrf.mxu1 }
 0x807   :  { %v1343_v28 = vmul.f32 0.35355338, %v1333_v27 }
 0x808   :  { %v4202_v29 = vpop.f32.mrf.mxu1 }
 0x809   :  { %v1348_v30 = vsel %vm686_vm5, %v1343_v28, -inf }
 0x80a   :  { %1349 = vmax.xlane.f32.xlu0 %v1348_v30  ;;  %v1338_v31 = vpop.f32.mrf.mxu1 }
 0x80b   :  { %v1344_v32 = vmul.f32 0.35355338, %v1338_v31 }
 0x80c   :  { %v4205_v33 = vpop.f32.mrf.mxu1 }
 0x80d   :  { %v1351_v34 = vsel %vm693_vm6, %v1344_v32, -inf }
 0x80e   :  { %1352 = vmax.xlane.f32.xlu0 %v1351_v34  ;;  %v5243_v34 = vrot.slane %v5016_v15, 1 }
 0x817   :  { %1382 = vrot.lane.b32.xlu1 %v5002_v7, %s4791_s29 }
 0x81b   :  { %1378 = vrot.lane.b32.xlu1 %v5008_v11, %s4791_s29 }
 0x81f   :  { %1579 = vrot.lane.b32.xlu1 %v5002_v7, %s4792_s0 }
 0x823   :  { %1577 = vrot.lane.b32.xlu1 %v5000_v6, %s4792_s0 }
 0x88f   :  { %v1347_v35 = vpop.xlane.xlu1 %1346 }
 0x890   :  { %v1354_v36 = vsub.f32 %v1342_v24, %v1347_v35 }
 0x892   :  { %v1357_v37 = vmul.f32 1.442695, %v1354_v36 }
 0x893   :  { %v1383_v38 = vpop.permute.xlu1 %1382  ;;  %v1350_v39 = vpop.xlane.xlu0 %1349 }
 0x894   :  { %4560 = vpow2.f32 %v1357_v37  ;;  %v1355_v40 = vsub.f32 %v1343_v28, %v1350_v39  ;;  %4207 = vmatpush3.msk.msra.mxu0 %vm738_vm7, %v1383_v38 }
 0x895   :  { %4208 = vmatprep.subr.mxu0 %v4781_v45 }
 0x896   :  { %v1359_v41 = vmul.f32 1.442695, %v1355_v40 }
 0x897   :  { %v1353_v49 = vpop.xlane.xlu0 %1352  ;;  %v1379_v54 = vpop.permute.xlu1 %1378 }
 0x898   :  { %4562 = vpow2.f32 %v1359_v41  ;;  %v1356_v50 = vsub.f32 %v1344_v32, %v1353_v49 }
 0x89a   :  { %v1361_v51 = vmul.f32 1.442695, %v1356_v50 }
 0x89b   :  { %v1580_v55 = vpop.permute.xlu1 %1579 }
 0x89c   :  { %4564 = vpow2.f32 %v1361_v51 }
 0x89f   :  { %v1578_v56 = vpop.permute.xlu1 %1577 }
 0x8a1   :  { %v4561_v42 = vpop.eup %4560 }
 0x8a2   :  { %v1363_v43 = vsel %vm686_vm5, %v4561_v42, 0.0 }
 0x8a3   :  { %1364 = vadd.xlane.f32.xlu0 %v1363_v43 }
 0x8a5   :  { %v4563_v44 = vpop.eup %4562 }
 0x8a6   :  { %v1366_v46 = vsel %vm686_vm5, %v4563_v44, 0.0 }
 0x8a7   :  { %1367 = vadd.xlane.f32.xlu1 %v1366_v46 }
 0x8a9   :  { %v4565_v52 = vpop.eup %4564 }
 0x8aa   :  { %v1369_v53 = vsel %vm693_vm6, %v4565_v52, 0.0 }
 0x8b8   :  { %1569 = vrot.lane.b32.xlu1 %v5008_v11, %s4793_s7 }
 0x8b9   :  { %1380 = vrot.lane.b32.xlu0 %v5000_v6, %s4791_s29 }
 0x8bc   :  { %1573 = vrot.lane.b32.xlu1 %v5002_v7, %s4793_s7 }
 0x8d8   :  { %1370 = vadd.xlane.f32.xlu0 %v1369_v53 }
 0x8ee   :  { %1575 = vrot.lane.b32.xlu0 %v5008_v11, %s4792_s0 }
 0x8f2   :  { %1571 = vrot.lane.b32.xlu0 %v5000_v6, %s4793_s7 }
 0x92c   :  { %v1365_v57 = vpop.xlane.xlu0 %1364 }
 0x92d   :  { %4566 = vrcp.f32 %v1365_v57  ;;  %v1979_v57 = vrot.slane %v5010_v12, 1 }
 0x930   :  { %v1368_v58 = vpop.xlane.xlu1 %1367  ;;  %v1381_v59 = vpop.permute.xlu0 %1380 }
 0x931   :  { %4568 = vrcp.f32 %v1368_v58  ;;  %4209 = vmatpush3.msra.mxu0 %v1381_v59  ;;  %v1978_v58 = vrot.slane %v5002_v7, 1 }
 0x932   :  { %4210 = vmatprep.subr.mxu0 %v4781_v45 }
 0x933   :  { %4211 = vmatpush3.msra.mxu0 %v1379_v54  ;;  %v5264_v59 = vsel %vm1977_vm8, %v1978_v58, %v1979_v57 }
 0x934   :  { %4232 = vmatprep.subr.mxu0 %v4781_v45  ;;  %v1570_v4 = vpop.permute.xlu1 %1569 }
 0x938   :  { %v1574_v8 = vpop.permute.xlu1 %1573 }
 0x93a   :  { %v4567_v60 = vpop.eup %4566 }
 0x93b   :  { %v1373_v61 = vmul.f32 %v4567_v60, %v4561_v42  ;;  %v5269_v60 = vsel %vm1977_vm8, %v1979_v57, %v5243_v34 }
 0x93d   :  { %4213 = vmatmul.mubr.msk.f32.vlgmr.msra.gmra.mxu0 %vm686_vm5, %v1373_v61 }
 0x93e   :  { %v4569_v62 = vpop.eup %4568  ;;  %4233 = vmatpush3.xpose.msk.msra.mxu0 %vm590_vm4, %v1580_v55  ;;  %4215 = vmatprep.mubr.msk.f32.mxu0 %vm4783_vm3, %v4781_v45 }
 0x93f   :  { %4234 = vmatprep.subr.mxu0 %v4781_v45  ;;  %v1375_v63 = vmul.f32 %v4569_v62, %v4563_v44 }
 0x941   :  { %4216 = vmatmul.mubr.msk.f32.gmra.mxu0 %vm686_vm5, %v1375_v63 }
 0x942   :  { %4235 = vmatpush3.xpose.msk.msra.mxu0 %vm590_vm4, %v1578_v56  ;;  %4218 = vmatprep.mubr.msk.f32.mxu0 %vm4783_vm3, %v4781_v45 }
 0x943   :  { %4236 = vmatprep.subr.mxu0 %v4781_v45 }
 0x961   :  { %v1371_v0 = vpop.xlane.xlu0 %1370 }
 0x962   :  { %4570 = vrcp.f32 %v1371_v0 }
 0x965   :  { %v1576_v1 = vpop.permute.xlu0 %1575 }
 0x966   :  { %4237 = vmatpush3.xpose.msk.msra.mxu0 %vm590_vm4, %v1576_v1 }
 0x967   :  { %4262 = vmatprep.subr.mxu0 %v4781_v45 }
 0x969   :  { %v1572_v5 = vpop.permute.xlu0 %1571 }
 0x96f   :  { %v4571_v2 = vpop.eup %4570 }
 0x970   :  { %v1377_v3 = vmul.f32 %v4571_v2, %v4565_v52 }
 0x972   :  { %4219 = vmatmul.mubr.msk.f32.gmra.mxu0 %vm686_vm5, %v1377_v3 }
 0x973   :  { %4238 = vmatprep.mubr.msk.f32.mxu0 %vm4783_vm3, %v4781_v45 }
 0x976   :  { %4239 = vmatmul.mubr.msk.f32.vlgmr.msra.gmra.mxu0 %vm590_vm4, %v1570_v4 }
 0x977   :  { %4241 = vmatprep.mubr.msk.f32.mxu0 %vm4783_vm3, %v4781_v45 }
 0x97a   :  { %4242 = vmatmul.mubr.msk.f32.gmra.mxu0 %vm590_vm4, %v1572_v5 }
 0x97b   :  { %4244 = vmatprep.mubr.msk.f32.mxu0 %vm4783_vm3, %v4781_v45 }
 0x97e   :  { %4245 = vmatmul.mubr.msk.f32.gmra.mxu0 %vm590_vm4, %v1574_v8 }
 0x97f   :  { %4264 = vmatprep.mubr.msk.f32.mxu0 %vm4783_vm3, %v4781_v45 }
 0x9fd   :  { %v1463_v10 = vpop.f32.mrf.mxu0 }
 0x9fe   :  { %4224 = vmatmul.mubr.msk.f32.vlgmr.msra.gmra.mxu1 %vm590_vm4, %v1463_v10 }
 0x9ff   :  { %v4214_v13 = vpop.f32.mrf.mxu0  ;;  %4226 = vmatprep.mubr.msk.f32.mxu1 %vm4783_vm3, %v4781_v45 }
 0xa01   :  { %v1468_v16 = vpop.f32.mrf.mxu0 }
 0xa02   :  { %4227 = vmatmul.mubr.msk.f32.gmra.mxu1 %vm590_vm4, %v1468_v16 }
 0xa03   :  { %v4217_v17 = vpop.f32.mrf.mxu0  ;;  %4229 = vmatprep.mubr.msk.f32.mxu1 %vm4783_vm3, %v4781_v45 }
 0xa32   :  { %v1473_v19 = vpop.f32.mrf.mxu0 }
 0xa33   :  { %4230 = vmatmul.mubr.msk.f32.gmra.mxu1 %vm590_vm4, %v1473_v19 }
 0xa34   :  { %v4220_v20 = vpop.f32.mrf.mxu0  ;;  %4253 = vmatprep.mubr.msk.f32.mxu1 %vm4783_vm3, %v4781_v45 }
 0xa36   :  { %v1659_v22 = vpop.f32.mrf.mxu0 }
 0xa37   :  { %v1673_v23 = vmul.f32 0.35355338, %v1659_v22 }
 0xa38   :  { %v4240_v24 = vpop.f32.mrf.mxu0 }
 0xa39   :  { %v1676_v25 = vsel %vm686_vm5, %v1673_v23, -inf  ;;  %v5332_v24 = vld [vmem:[#allocation9 + $0x18] sm:$0xff] }
 0xa3a   :  { %1677 = vmax.xlane.f32.xlu0 %v1676_v25  ;;  %v1664_v26 = vpop.f32.mrf.mxu0  ;;  %4263 = vmatpush3.msra.mxu0 %v5332_v24 }
 0xa3b   :  { %v1674_v27 = vmul.f32 0.35355338, %v1664_v26  ;;  %4288 = vmatprep.subr.mxu0 %v4781_v45 }
 0xa3c   :  { %v4243_v28 = vpop.f32.mrf.mxu0 }
 0xa3d   :  { %v1679_v29 = vsel %vm686_vm5, %v1674_v27, -inf }
 0xa3e   :  { %1680 = vmax.xlane.f32.xlu1 %v1679_v29  ;;  %v1669_v30 = vpop.f32.mrf.mxu0 }
 0xa3f   :  { %v1675_v31 = vmul.f32 0.35355338, %v1669_v30 }
 0xa40   :  { %v4246_v32 = vpop.f32.mrf.mxu0 }
 0xa41   :  { %v1682_v33 = vsel %vm693_vm6, %v1675_v31, -inf }
 0xa42   :  { %1683 = vmax.xlane.f32.xlu0 %v1682_v33 }
 0xa4f   :  { %1711 = vrot.lane.b32.xlu1 %v5000_v6, %s4794_s30 }
 0xa53   :  { %1709 = vrot.lane.b32.xlu1 %v5008_v11, %s4794_s30 }
 0xa57   :  { %1987 = vrot.lane.b32.xlu1 %v5243_v34, %s4784_s26 }
 0xa58   :  { %1713 = vrot.lane.b32.xlu0 %v5002_v7, %s4794_s30 }
 0xabe   :  { %v1552_v35 = vpop.f32.mrf.mxu1 }
 0xabf   :  { %v5250_v36 = vadd.f32 %v1552_v35, %v5164_v14 }
 0xac0   :  { %v4225_v37 = vpop.f32.mrf.mxu1 }
 0xac2   :  { %v1557_v38 = vpop.f32.mrf.mxu1 }
 0xac3   :  { %v5253_v6 = vadd.f32 %v1557_v38, %v5166_v18  ;;  %v1678_v39 = vpop.xlane.xlu0 %1677 }
 0xac4   :  { %v1685_v11 = vsub.f32 %v1673_v23, %v1678_v39  ;;  %v4228_v40 = vpop.f32.mrf.mxu1 }
 0xac6   :  { %v1688_v15 = vmul.f32 1.442695, %v1685_v11 }
 0xac7   :  { %v1681_v41 = vpop.xlane.xlu1 %1680 }
 0xac8   :  { %4572 = vpow2.f32 %v1688_v15  ;;  %v1686_v42 = vsub.f32 %v1674_v27, %v1681_v41 }
 0xaca   :  { %v1690_v43 = vmul.f32 1.442695, %v1686_v42 }
 0xacb   :  { %v1684_v44 = vpop.xlane.xlu0 %1683  ;;  %v1712_v49 = vpop.permute.xlu1 %1711 }
 0xacc   :  { %4574 = vpow2.f32 %v1690_v43  ;;  %v1687_v46 = vsub.f32 %v1675_v31, %v1684_v44 }
 0xace   :  { %v1692_v50 = vmul.f32 1.442695, %v1687_v46 }
 0xacf   :  { %v1714_v14 = vpop.permute.xlu0 %1713  ;;  %v1710_v18 = vpop.permute.xlu1 %1709 }
 0xad0   :  { %4576 = vpow2.f32 %v1692_v50  ;;  %4248 = vmatpush3.msk.msra.mxu1 %vm738_vm7, %v1714_v14 }
 0xad1   :  { %4249 = vmatprep.subr.mxu1 %v4781_v45 }
 0xad2   :  { %4250 = vmatpush3.msra.mxu1 %v1712_v49 }
 0xad3   :  { %4251 = vmatprep.subr.mxu1 %v4781_v45 }
 0xad4   :  { %4252 = vmatpush3.msra.mxu1 %v1710_v18 }
 0xad5   :  { %v4573_v51 = vpop.eup %4572  ;;  %4273 = vmatprep.subr.mxu1 %v4781_v45 }
 0xad6   :  { %v1694_v52 = vsel %vm686_vm5, %v4573_v51, 0.0 }
 0xad7   :  { %1695 = vadd.xlane.f32.xlu0 %v1694_v52 }
 0xad9   :  { %v4575_v53 = vpop.eup %4574 }
 0xada   :  { %v1697_v54 = vsel %vm686_vm5, %v4575_v53, 0.0 }
 0xadb   :  { %1698 = vadd.xlane.f32.xlu0 %v1697_v54 }
 0xadd   :  { %v4577_v55 = vpop.eup %4576 }
 0xade   :  { %v1700_v56 = vsel %vm693_vm6, %v4577_v55, 0.0 }
 0xadf   :  { %1701 = vadd.xlane.f32.xlu1 %v1700_v56 }
 0xaf0   :  { %1983 = vrot.lane.b32.xlu1 %v5264_v59, %s4784_s26 }
 0xaf1   :  { %1985 = vrot.lane.b32.xlu0 %v5269_v60, %s4784_s26 }
 0xaf3   :  { %v1562_v61 = vpop.f32.mrf.mxu1 }
 0xaf4   :  { %v5274_v62 = vadd.f32 %v1562_v61, %v5168_v21  ;;  %2224 = vrot.lane.b32.xlu1 %v5269_v60, %s4785_s8  ;;  %v1988_v21 = vpop.permute.xlu1 %1987 }
 0xaf5   :  { %2226 = vrot.lane.b32.xlu0 %v5243_v34, %s4785_s8  ;;  %v4231_v7 = vpop.f32.mrf.mxu1 }
 0xaf8   :  { %2216 = vrot.lane.b32.xlu1 %v5264_v59, %s4786_s27 }
 0xaf9   :  { %2222 = vrot.lane.b32.xlu0 %v5264_v59, %s4785_s8 }
 0xafc   :  { %2220 = vrot.lane.b32.xlu1 %v5243_v34, %s4786_s27 }
 0xafd   :  { %2218 = vrot.lane.b32.xlu0 %v5269_v60, %s4786_s27 }
 0xb60   :  { %v1696_v12 = vpop.xlane.xlu0 %1695 }
 0xb61   :  { %4578 = vrcp.f32 %v1696_v12 }
 0xb64   :  { %v1699_v63 = vpop.xlane.xlu0 %1698 }
 0xb65   :  { %4580 = vrcp.f32 %v1699_v63 }
 0xb68   :  { %v1702_v0 = vpop.xlane.xlu1 %1701  ;;  %v1986_v5 = vpop.permute.xlu0 %1985 }
 0xb69   :  { %4582 = vrcp.f32 %v1702_v0 }
 0xb6c   :  { %v1984_v13 = vpop.permute.xlu1 %1983  ;;  %v2227_v16 = vpop.permute.xlu0 %2226 }
 0xb6e   :  { %v4579_v1 = vpop.eup %4578 }
 0xb6f   :  { %v1704_v2 = vmul.f32 %v4579_v1, %v4573_v51 }
 0xb70   :  { %v2225_v17 = vpop.permute.xlu1 %2224  ;;  %v2223_v19 = vpop.permute.xlu0 %2222 }
 0xb71   :  { %4254 = vmatmul.mubr.msk.f32.vlgmr.msra.gmra.mxu1 %vm686_vm5, %v1704_v2 }
 0xb72   :  { %v4581_v3 = vpop.eup %4580  ;;  %4274 = vmatpush3.xpose.msk.msra.mxu1 %vm590_vm4, %v1988_v21  ;;  %4256 = vmatprep.mubr.msk.f32.mxu1 %vm4783_vm3, %v4781_v45 }
 0xb73   :  { %4275 = vmatprep.subr.mxu1 %v4781_v45  ;;  %v1706_v4 = vmul.f32 %v4581_v3, %v4575_v53 }
 0xb74   :  { %v2217_v20 = vpop.permute.xlu1 %2216  ;;  %v2219_v22 = vpop.permute.xlu0 %2218 }
 0xb75   :  { %4257 = vmatmul.mubr.msk.f32.gmra.mxu1 %vm686_vm5, %v1706_v4 }
 0xb76   :  { %v4583_v8 = vpop.eup %4582  ;;  %4276 = vmatpush3.xpose.msk.msra.mxu1 %vm590_vm4, %v1986_v5  ;;  %4259 = vmatprep.mubr.msk.f32.mxu1 %vm4783_vm3, %v4781_v45 }
 0xb77   :  { %4277 = vmatprep.subr.mxu1 %v4781_v45  ;;  %v1708_v10 = vmul.f32 %v4583_v8, %v4577_v55 }
 0xb78   :  { %v2221_v23 = vpop.permute.xlu1 %2220 }
 0xb79   :  { %4260 = vmatmul.mubr.msk.f32.gmra.mxu1 %vm686_vm5, %v1708_v10 }
 0xb7a   :  { %4278 = vmatpush3.xpose.msk.msra.mxu1 %vm590_vm4, %v1984_v13  ;;  %4279 = vmatprep.mubr.msk.f32.mxu1 %vm4783_vm3, %v4781_v45 }
 0xb7b   :  { %4303 = vmatprep.subr.mxu1 %v4781_v45 }
 0xb7d   :  { %4280 = vmatmul.mubr.msk.f32.vlgmr.msra.gmra.mxu1 %vm590_vm4, %v5264_v59 }
 0xb7e   :  { %4304 = vmatpush3.xpose.msk.msra.mxu1 %vm590_vm4, %v2227_v16  ;;  %4282 = vmatprep.mubr.msk.f32.mxu1 %vm4783_vm3, %v4781_v45 }
 0xb7f   :  { %4305 = vmatprep.subr.mxu1 %v4781_v45 }
 0xb81   :  { %4283 = vmatmul.mubr.msk.f32.gmra.mxu1 %vm590_vm4, %v5269_v60 }
 0xb82   :  { %4306 = vmatpush3.xpose.msk.msra.mxu1 %vm590_vm4, %v2225_v17  ;;  %4285 = vmatprep.mubr.msk.f32.mxu1 %vm4783_vm3, %v4781_v45 }
 0xb83   :  { %4307 = vmatprep.subr.mxu1 %v4781_v45 }
 0xb85   :  { %4286 = vmatmul.mubr.msk.f32.gmra.mxu1 %vm590_vm4, %v5243_v34 }
 0xb86   :  { %4308 = vmatpush3.xpose.msk.msra.mxu1 %vm590_vm4, %v2223_v19  ;;  %4309 = vmatprep.mubr.msk.f32.mxu1 %vm4783_vm3, %v4781_v45 }
 0xb87   :  { %4333 = vmatprep.subr.mxu1 %v4781_v45 }
 0xb89   :  { %4310 = vmatmul.mubr.msk.f32.vlgmr.msra.gmra.mxu1 %vm590_vm4, %v2217_v20 }
 0xb8a   :  { %4312 = vmatprep.mubr.msk.f32.mxu1 %vm4783_vm3, %v4781_v45  ;;  %4334 = vmatpush3.msra.mxu1 %v5126_v48 }
 0xb8b   :  { %4355 = vmatprep.subr.mxu1 %v4781_v45 }
 0xb8d   :  { %4313 = vmatmul.mubr.msk.f32.gmra.mxu1 %vm590_vm4, %v2219_v22 }
 0xb8e   :  { %4315 = vmatprep.mubr.msk.f32.mxu1 %vm4783_vm3, %v4781_v45 }
 0xb91   :  { %4316 = vmatmul.mubr.msk.f32.gmra.mxu1 %vm590_vm4, %v2221_v23 }
 0xb92   :  { %4335 = vmatprep.mubr.msk.f32.mxu1 %vm4783_vm3, %v4781_v45 }
 0xc31   :  { %v1794_v48 = vpop.f32.mrf.mxu1 }
 0xc32   :  { %4265 = vmatmul.mubr.msk.f32.vlgmr.msra.gmra.mxu0 %vm590_vm4, %v1794_v48 }
 0xc33   :  { %v4255_v25 = vpop.f32.mrf.mxu1  ;;  %4267 = vmatprep.mubr.msk.f32.mxu0 %vm4783_vm3, %v4781_v45 }
 0xc35   :  { %v1799_v26 = vpop.f32.mrf.mxu1 }
 0xc36   :  { %4268 = vmatmul.mubr.msk.f32.gmra.mxu0 %vm590_vm4, %v1799_v26 }
 0xc37   :  { %v4258_v27 = vpop.f32.mrf.mxu1  ;;  %4270 = vmatprep.mubr.msk.f32.mxu0 %vm4783_vm3, %v4781_v45 }
 0xc39   :  { %v1804_v28 = vpop.f32.mrf.mxu1 }
 0xc3a   :  { %4271 = vmatmul.mubr.msk.f32.gmra.mxu0 %vm590_vm4, %v1804_v28 }
 0xc3b   :  { %v4261_v29 = vpop.f32.mrf.mxu1  ;;  %4294 = vmatprep.mubr.msk.f32.mxu0 %vm4783_vm3, %v4781_v45 }
 0xc3d   :  { %v2067_v30 = vpop.f32.mrf.mxu1 }
 0xc3e   :  { %v2081_v31 = vmul.f32 0.35355338, %v2067_v30 }
 0xc3f   :  { %v4281_v32 = vpop.f32.mrf.mxu1 }
 0xc40   :  { %v2084_v33 = vsel %vm686_vm5, %v2081_v31, -inf }
 0xc41   :  { %2085 = vmax.xlane.f32.xlu0 %v2084_v33  ;;  %v2072_v35 = vpop.f32.mrf.mxu1 }
 0xc42   :  { %v2082_v37 = vmul.f32 0.35355338, %v2072_v35 }
 0xc43   :  { %v4284_v38 = vpop.f32.mrf.mxu1 }
 0xc44   :  { %v2087_v39 = vsel %vm686_vm5, %v2082_v37, -inf }
 0xc45   :  { %2088 = vmax.xlane.f32.xlu1 %v2087_v39  ;;  %v2077_v11 = vpop.f32.mrf.mxu1 }
 0xc46   :  { %v2083_v40 = vmul.f32 0.35355338, %v2077_v11 }
 0xc47   :  { %v4287_v15 = vpop.f32.mrf.mxu1 }
 0xc48   :  { %v2090_v41 = vsel %vm693_vm6, %v2083_v40, -inf }
 0xc49   :  { %2091 = vmax.xlane.f32.xlu0 %v2090_v41  ;;  %v2306_v42 = vpop.f32.mrf.mxu1 }
 0xc4a   :  { %v2320_v43 = vmul.f32 0.35355338, %v2306_v42 }
 0xc4b   :  { %v4311_v44 = vpop.f32.mrf.mxu1 }
 0xc4c   :  { %v2323_v46 = vsel %vm686_vm5, %v2320_v43, -inf }
 0xc4d   :  { %2324 = vmax.xlane.f32.xlu0 %v2323_v46  ;;  %v2311_v49 = vpop.f32.mrf.mxu1 }
 0xc4e   :  { %v2321_v50 = vmul.f32 0.35355338, %v2311_v49 }
 0xc4f   :  { %v4314_v14 = vpop.f32.mrf.mxu1 }
 0xc50   :  { %v2326_v18 = vsel %vm686_vm5, %v2321_v50, -inf }
 0xc51   :  { %2327 = vmax.xlane.f32.xlu0 %v2326_v18  ;;  %v2316_v51 = vpop.f32.mrf.mxu1 }
 0xc52   :  { %v2322_v52 = vmul.f32 0.35355338, %v2316_v51 }
 0xc53   :  { %v4317_v53 = vpop.f32.mrf.mxu1 }
 0xc54   :  { %v2329_v54 = vsel %vm693_vm6, %v2322_v52, -inf }
 0xc55   :  { %2330 = vmax.xlane.f32.xlu1 %v2329_v54 }
 0xc66   :  { %2119 = vrot.lane.b32.xlu1 %v5269_v60, %s4787_s28 }
 0xc67   :  { %2121 = vrot.lane.b32.xlu0 %v5243_v34, %s4787_s28 }
 0xc6a   :  { %2117 = vrot.lane.b32.xlu1 %v5264_v59, %s4787_s28 }
 0xc6e   :  { %2360 = vrot.lane.b32.xlu1 %v5243_v34, %s4788_s15 }
 0xcca   :  { %v2086_v55 = vpop.xlane.xlu0 %2085 }
 0xccb   :  { %v2093_v56 = vsub.f32 %v2081_v31, %v2086_v55 }
 0xccd   :  { %v2096_v57 = vmul.f32 1.442695, %v2093_v56 }
 0xcce   :  { %v2089_v58 = vpop.xlane.xlu1 %2088 }
 0xccf   :  { %4584 = vpow2.f32 %v2096_v57  ;;  %v2094_v61 = vsub.f32 %v2082_v37, %v2089_v58 }
 0xcd1   :  { %v2098_v7 = vmul.f32 1.442695, %v2094_v61 }
 0xcd2   :  { %v2092_v12 = vpop.xlane.xlu0 %2091 }
 0xcd3   :  { %4586 = vpow2.f32 %v2098_v7  ;;  %v2095_v21 = vsub.f32 %v2083_v40, %v2092_v12 }
 0xcd5   :  { %v2100_v63 = vmul.f32 1.442695, %v2095_v21 }
 0xcd6   :  { %v2325_v0 = vpop.xlane.xlu0 %2324 }
 0xcd7   :  { %4588 = vpow2.f32 %v2100_v63  ;;  %v2332_v1 = vsub.f32 %v2320_v43, %v2325_v0 }
 0xcd9   :  { %v2335_v2 = vmul.f32 1.442695, %v2332_v1 }
 0xcda   :  { %v2328_v3 = vpop.xlane.xlu0 %2327 }
 0xcdb   :  { %4590 = vpow2.f32 %v2335_v2  ;;  %v2333_v4 = vsub.f32 %v2321_v50, %v2328_v3 }
 0xcdc   :  { %v4585_v5 = vpop.eup %4584 }
 0xcdd   :  { %v2337_v8 = vmul.f32 1.442695, %v2333_v4  ;;  %v2102_v10 = vsel %vm686_vm5, %v4585_v5, 0.0 }
 0xcde   :  { %2103 = vadd.xlane.f32.xlu0 %v2102_v10  ;;  %v2122_v13 = vpop.permute.xlu0 %2121  ;;  %v2331_v16 = vpop.xlane.xlu1 %2330 }
 0xcdf   :  { %4592 = vpow2.f32 %v2337_v8  ;;  %v2334_v17 = vsub.f32 %v2322_v52, %v2331_v16  ;;  %4289 = vmatpush3.msk.msra.mxu0 %vm738_vm7, %v2122_v13 }
 0xce0   :  { %v4587_v19 = vpop.eup %4586  ;;  %4290 = vmatprep.subr.mxu0 %v4781_v45 }
 0xce1   :  { %v2339_v20 = vmul.f32 1.442695, %v2334_v17  ;;  %v2105_v22 = vsel %vm686_vm5, %v4587_v19, 0.0 }
 0xce2   :  { %2106 = vadd.xlane.f32.xlu1 %v2105_v22  ;;  %v2120_v23 = vpop.permute.xlu1 %2119 }
 0xce3   :  { %4594 = vpow2.f32 %v2339_v20  ;;  %4291 = vmatpush3.msra.mxu0 %v2120_v23 }
 0xce4   :  { %v4589_v48 = vpop.eup %4588  ;;  %4292 = vmatprep.subr.mxu0 %v4781_v45 }
 0xce5   :  { %v2108_v25 = vsel %vm693_vm6, %v4589_v48, 0.0 }
 0xce6   :  { %2109 = vadd.xlane.f32.xlu0 %v2108_v25  ;;  %v2118_v26 = vpop.permute.xlu1 %2117 }
 0xce7   :  { %4293 = vmatpush3.msra.mxu0 %v2118_v26 }
 0xce8   :  { %v4591_v27 = vpop.eup %4590  ;;  %4318 = vmatprep.subr.mxu0 %v4781_v45 }
 0xce9   :  { %v2341_v28 = vsel %vm686_vm5, %v4591_v27, 0.0 }
 0xcea   :  { %2342 = vadd.xlane.f32.xlu1 %v2341_v28 }
 0xcec   :  { %v4593_v29 = vpop.eup %4592 }
 0xced   :  { %v2344_v30 = vsel %vm686_vm5, %v4593_v29, 0.0 }
 0xcee   :  { %2345 = vadd.xlane.f32.xlu0 %v2344_v30 }
 0xcf0   :  { %v5368_v31 = vpop.eup %4594 }
 0xcf1   :  { %v2347_v32 = vsel %vm693_vm6, %v5368_v31, 0.0 }
 0xcf2   :  { %v1883_v33 = vpop.f32.mrf.mxu0  ;;  %2348 = vadd.xlane.f32.xlu1 %v2347_v32 }
 0xcf3   :  { %v5373_v35 = vadd.f32 %v1883_v33, %v5250_v36  ;;  %v2361_v36 = vpop.permute.xlu1 %2360 }
 0xcf4   :  { %v4266_v37 = vpop.f32.mrf.mxu0 }
 0xcf6   :  { %v1888_v38 = vpop.f32.mrf.mxu0 }
 0xcf7   :  { %v5376_v39 = vadd.f32 %v1888_v38, %v5253_v6 }
 0xcf8   :  { %v4269_v11 = vpop.f32.mrf.mxu0 }
 0xcfa   :  { %v1893_v40 = vpop.f32.mrf.mxu0 }
 0xcfb   :  { %v5379_v15 = vadd.f32 %v1893_v40, %v5274_v62 }
 0xcfc   :  { %v4272_v41 = vpop.f32.mrf.mxu0 }
 0xd03   :  { %2356 = vrot.lane.b32.xlu1 %v5264_v59, %s4788_s15 }
 0xd04   :  { %2358 = vrot.lane.b32.xlu0 %v5269_v60, %s4788_s15 }
 0xd07   :  { %2641 = vrot.lane.b32.xlu1 %v5269_v60, %s4789_s22 }
 0xd08   :  { %2643 = vrot.lane.b32.xlu0 %v5243_v34, %s4789_s22 }
 0xd0b   :  { %2633 = vrot.lane.b32.xlu1 %v5264_v59, %s4790_s2 }
 0xd0c   :  { %2639 = vrot.lane.b32.xlu0 %v5264_v59, %s4789_s22 }
 0xd0f   :  { %2637 = vrot.lane.b32.xlu1 %v5243_v34, %s4790_s2 }
 0xd10   :  { %2635 = vrot.lane.b32.xlu0 %v5269_v60, %s4790_s2 }
 0xd67   :  { %v2104_v6 = vpop.xlane.xlu0 %2103 }
 0xd68   :  { %4596 = vrcp.f32 %v2104_v6 }
 0xd6b   :  { %v2107_v62 = vpop.xlane.xlu1 %2106 }
 0xd6c   :  { %4598 = vrcp.f32 %v2107_v62 }
 0xd6f   :  { %v2110_v42 = vpop.xlane.xlu0 %2109 }
 0xd70   :  { %4600 = vrcp.f32 %v2110_v42 }
 0xd73   :  { %v2343_v43 = vpop.xlane.xlu1 %2342 }
 0xd74   :  { %4602 = vrcp.f32 %v2343_v43 }
 0xd75   :  { %v4597_v44 = vpop.eup %4596 }
 0xd76   :  { %v2112_v46 = vmul.f32 %v4597_v44, %v4585_v5 }
 0xd77   :  { %v2346_v49 = vpop.xlane.xlu0 %2345 }
 0xd78   :  { %4604 = vrcp.f32 %v2346_v49  ;;  %4295 = vmatmul.mubr.msk.f32.vlgmr.msra.gmra.mxu0 %vm686_vm5, %v2112_v46 }
 0xd79   :  { %v4599_v50 = vpop.eup %4598  ;;  %4319 = vmatpush3.msk.msra.mxu0 %vm738_vm7, %v2361_v36  ;;  %4297 = vmatprep.mubr.msk.f32.mxu0 %vm4783_vm3, %v4781_v45 }
 0xd7a   :  { %4320 = vmatprep.subr.mxu0 %v4781_v45  ;;  %v2114_v14 = vmul.f32 %v4599_v50, %v4587_v19 }
 0xd7b   :  { %v2359_v18 = vpop.permute.xlu0 %2358  ;;  %v2349_v51 = vpop.xlane.xlu1 %2348 }
 0xd7c   :  { %4606 = vrcp.f32 %v2349_v51  ;;  %4298 = vmatmul.mubr.msk.f32.gmra.mxu0 %vm686_vm5, %v2114_v14 }
 0xd7d   :  { %v4601_v52 = vpop.eup %4600  ;;  %4321 = vmatpush3.msra.mxu0 %v2359_v18  ;;  %4300 = vmatprep.mubr.msk.f32.mxu0 %vm4783_vm3, %v4781_v45 }
 0xd7e   :  { %4322 = vmatprep.subr.mxu0 %v4781_v45  ;;  %v2116_v53 = vmul.f32 %v4601_v52, %v4589_v48 }
 0xd7f   :  { %v2357_v54 = vpop.permute.xlu1 %2356  ;;  %v2644_v3 = vpop.permute.xlu0 %2643 }
 0xd80   :  { %4301 = vmatmul.mubr.msk.f32.gmra.mxu0 %vm686_vm5, %v2116_v53 }
 0xd81   :  { %v4603_v55 = vpop.eup %4602  ;;  %4323 = vmatpush3.msra.mxu0 %v2357_v54  ;;  %4324 = vmatprep.mubr.msk.f32.mxu0 %vm4783_vm3, %v4781_v45 }
 0xd82   :  { %v2351_v56 = vmul.f32 %v4603_v55, %v4591_v27  ;;  %4344 = vmatprep.subr.mxu0 %v4781_v45 }
 0xd83   :  { %v2642_v8 = vpop.permute.xlu1 %2641  ;;  %v2640_v16 = vpop.permute.xlu0 %2639 }
 0xd84   :  { %4325 = vmatmul.mubr.msk.f32.vlgmr.msra.gmra.mxu0 %vm686_vm5, %v2351_v56 }
 0xd85   :  { %v4605_v57 = vpop.eup %4604  ;;  %4327 = vmatprep.mubr.msk.f32.mxu0 %vm4783_vm3, %v4781_v45  ;;  %4345 = vmatpush3.msra.mxu0 %v5123_v47 }
 0xd86   :  { %v2353_v58 = vmul.f32 %v4605_v57, %v4593_v29  ;;  %4370 = vmatprep.subr.mxu0 %v4781_v45 }
 0xd87   :  { %v2634_v19 = vpop.permute.xlu1 %2633  ;;  %v2636_v20 = vpop.permute.xlu0 %2635 }
 0xd88   :  { %4328 = vmatmul.mubr.msk.f32.gmra.mxu0 %vm686_vm5, %v2353_v58 }
 0xd89   :  { %v4607_v61 = vpop.eup %4606  ;;  %4330 = vmatprep.mubr.msk.f32.mxu0 %vm4783_vm3, %v4781_v45 }
 0xd8a   :  { %v2355_v7 = vmul.f32 %v4607_v61, %v5368_v31 }
 0xd8b   :  { %v2638_v22 = vpop.permute.xlu1 %2637 }
 0xd8c   :  { %4331 = vmatmul.mubr.msk.f32.gmra.mxu0 %vm686_vm5, %v2355_v7 }
 0xd8d   :  { %4346 = vmatprep.mubr.msk.f32.mxu0 %vm4783_vm3, %v4781_v45 }
 0xe38   :  { %v2202_v12 = vpop.f32.mrf.mxu0 }
 0xe39   :  { %4347 = vmatmul.mubr.msk.f32.vlgmr.msra.gmra.mxu0 %vm590_vm4, %v2202_v12 }
 0xe3a   :  { %v4296_v47 = vpop.f32.mrf.mxu0  ;;  %4349 = vmatprep.mubr.msk.f32.mxu0 %vm4783_vm3, %v4781_v45 }
 0xe3c   :  { %v2207_v21 = vpop.f32.mrf.mxu0 }
 0xe3d   :  { %4350 = vmatmul.mubr.msk.f32.gmra.mxu0 %vm590_vm4, %v2207_v21 }
 0xe3e   :  { %v4299_v63 = vpop.f32.mrf.mxu0  ;;  %4352 = vmatprep.mubr.msk.f32.mxu0 %vm4783_vm3, %v4781_v45 }
 0xe40   :  { %v2212_v0 = vpop.f32.mrf.mxu0 }
 0xe41   :  { %4353 = vmatmul.mubr.msk.f32.gmra.mxu0 %vm590_vm4, %v2212_v0 }
 0xe42   :  { %v4302_v1 = vpop.f32.mrf.mxu0  ;;  %4376 = vmatprep.mubr.msk.f32.mxu0 %vm4783_vm3, %v4781_v45 }
 0xe44   :  { %v2441_v2 = vpop.f32.mrf.mxu0 }
 0xe45   :  { %4336 = vmatmul.mubr.msk.f32.vlgmr.msra.gmra.mxu1 %vm590_vm4, %v2441_v2 }
 0xe46   :  { %4356 = vmatpush3.xpose.msk.msra.mxu1 %vm590_vm4, %v2644_v3  ;;  %v4326_v4 = vpop.f32.mrf.mxu0  ;;  %4338 = vmatprep.mubr.msk.f32.mxu1 %vm4783_vm3, %v4781_v45 }
 0xe47   :  { %4357 = vmatprep.subr.mxu1 %v4781_v45 }
 0xe48   :  { %v2446_v5 = vpop.f32.mrf.mxu0 }
 0xe49   :  { %4339 = vmatmul.mubr.msk.f32.gmra.mxu1 %vm590_vm4, %v2446_v5 }
 0xe4a   :  { %4358 = vmatpush3.xpose.msk.msra.mxu1 %vm590_vm4, %v2642_v8  ;;  %v4329_v10 = vpop.f32.mrf.mxu0  ;;  %4341 = vmatprep.mubr.msk.f32.mxu1 %vm4783_vm3, %v4781_v45 }
 0xe4b   :  { %4359 = vmatprep.subr.mxu1 %v4781_v45 }
 0xe4c   :  { %v2451_v13 = vpop.f32.mrf.mxu0 }
 0xe4d   :  { %4342 = vmatmul.mubr.msk.f32.gmra.mxu1 %vm590_vm4, %v2451_v13 }
 0xe4e   :  { %4360 = vmatpush3.xpose.msk.msra.mxu1 %vm590_vm4, %v2640_v16  ;;  %v4332_v17 = vpop.f32.mrf.mxu0  ;;  %4361 = vmatprep.mubr.msk.f32.mxu1 %vm4783_vm3, %v4781_v45 }
 0xe4f   :  { %4385 = vmatprep.subr.mxu1 %v4781_v45 }
 0xe51   :  { %4362 = vmatmul.mubr.msk.f32.vlgmr.msra.gmra.mxu1 %vm590_vm4, %v2634_v19 }
 0xe52   :  { %4364 = vmatprep.mubr.msk.f32.mxu1 %vm4783_vm3, %v4781_v45  ;;  %4386 = vmatpush3.msra.mxu1 %v5219_v9 }
 0xe53   :  { %4411 = vmatprep.subr.mxu1 %v4781_v45 }
 0xe55   :  { %4365 = vmatmul.mubr.msk.f32.gmra.mxu1 %vm590_vm4, %v2636_v20 }
 0xe56   :  { %4367 = vmatprep.mubr.msk.f32.mxu1 %vm4783_vm3, %v4781_v45 }
 0xe59   :  { %4368 = vmatmul.mubr.msk.f32.gmra.mxu1 %vm590_vm4, %v2638_v22 }
 0xe5a   :  { %4387 = vmatprep.mubr.msk.f32.mxu1 %vm4783_vm3, %v4781_v45 }
 0xef9   :  { %v2619_v23 = vpop.f32.mrf.mxu0 }
 0xefb   :  { %v4348_v48 = vpop.f32.mrf.mxu0 }
 0xefd   :  { %v2624_v25 = vpop.f32.mrf.mxu0 }
 0xeff   :  { %v4351_v26 = vpop.f32.mrf.mxu0 }
 0xf01   :  { %v2629_v27 = vpop.f32.mrf.mxu0 }
 0xf03   :  { %v4354_v9 = vpop.f32.mrf.mxu0 }
 0xf05   :  { %v2530_v28 = vpop.f32.mrf.mxu1 }
 0xf06   :  { %v5457_v29 = vadd.f32 %v2619_v23, %v2530_v28 }
 0xf07   :  { %v4337_v30 = vpop.f32.mrf.mxu1 }
 0xf09   :  { %v2535_v31 = vpop.f32.mrf.mxu1 }
 0xf0a   :  { %v5459_v32 = vadd.f32 %v2624_v25, %v2535_v31 }
 0xf0b   :  { %v4340_v33 = vpop.f32.mrf.mxu1 }
 0xf0d   :  { %v2540_v37 = vpop.f32.mrf.mxu1 }
 0xf0e   :  { %v5461_v38 = vadd.f32 %v2629_v27, %v2540_v37 }
 0xf0f   :  { %v4343_v11 = vpop.f32.mrf.mxu1 }
 0xf11   :  { %v2723_v40 = vpop.f32.mrf.mxu1 }
 0xf12   :  { %v2737_v41 = vmul.f32 0.35355338, %v2723_v40 }
 0xf13   :  { %v4363_v36 = vpop.f32.mrf.mxu1 }
 0xf14   :  { %v2740_v6 = vsel %vm686_vm5, %v2737_v41, -inf }
 0xf15   :  { %2741 = vmax.xlane.f32.xlu0 %v2740_v6  ;;  %v2728_v62 = vpop.f32.mrf.mxu1 }
 0xf16   :  { %v2738_v42 = vmul.f32 0.35355338, %v2728_v62 }
 0xf17   :  { %v4366_v43 = vpop.f32.mrf.mxu1 }
 0xf18   :  { %v2743_v44 = vsel %vm686_vm5, %v2738_v42, -inf }
 0xf19   :  { %2744 = vmax.xlane.f32.xlu1 %v2743_v44  ;;  %v2733_v46 = vpop.f32.mrf.mxu1 }
 0xf1a   :  { %v2739_v49 = vmul.f32 0.35355338, %v2733_v46 }
 0xf1b   :  { %v4369_v50 = vpop.f32.mrf.mxu1 }
 0xf1c   :  { %v2746_v14 = vsel %vm693_vm6, %v2739_v49, -inf }
 0xf1d   :  { %2747 = vmax.xlane.f32.xlu0 %v2746_v14 }
 0xf2a   :  { %2775 = vrot.lane.b32.xlu1 %v5269_v60, %s4791_s29 }
 0xf2e   :  { %2773 = vrot.lane.b32.xlu1 %v5264_v59, %s4791_s29 }
 0xf32   :  { %2974 = vrot.lane.b32.xlu1 %v5243_v34, %s4792_s0 }
 0xf33   :  { %2777 = vrot.lane.b32.xlu0 %v5243_v34, %s4791_s29 }
 0xf9e   :  { %v2742_v18 = vpop.xlane.xlu0 %2741 }
 0xf9f   :  { %v2749_v51 = vsub.f32 %v2737_v41, %v2742_v18 }
 0xfa1   :  { %v2752_v52 = vmul.f32 1.442695, %v2749_v51 }
 0xfa2   :  { %v2745_v53 = vpop.xlane.xlu1 %2744 }
 0xfa3   :  { %4608 = vpow2.f32 %v2752_v52  ;;  %v2750_v54 = vsub.f32 %v2738_v42, %v2745_v53 }
 0xfa5   :  { %v2754_v55 = vmul.f32 1.442695, %v2750_v54 }
 0xfa6   :  { %v2748_v56 = vpop.xlane.xlu0 %2747  ;;  %v2776_v58 = vpop.permute.xlu1 %2775 }
 0xfa7   :  { %4610 = vpow2.f32 %v2754_v55  ;;  %v2751_v57 = vsub.f32 %v2739_v49, %v2748_v56 }
 0xfa9   :  { %v2756_v61 = vmul.f32 1.442695, %v2751_v57 }
 0xfaa   :  { %v2778_v7 = vpop.permute.xlu0 %2777  ;;  %v2774_v12 = vpop.permute.xlu1 %2773 }
 0xfab   :  { %4612 = vpow2.f32 %v2756_v61  ;;  %4371 = vmatpush3.msk.msra.mxu0 %vm738_vm7, %v2778_v7 }
 0xfac   :  { %4372 = vmatprep.subr.mxu0 %v4781_v45 }
 0xfad   :  { %4373 = vmatpush3.msra.mxu0 %v2776_v58 }
 0xfae   :  { %4374 = vmatprep.subr.mxu0 %v4781_v45  ;;  %v2975_v4 = vpop.permute.xlu1 %2974 }
 0xfaf   :  { %4375 = vmatpush3.msra.mxu0 %v2774_v12 }
 0xfb0   :  { %v4609_v47 = vpop.eup %4608  ;;  %4396 = vmatprep.subr.mxu0 %v4781_v45 }
 0xfb1   :  { %v2758_v21 = vsel %vm686_vm5, %v4609_v47, 0.0 }
 0xfb2   :  { %2759 = vadd.xlane.f32.xlu0 %v2758_v21 }
 0xfb4   :  { %v4611_v63 = vpop.eup %4610 }
 0xfb5   :  { %v2761_v0 = vsel %vm686_vm5, %v4611_v63, 0.0 }
 0xfb6   :  { %2762 = vadd.xlane.f32.xlu0 %v2761_v0  ;;  %v4662_v0 = vld [vmem:[#allocation2] sm:$0xff] }
 0xfb8   :  { %v4613_v1 = vpop.eup %4612 }
 0xfb9   :  { %v2764_v2 = vsel %vm693_vm6, %v4613_v1, 0.0 }
 0xfba   :  { %2765 = vadd.xlane.f32.xlu1 %v2764_v2 }
 0xfcb   :  { %2970 = vrot.lane.b32.xlu1 %v5264_v59, %s4792_s0 }
 0xfcc   :  { %2972 = vrot.lane.b32.xlu0 %v5269_v60, %s4792_s0 }
 0xfd0   :  { %2964 = vrot.lane.b32.xlu0 %v5264_v59, %s4793_s7 }
 0xfd4   :  { %2966 = vrot.lane.b32.xlu0 %v5269_v60, %s4793_s7 }
 0xfd8   :  { %2968 = vrot.lane.b32.xlu0 %v5243_v34, %s4793_s7 }
0x103b   :  { %v2760_v3 = vpop.xlane.xlu0 %2759 }
0x103c   :  { %4614 = vrcp.f32 %v2760_v3  ;;  %v5558_v3 = vld [vmem:[#allocation2 + $0x10] sm:$0xff] }
0x103f   :  { %v2763_v5 = vpop.xlane.xlu0 %2762 }
0x1040   :  { %4616 = vrcp.f32 %v2763_v5 }
0x1043   :  { %v2766_v8 = vpop.xlane.xlu1 %2765  ;;  %v2973_v17 = vpop.permute.xlu0 %2972 }
0x1044   :  { %4618 = vrcp.f32 %v2766_v8 }
0x1047   :  { %v2965_v23 = vpop.permute.xlu0 %2964  ;;  %v2971_v48 = vpop.permute.xlu1 %2970 }
0x1049   :  { %v4615_v10 = vpop.eup %4614 }
0x104a   :  { %v2768_v13 = vmul.f32 %v4615_v10, %v4609_v47 }
0x104b   :  { %v2967_v25 = vpop.permute.xlu0 %2966 }
0x104c   :  { %4377 = vmatmul.mubr.msk.f32.vlgmr.msra.gmra.mxu0 %vm686_vm5, %v2768_v13 }
0x104d   :  { %v4617_v16 = vpop.eup %4616  ;;  %4397 = vmatpush3.xpose.msk.msra.mxu0 %vm590_vm4, %v2975_v4  ;;  %4379 = vmatprep.mubr.msk.f32.mxu0 %vm4783_vm3, %v4781_v45 }
0x104e   :  { %4398 = vmatprep.subr.mxu0 %v4781_v45  ;;  %v2770_v19 = vmul.f32 %v4617_v16, %v4611_v63 }
0x104f   :  { %v2969_v26 = vpop.permute.xlu0 %2968 }
0x1050   :  { %4380 = vmatmul.mubr.msk.f32.gmra.mxu0 %vm686_vm5, %v2770_v19 }
0x1051   :  { %v4619_v20 = vpop.eup %4618  ;;  %4399 = vmatpush3.xpose.msk.msra.mxu0 %vm590_vm4, %v2973_v17  ;;  %4382 = vmatprep.mubr.msk.f32.mxu0 %vm4783_vm3, %v4781_v45 }
0x1052   :  { %4400 = vmatprep.subr.mxu0 %v4781_v45  ;;  %v2772_v22 = vmul.f32 %v4619_v20, %v4613_v1 }
0x1054   :  { %4383 = vmatmul.mubr.msk.f32.gmra.mxu0 %vm686_vm5, %v2772_v22 }
0x1055   :  { %4401 = vmatpush3.xpose.msk.msra.mxu0 %vm590_vm4, %v2971_v48  ;;  %4402 = vmatprep.mubr.msk.f32.mxu0 %vm4783_vm3, %v4781_v45 }
0x1056   :  { %4426 = vmatprep.subr.mxu0 %v4781_v45 }
0x1058   :  { %4403 = vmatmul.mubr.msk.f32.vlgmr.msra.gmra.mxu0 %vm590_vm4, %v2965_v23 }
0x1059   :  { %4405 = vmatprep.mubr.msk.f32.mxu0 %vm4783_vm3, %v4781_v45  ;;  %4427 = vmatpush3.msra.mxu0 %v5332_v24 }
0x105a   :  { %4460 = vmatprep.subr.mxu0 %v4781_v45 }
0x105c   :  { %4406 = vmatmul.mubr.msk.f32.gmra.mxu0 %vm590_vm4, %v2967_v25 }
0x105d   :  { %4408 = vmatprep.mubr.msk.f32.mxu0 %vm4783_vm3, %v4781_v45 }
0x1060   :  { %4409 = vmatmul.mubr.msk.f32.gmra.mxu0 %vm590_vm4, %v2969_v26 }
0x1061   :  { %4428 = vmatprep.mubr.msk.f32.mxu0 %vm4783_vm3, %v4781_v45 }
0x110c   :  { %v2858_v27 = vpop.f32.mrf.mxu0 }
0x110d   :  { %4388 = vmatmul.mubr.msk.f32.vlgmr.msra.gmra.mxu1 %vm590_vm4, %v2858_v27 }
0x110e   :  { %v4378_v9 = vpop.f32.mrf.mxu0  ;;  %4390 = vmatprep.mubr.msk.f32.mxu1 %vm4783_vm3, %v4781_v45 }
0x1110   :  { %v2863_v24 = vpop.f32.mrf.mxu0 }
0x1111   :  { %4391 = vmatmul.mubr.msk.f32.gmra.mxu1 %vm590_vm4, %v2863_v24 }
0x1112   :  { %v4381_v28 = vpop.f32.mrf.mxu0  ;;  %4393 = vmatprep.mubr.msk.f32.mxu1 %vm4783_vm3, %v4781_v45 }
0x1114   :  { %v2868_v30 = vpop.f32.mrf.mxu0 }
0x1115   :  { %4394 = vmatmul.mubr.msk.f32.gmra.mxu1 %vm590_vm4, %v2868_v30 }
0x1116   :  { %v4384_v31 = vpop.f32.mrf.mxu0  ;;  %4417 = vmatprep.mubr.msk.f32.mxu1 %vm4783_vm3, %v4781_v45 }
0x1118   :  { %v3054_v33 = vpop.f32.mrf.mxu0 }
0x1119   :  { %v3068_v37 = vmul.f32 0.35355338, %v3054_v33 }
0x111a   :  { %v4404_v11 = vpop.f32.mrf.mxu0 }
0x111b   :  { %v3071_v40 = vsel %vm686_vm5, %v3068_v37, -inf  ;;  %v4664_v11 = vld [vmem:[#allocation2 + $0x8] sm:$0xff] }
0x111c   :  { %3072 = vmax.xlane.f32.xlu1 %v3071_v40  ;;  %v3059_v41 = vpop.f32.mrf.mxu0 }
0x111d   :  { %v3069_v42 = vmul.f32 0.35355338, %v3059_v41 }
0x111e   :  { %v4407_v36 = vpop.f32.mrf.mxu0 }
0x111f   :  { %v3074_v43 = vsel %vm686_vm5, %v3069_v42, -inf  ;;  %v3391_v36 = vld [vmem:[%s5745_s13 + $0x18] sm:$0xff] }
0x1120   :  { %v3064_v6 = vpop.f32.mrf.mxu0 }
0x1122   :  { %v4410_v62 = vpop.f32.mrf.mxu0 }
0x1123   :  { %v3389_v62 = vld [vmem:[%s5745_s13 + $0x8] sm:$0xff] }
0x112d   :  { %3108 = vrot.lane.b32.xlu1 %v5243_v34, %s4794_s30 }
0x1131   :  { %3104 = vrot.lane.b32.xlu1 %v5264_v59, %s4794_s30 }
0x1155   :  { %3075 = vmax.xlane.f32.xlu1 %v3074_v43 }
0x11a5   :  { %v3073_v44 = vpop.xlane.xlu1 %3072 }
0x11a6   :  { %v3080_v46 = vsub.f32 %v3068_v37, %v3073_v44 }
0x11a8   :  { %v3083_v49 = vmul.f32 1.442695, %v3080_v46 }
0x11a9   :  { %v3109_v50 = vpop.permute.xlu1 %3108 }
0x11aa   :  { %4620 = vpow2.f32 %v3083_v49  ;;  %4412 = vmatpush3.msk.msra.mxu1 %vm738_vm7, %v3109_v50 }
0x11ab   :  { %4413 = vmatprep.subr.mxu1 %v4781_v45 }
0x11ad   :  { %v3105_v58 = vpop.permute.xlu1 %3104 }
0x11b7   :  { %v4621_v14 = vpop.eup %4620 }
0x11b8   :  { %v3089_v18 = vsel %vm686_vm5, %v4621_v14, 0.0 }
0x11b9   :  { %3090 = vadd.xlane.f32.xlu0 %v3089_v18 }
0x11cd   :  { %v2947_v34 = vpop.f32.mrf.mxu1 }
0x11ce   :  { %v5536_v59 = vadd.f32 %v2947_v34, %v5457_v29  ;;  %v3070_v29 = vmul.f32 0.35355338, %v3064_v6  ;;  %v3390_v6 = vld [vmem:[%s5745_s13 + $0x10] sm:$0xff] }
0x11cf   :  { %3106 = vrot.lane.b32.xlu0 %v5269_v60, %s4794_s30  ;;  %v4389_v51 = vpop.f32.mrf.mxu1  ;;  %v5549_v60 = vld [vmem:[%s5742_s10] ss:$0 sm:$0xff] }
0x11d0   :  { %v3077_v47 = vsel %vm693_vm6, %v3070_v29, -inf  ;;  %v1909_v21 = vadd.f32 %v5549_v60, %v5379_v15  ;;  %v1908_v27 = vadd.f32 %v5549_v60, %v5376_v39 }
0x11d1   :  { %v2952_v52 = vpop.f32.mrf.mxu1 }
0x11d2   :  { %v5541_v53 = vadd.f32 %v2952_v52, %v5459_v32  ;;  %v1907_v32 = vadd.f32 %v5549_v60, %v5373_v35  ;;  %v1912_v4 = vadd.f32 %v5558_v3, %v1909_v21  ;;  %v5572_v40 = vadd.f32 %v4664_v11, %v1908_v27 }
0x11d3   :  { %v4392_v54 = vpop.f32.mrf.mxu1 }
0x11d4   :  { %v1910_v1 = vadd.f32 %v4662_v0, %v1907_v32  ;;  %v1919_v35 = vsel %vm449_vm2, %v1912_v4, 0.0  ;;  %v1916_v39 = vsel %vm265_vm1, %v5572_v40, 0.0  ;;  %v5600_v54 = vld [vmem:[%s5743_s11] ss:$0 sm:$0xff] }
0x11d5   :  { %v2957_v55 = vpop.f32.mrf.mxu1 }
0x11d6   :  { %v5544_v56 = vadd.f32 %v2957_v55, %v5461_v38  ;;  %v1913_v2 = vsel %vm265_vm1, %v1910_v1, 0.0 }
0x11d7   :  { %v4395_v57 = vpop.f32.mrf.mxu1 }
0x11de   :  { %v3076_v61 = vpop.xlane.xlu1 %3075 }
0x11df   :  { %v3081_v7 = vsub.f32 %v3069_v42, %v3076_v61  ;;  %v3388_v42 = vld [vmem:[%s5745_s13] sm:$0xff] }
0x11e1   :  { %v3085_v12 = vmul.f32 1.442695, %v3081_v7 }
0x11e3   :  { %4622 = vpow2.f32 %v3085_v12 }
0x11ee   :  { %3078 = vmax.xlane.f32.xlu0 %v3077_v47 }
0x11f0   :  { %v4623_v38 = vpop.eup %4622 }
0x11f1   :  { %v3092_v63 = vsel %vm686_vm5, %v4623_v38, 0.0 }
0x11f2   :  { %3093 = vadd.xlane.f32.xlu0 %v3092_v63 }
0x11f6   :  { %1914 = vadd.xlane.f32.xlu0 %v1913_v2  ;;  %v3555_v2 = vld [vmem:[#allocation10 + $0x30] sm:$0xff] }
0x11fa   :  { %1920 = vadd.xlane.f32.xlu0 %v1919_v35  ;;  %v3553_v35 = vld [vmem:[#allocation10 + $0x20] sm:$0xff] }
0x1242   :  { %v3091_v5 = vpop.xlane.xlu0 %3090 }
0x1243   :  { %4624 = vrcp.f32 %v3091_v5  ;;  %v3552_v5 = vld [vmem:[#allocation10 + $0x18] sm:$0xff] }
0x1246   :  { %v3107_v8 = vpop.permute.xlu0 %3106 }
0x1247   :  { %4414 = vmatpush3.msra.mxu1 %v3107_v8  ;;  %v3551_v8 = vld [vmem:[#allocation10 + $0x10] sm:$0xff] }
0x1248   :  { %4415 = vmatprep.subr.mxu1 %v4781_v45 }
0x1249   :  { %4416 = vmatpush3.msra.mxu1 %v3105_v58  ;;  %v5605_v58 = vld [vmem:[%s5744_s12] ss:$0 sm:$0xff] }
0x124a   :  { %4437 = vmatprep.subr.mxu1 %v4781_v45 }
0x1250   :  { %v4625_v15 = vpop.eup %4624 }
0x1251   :  { %v3099_v10 = vmul.f32 %v4625_v15, %v4621_v14  ;;  %v3550_v15 = vld [vmem:[#allocation10 + $0x8] sm:$0xff] }
0x1253   :  { %4418 = vmatmul.mubr.msk.f32.vlgmr.msra.gmra.mxu1 %vm686_vm5, %v3099_v10  ;;  %v3549_v10 = vld [vmem:[#allocation10] sm:$0xff] }
0x1254   :  { %4420 = vmatprep.mubr.msk.f32.mxu1 %vm4783_vm3, %v4781_v45  ;;  %4438 = vmatpush3.msra.mxu1 %v3391_v36 }
0x1255   :  { %4439 = vmatprep.subr.mxu1 %v4781_v45 }
0x1256   :  { %4440 = vmatpush3.msra.mxu1 %v3390_v6 }
0x1257   :  { %4441 = vmatprep.subr.mxu1 %v4781_v45 }
0x1258   :  { %4442 = vmatpush3.msra.mxu1 %v3389_v62 }
0x1259   :  { %4443 = vmatprep.subr.mxu1 %v4781_v45 }
0x125a   :  { %4444 = vmatpush3.msra.mxu1 %v3388_v42 }
0x1277   :  { %v3079_v13 = vpop.xlane.xlu0 %3078 }
0x1278   :  { %v3082_v16 = vsub.f32 %v3070_v29, %v3079_v13 }
0x127a   :  { %v3087_v17 = vmul.f32 1.442695, %v3082_v16 }
0x127b   :  { %v3094_v19 = vpop.xlane.xlu0 %3093 }
0x127c   :  { %4626 = vpow2.f32 %v3087_v17 }
0x127d   :  { %4628 = vrcp.f32 %v3094_v19 }
0x127f   :  { %v1915_v20 = vpop.xlane.xlu0 %1914 }
0x1280   :  { %v1922_v22 = vmul.f32 0.03125, %v1915_v20 }
0x1282   :  { %v1925_v23 = vsub.f32 %v1910_v1, %v1922_v22  ;;  %v3556_v1 = vld [vmem:[#allocation10 + $0x38] sm:$0xff] }
0x1283   :  { %v1921_v48 = vpop.xlane.xlu0 %1920 }
0x1284   :  { %v1924_v25 = vmul.f32 0.03125, %v1921_v48  ;;  %v1928_v26 = vmul.f32 %v1925_v23, %v1925_v23 }
0x1286   :  { %v1927_v9 = vsub.f32 %v1912_v4, %v1924_v25  ;;  %v1931_v24 = vsel %vm265_vm1, %v1928_v26, 0.0  ;;  %v3554_v4 = vld [vmem:[#allocation10 + $0x28] sm:$0xff] }
0x1287   :  { %1932 = vadd.xlane.f32.xlu0 %v1931_v24 }
0x1288   :  { %v1930_v28 = vmul.f32 %v1927_v9, %v1927_v9 }
0x1289   :  { %v4627_v30 = vpop.eup %4626 }
0x128a   :  { %v4629_v31 = vpop.eup %4628  ;;  %v3095_v33 = vsel %vm693_vm6, %v4627_v30, 0.0  ;;  %v1937_v37 = vsel %vm449_vm2, %v1930_v28, 0.0  ;;  %v5644_v28 = vld [vmem:[%s5746_s14] ss:$0 sm:$0xff] }
0x128b   :  { %3096 = vadd.xlane.f32.xlu1 %v3095_v33  ;;  %1938 = vadd.xlane.f32.xlu0 %v1937_v37  ;;  %v3101_v41 = vmul.f32 %v4629_v31, %v4623_v38 }
0x128d   :  { %4421 = vmatmul.mubr.msk.f32.gmra.mxu1 %vm686_vm5, %v3101_v41 }
0x128e   :  { %4423 = vmatprep.mubr.msk.f32.mxu1 %vm4783_vm3, %v4781_v45 }
0x128f   :  { %1917 = vadd.xlane.f32.xlu1 %v1916_v39 }
0x1310   :  { %v1933_v43 = vpop.xlane.xlu0 %1932 }
0x1311   :  { %v1940_v44 = vmul.f32 0.03125, %v1933_v43 }
0x1313   :  { %v1943_v46 = vadd.f32 1e-05, %v1940_v44  ;;  %v3189_v49 = vpop.f32.mrf.mxu1 }
0x1314   :  { %v3097_v50 = vpop.xlane.xlu1 %3096  ;;  %v1939_v14 = vpop.xlane.xlu0 %1938  ;;  %4429 = vmatmul.mubr.msk.f32.vlgmr.msra.gmra.mxu0 %vm590_vm4, %v3189_v49 }
0x1315   :  { %4630 = vrsqrt.f32 %v1943_v46  ;;  %v1942_v18 = vmul.f32 0.03125, %v1939_v14  ;;  %v4419_v34 = vpop.f32.mrf.mxu1  ;;  %4431 = vmatprep.mubr.msk.f32.mxu0 %vm4783_vm3, %v4781_v45  ;;  %4461 = vmatpush3.msra.mxu0 %v3556_v1  ;;  %v4665_v14 = vld [vmem:[#allocation2 + $0x18] sm:$0xff] }
0x1316   :  { %4632 = vrcp.f32 %v3097_v50  ;;  %4462 = vmatprep.subr.mxu0 %v4781_v45 }
0x1317   :  { %v1945_v51 = vadd.f32 1e-05, %v1942_v18  ;;  %4463 = vmatpush3.msra.mxu0 %v3555_v2 }
0x1318   :  { %4464 = vmatprep.subr.mxu0 %v4781_v45  ;;  %v1918_v13 = vpop.xlane.xlu1 %1917 }
0x1319   :  { %4634 = vrsqrt.f32 %v1945_v51  ;;  %4465 = vmatpush3.msra.mxu0 %v3554_v4  ;;  %v1923_v17 = vmul.f32 0.03125, %v1918_v13 }
0x131a   :  { %4466 = vmatprep.subr.mxu0 %v4781_v45 }
0x131b   :  { %4467 = vmatpush3.msra.mxu0 %v3553_v35 }
0x131c   :  { %4468 = vmatprep.subr.mxu0 %v4781_v45 }
0x131d   :  { %4469 = vmatpush3.msra.mxu0 %v3552_v5 }
0x131e   :  { %4470 = vmatprep.subr.mxu0 %v4781_v45 }
0x131f   :  { %4471 = vmatpush3.msra.mxu0 %v3551_v8 }
0x1320   :  { %4472 = vmatprep.subr.mxu0 %v4781_v45 }
0x1321   :  { %4473 = vmatpush3.msra.mxu0 %v3550_v15 }
0x1322   :  { %v4631_v52 = vpop.eup %4630  ;;  %4474 = vmatprep.subr.mxu0 %v4781_v45 }
0x1323   :  { %v4633_v55 = vpop.eup %4632  ;;  %v1949_v57 = vmul.f32 %v4631_v52, %v1925_v23  ;;  %4475 = vmatpush3.msra.mxu0 %v3549_v10  ;;  %v1926_v23 = vsub.f32 %v5572_v40, %v1923_v17  ;;  %v4666_v17 = vld [vmem:[#allocation2 + $0x20] sm:$0x3] }
0x1324   :  { %v3103_v61 = vmul.f32 %v4633_v55, %v4627_v30 }
0x1325   :  { %v1959_v7 = vmul.f32 %v5600_v54, %v1949_v57  ;;  %v1929_v27 = vmul.f32 %v1926_v23, %v1926_v23 }
0x1326   :  { %v4635_v12 = vpop.eup %4634  ;;  %4424 = vmatmul.mubr.msk.f32.gmra.mxu1 %vm686_vm5, %v3103_v61 }
0x1327   :  { %v1969_v29 = vadd.f32 %v5605_v58, %v1959_v7  ;;  %v1951_v32 = vmul.f32 %v4635_v12, %v1927_v9  ;;  %4445 = vmatprep.mubr.msk.f32.mxu1 %vm4783_vm3, %v4781_v45  ;;  %v1934_v9 = vsel %vm265_vm1, %v1929_v27, 0.0 }
0x1329   :  { %1972 = vst.msk [vmem:[#allocation3] sm:$0xff] %vm265_vm1, %v1969_v29  ;;  %v1961_v47 = vmul.f32 %v5600_v54, %v1951_v32 }
0x132b   :  { %v1971_v38 = vadd.f32 %v5605_v58, %v1961_v47 }
0x132d   :  { %1974 = vst.msk [vmem:[#allocation3 + $0x10] sm:$0x1] %vm449_vm2, %v1971_v38 }
0x1330   :  { %v5616_v21 = vld [vmem:[#allocation3] sm:$0xff] }
0x1331   :  { %4446 = vmatmul.mubr.msk.f32.vlgmr.msra.gmra.mxu1 %vm265_vm1, %v5616_v21 }
0x1332   :  { %4448 = vmatprep.mubr.msk.f32.mxu1 %vm4783_vm3, %v4781_v45 }
0x134d   :  { %v3194_v63 = vpop.f32.mrf.mxu1 }
0x134e   :  { %4432 = vmatmul.mubr.msk.f32.gmra.mxu0 %vm590_vm4, %v3194_v63 }
0x134f   :  { %v4422_v0 = vpop.f32.mrf.mxu1  ;;  %4434 = vmatprep.mubr.msk.f32.mxu0 %vm4783_vm3, %v4781_v45 }
0x13d4   :  { %v3278_v16 = vpop.f32.mrf.mxu0 }
0x13d5   :  { %v3292_v19 = vadd.f32 %v3278_v16, %v5536_v59 }
0x13d6   :  { %v4430_v20 = vpop.f32.mrf.mxu0 }
0x13d7   :  { %v3302_v22 = vadd.f32 %v5549_v60, %v3292_v19 }
0x13d9   :  { %v3308_v48 = vrot.slane %v3302_v22, 7  ;;  %v5669_v22 = vld [vmem:[%s5748_s16] ss:$0 sm:$0xff] }
0x13db   :  { %v3316_v25 = vadd.f32 %v5558_v3, %v3308_v48 }
0x13dd   :  { %v3320_v26 = vsel %vm3319_vm9, %v3316_v25, 0.0 }
0x13de   :  { %3321 = vadd.xlane.f32.xlu1 %v3320_v26 }
0x13e2   :  { %1935 = vadd.xlane.f32.xlu1 %v1934_v9 }
0x13e6   :  { %v3199_v24 = vpop.f32.mrf.mxu1 }
0x13e7   :  { %4435 = vmatmul.mubr.msk.f32.gmra.mxu0 %vm590_vm4, %v3199_v24 }
0x13e8   :  { %v4425_v59 = vpop.f32.mrf.mxu1  ;;  %4476 = vmatprep.mubr.msk.f32.mxu0 %vm4783_vm3, %v4781_v45 }
0x13f1   :  { %v3480_v3 = vpop.f32.mrf.mxu1 }
0x13f2   :  { %v3481_v30 = vadd.f32 %v5644_v28, %v3480_v3 }
0x13f3   :  { %v4447_v31 = vpop.f32.mrf.mxu1 }
0x13f4   :  { %v3504_v33 = vmul.f32 %v3481_v30, %v3481_v30 }
0x13f6   :  { %v3509_v37 = vmul.f32 %v3504_v33, %v3481_v30 }
0x13f8   :  { %v3514_v11 = vmul.f32 0.044715, %v3509_v37 }
0x13fa   :  { %v3519_v40 = vadd.f32 %v3514_v11, %v3481_v30 }
0x13fc   :  { %v3524_v41 = vmul.f32 0.7978846, %v3519_v40 }
0x13fe   :  { %4636 = vtanh.f32 %v3524_v41 }
0x140b   :  { %v4637_v39 = vpop.eup %4636 }
0x140c   :  { %v3534_v36 = vadd.f32 1.0, %v4637_v39 }
0x140e   :  { %v3539_v6 = vmul.f32 0.5, %v3534_v36  ;;  %v3283_v62 = vpop.f32.mrf.mxu0 }
0x140f   :  { %v3293_v42 = vadd.f32 %v3283_v62, %v5541_v53 }
0x1410   :  { %v3544_v43 = vmul.f32 %v3539_v6, %v3481_v30  ;;  %v4433_v44 = vpop.f32.mrf.mxu0 }
0x1411   :  { %v3303_v46 = vadd.f32 %v5549_v60, %v3293_v42 }
0x1412   :  { %4477 = vmatmul.mubr.msk.f32.vlgmr.msra.gmra.mxu0 %vm3564_vm10, %v3544_v43 }
0x1413   :  { %v3309_v49 = vrot.slane %v3303_v46, 7  ;;  %4479 = vmatprep.mubr.msk.f32.mxu0 %vm4783_vm3, %v4781_v45 }
0x1415   :  { %v3310_v50 = vsel %vm738_vm7, %v3308_v48, %v3309_v49 }
0x1416   :  { %v3317_v18 = vadd.f32 %v4665_v14, %v3310_v50 }
0x1418   :  { %v3323_v34 = vsel %vm265_vm1, %v3317_v18, 0.0 }
0x1419   :  { %3324 = vadd.xlane.f32.xlu0 %v3323_v34 }
0x1467   :  { %v3322_v51 = vpop.xlane.xlu1 %3321 }
0x1468   :  { %v3330_v53 = vmul.f32 0.03125, %v3322_v51 }
0x146a   :  { %v3333_v52 = vsub.f32 %v3316_v25, %v3330_v53 }
0x146b   :  { %v1936_v55 = vpop.xlane.xlu1 %1935 }
0x146c   :  { %v1941_v57 = vmul.f32 0.03125, %v1936_v55  ;;  %v3336_v61 = vmul.f32 %v3333_v52, %v3333_v52 }
0x146e   :  { %v1944_v7 = vadd.f32 1e-05, %v1941_v57  ;;  %v3339_v12 = vsel %vm3319_vm9, %v3336_v61, 0.0 }
0x146f   :  { %3340 = vadd.xlane.f32.xlu1 %v3339_v12 }
0x1470   :  { %4638 = vrsqrt.f32 %v1944_v7 }
0x147d   :  { %v4639_v29 = vpop.eup %4638 }
0x147e   :  { %v1950_v32 = vmul.f32 %v4639_v29, %v1926_v23 }
0x1480   :  { %v1960_v47 = vmul.f32 %v5600_v54, %v1950_v32 }
0x1482   :  { %v1970_v38 = vadd.f32 %v5605_v58, %v1960_v47 }
0x1484   :  { %1973 = vst.msk [vmem:[#allocation3 + $0x8] sm:$0xff] %vm265_vm1, %v1970_v38 }
0x148b   :  { %v3384_v63 = vld [vmem:[#allocation3 + $0x8] sm:$0xff] }
0x148c   :  { %4449 = vmatmul.mubr.msk.f32.gmra.mxu1 %vm265_vm1, %v3384_v63 }
0x148d   :  { %4451 = vmatprep.mubr.msk.f32.mxu1 %vm4783_vm3, %v4781_v45 }
0x14a2   :  { %v3325_v0 = vpop.xlane.xlu0 %3324 }
0x14a3   :  { %v3331_v1 = vmul.f32 0.03125, %v3325_v0 }
0x14a5   :  { %v3334_v2 = vsub.f32 %v3317_v18, %v3331_v1 }
0x14a7   :  { %v3288_v4 = vpop.f32.mrf.mxu0  ;;  %v3337_v35 = vmul.f32 %v3334_v2, %v3334_v2 }
0x14a8   :  { %v3294_v5 = vadd.f32 %v3288_v4, %v5544_v56 }
0x14a9   :  { %v4436_v8 = vpop.f32.mrf.mxu0  ;;  %v3342_v15 = vsel %vm265_vm1, %v3337_v35, 0.0 }
0x14aa   :  { %v3304_v10 = vadd.f32 %v5549_v60, %v3294_v5  ;;  %3343 = vadd.xlane.f32.xlu0 %v3342_v15 }
0x14ac   :  { %v3311_v13 = vrot.slane %v3304_v10, 7 }
0x14ae   :  { %v3312_v16 = vsel %vm738_vm7, %v3309_v49, %v3311_v13 }
0x14af   :  { %v3318_v19 = vadd.f32 %v4666_v17, %v3312_v16 }
0x14b1   :  { %v3327_v20 = vsel %vm3326_vm11, %v3318_v19, 0.0 }
0x14b2   :  { %3328 = vadd.xlane.f32.xlu1 %v3327_v20 }
0x14d2   :  { %v3646_v56 = vpop.f32.mrf.mxu0 }
0x14d3   :  { %v3647_v23 = vadd.f32 %v5669_v22, %v3646_v56 }
0x14d4   :  { %v4478_v48 = vpop.f32.mrf.mxu0 }
0x14d5   :  { %v3667_v60 = vadd.f32 %v3647_v23, %v5616_v21 }
0x14d7   :  { %v3669_v25 = vsel %vm265_vm1, %v3667_v60, 0.0 }
0x14d8   :  { %3670 = vadd.xlane.f32.xlu0 %v3669_v25 }
0x14f8   :  { %v3341_v26 = vpop.xlane.xlu1 %3340 }
0x14f9   :  { %v3348_v27 = vmul.f32 0.03125, %v3341_v26 }
0x14fb   :  { %v3351_v9 = vadd.f32 1e-05, %v3348_v27 }
0x14fd   :  { %4640 = vrsqrt.f32 %v3351_v9 }
0x150a   :  { %v4641_v24 = vpop.eup %4640 }
0x150b   :  { %v3357_v59 = vmul.f32 %v4641_v24, %v3333_v52  ;;  %v5711_v24 = vld [vmem:[%s5750_s18] ss:$0 sm:$0xff] }
0x150d   :  { %v3367_v3 = vmul.f32 %v5600_v54, %v3357_v59 }
0x150f   :  { %v3377_v30 = vadd.f32 %v5605_v58, %v3367_v3 }
0x1511   :  { %3380 = vst.msk [vmem:[#allocation3 + $0x10] sm:$0xfe] %vm3319_vm9, %v3377_v30 }
0x1518   :  { %v5677_v31 = vld [vmem:[#allocation3 + $0x10] sm:$0xff] }
0x1519   :  { %4452 = vmatmul.mubr.msk.f32.gmra.mxu1 %vm265_vm1, %v5677_v31 }
0x151a   :  { %4454 = vmatprep.mubr.msk.f32.mxu1 %vm4783_vm3, %v4781_v45 }
0x1533   :  { %v3344_v21 = vpop.xlane.xlu0 %3343 }
0x1534   :  { %v3349_v33 = vmul.f32 0.03125, %v3344_v21 }
0x1536   :  { %v3352_v37 = vadd.f32 1e-05, %v3349_v33 }
0x1538   :  { %4642 = vrsqrt.f32 %v3352_v37 }
0x153b   :  { %v3329_v11 = vpop.xlane.xlu1 %3328 }
0x153c   :  { %v3332_v40 = vmul.f32 0.03125, %v3329_v11 }
0x153e   :  { %v3335_v41 = vsub.f32 %v3318_v19, %v3332_v40 }
0x1540   :  { %v3338_v39 = vmul.f32 %v3335_v41, %v3335_v41 }
0x1542   :  { %v3345_v36 = vsel %vm3326_vm11, %v3338_v39, 0.0 }
0x1543   :  { %3346 = vadd.xlane.f32.xlu1 %v3345_v36 }
0x1545   :  { %v4643_v6 = vpop.eup %4642 }
0x1546   :  { %v3358_v62 = vmul.f32 %v4643_v6, %v3334_v2 }
0x1548   :  { %v3368_v42 = vmul.f32 %v5600_v54, %v3358_v62 }
0x154a   :  { %v3378_v43 = vadd.f32 %v5605_v58, %v3368_v42 }
0x154c   :  { %3381 = vst.msk [vmem:[#allocation3 + $0x18] sm:$0xff] %vm265_vm1, %v3378_v43  ;;  %v3485_v44 = vpop.f32.mrf.mxu1 }
0x154d   :  { %v3486_v46 = vadd.f32 %v5644_v28, %v3485_v44 }
0x154e   :  { %v4450_v49 = vpop.f32.mrf.mxu1 }
0x154f   :  { %v3505_v50 = vmul.f32 %v3486_v46, %v3486_v46 }
0x1551   :  { %v3510_v14 = vmul.f32 %v3505_v50, %v3486_v46 }
0x1553   :  { %v3515_v18 = vmul.f32 0.044715, %v3510_v14  ;;  %v3386_v34 = vld [vmem:[#allocation3 + $0x18] sm:$0xff] }
0x1554   :  { %4455 = vmatmul.mubr.msk.f32.gmra.mxu1 %vm265_vm1, %v3386_v34 }
0x1555   :  { %v3520_v51 = vadd.f32 %v3515_v18, %v3486_v46  ;;  %4457 = vmatprep.mubr.msk.f32.mxu1 %vm4783_vm3, %v4781_v45 }
0x1557   :  { %v3525_v53 = vmul.f32 0.7978846, %v3520_v51 }
0x1559   :  { %4644 = vtanh.f32 %v3525_v53 }
0x1561   :  { %v3671_v52 = vpop.xlane.xlu0 %3670 }
0x1562   :  { %v3675_v55 = vmul.f32 0.03125, %v3671_v52 }
0x1564   :  { %v3677_v57 = vsub.f32 %v3667_v60, %v3675_v55 }
0x1566   :  { %v4645_v61 = vpop.eup %4644  ;;  %v3679_v7 = vmul.f32 %v3677_v57, %v3677_v57 }
0x1567   :  { %v3535_v12 = vadd.f32 1.0, %v4645_v61 }
0x1568   :  { %v3681_v29 = vsel %vm265_vm1, %v3679_v7, 0.0 }
0x1569   :  { %3682 = vadd.xlane.f32.xlu0 %v3681_v29  ;;  %v3540_v32 = vmul.f32 0.5, %v3535_v12 }
0x156b   :  { %v3545_v47 = vmul.f32 %v3540_v32, %v3486_v46 }
0x156d   :  { %4480 = vmatmul.mubr.msk.f32.gmra.mxu0 %vm3564_vm10, %v3545_v47 }
0x156e   :  { %4482 = vmatprep.mubr.msk.f32.mxu0 %vm4783_vm3, %v4781_v45 }
0x15cc   :  { %v3347_v38 = vpop.xlane.xlu1 %3346 }
0x15cd   :  { %v3350_v63 = vmul.f32 0.03125, %v3347_v38 }
0x15cf   :  { %v3353_v0 = vadd.f32 1e-05, %v3350_v63 }
0x15d1   :  { %4646 = vrsqrt.f32 %v3353_v0 }
0x15d9   :  { %v3490_v1 = vpop.f32.mrf.mxu1 }
0x15da   :  { %v3491_v2 = vadd.f32 %v5644_v28, %v3490_v1 }
0x15db   :  { %v4453_v4 = vpop.f32.mrf.mxu1 }
0x15dc   :  { %v3506_v35 = vmul.f32 %v3491_v2, %v3491_v2 }
0x15de   :  { %v4647_v5 = vpop.eup %4646  ;;  %v3511_v8 = vmul.f32 %v3506_v35, %v3491_v2 }
0x15df   :  { %v3359_v15 = vmul.f32 %v4647_v5, %v3335_v41 }
0x15e0   :  { %v3516_v10 = vmul.f32 0.044715, %v3511_v8 }
0x15e1   :  { %v3369_v13 = vmul.f32 %v5600_v54, %v3359_v15 }
0x15e2   :  { %v3521_v16 = vadd.f32 %v3516_v10, %v3491_v2 }
0x15e3   :  { %v3379_v17 = vadd.f32 %v5605_v58, %v3369_v13  ;;  %v5706_v58 = vld [vmem:[%s5749_s17] ss:$0 sm:$0xff]  ;;  %s4795_s17 = smov [#allocation12]  }
0x15e4   :  { %v3526_v19 = vmul.f32 0.7978846, %v3521_v16  ;;  %s3736_s18 = sshll.u32 %s4795_s17, 4  ;;  %s3737_s18 = int_to_ptr.vmem [resolvable:$true] %s3736_s18 }
0x15e5   :  { %3382 = vst.msk [vmem:[#allocation3 + $0x20] sm:$0x3] %vm3326_vm11, %v3379_v17  ;;  %s4747_s22 = scalar_lea.vmem %s3737_s18, 32  ;;  %p4752_p7 = scmp.lt.s32.totalorder %s3737_s18, %s3737_s18 }
0x15e6   :  { %4648 = vtanh.f32 %v3526_v19  ;;  %p4748_p6 = scmp.ne.s32.totalorder %s3737_s18, %s4747_s22  ;;  %p4753_p8 = scmp.lt.s32.totalorder %s4747_s22, %s4747_s22 }
0x15e8   :  { %p4754_p9 = por %p4753_p8, %p4752_p7 }
0x15ea   :  { %p4755_p10 = pnand %p4754_p9, %p4748_p6 }
0x15ec   :  { %v3387_v20 = vld [vmem:[#allocation3 + $0x20] sm:$0x3] }
0x15ed   :  { %4458 = vmatmul.mubr.msk.f32.gmra.mxu1 %vm265_vm1, %v3387_v20 }
0x15f2   :  { %v3683_v56 = vpop.xlane.xlu0 %3682 }
0x15f3   :  { %v4649_v23 = vpop.eup %4648  ;;  %v3687_v48 = vmul.f32 0.03125, %v3683_v56 }
0x15f4   :  { %v3536_v60 = vadd.f32 1.0, %v4649_v23 }
0x15f5   :  { %v3689_v25 = vadd.f32 1e-05, %v3687_v48 }
0x15f6   :  { %v3541_v26 = vmul.f32 0.5, %v3536_v60 }
0x15f7   :  { %4650 = vrsqrt.f32 %v3689_v25 }
0x15f8   :  { %v3546_v27 = vmul.f32 %v3541_v26, %v3491_v2 }
0x15fa   :  { %4483 = vmatmul.mubr.msk.f32.gmra.mxu0 %vm3564_vm10, %v3546_v27 }
0x15fb   :  { %4485 = vmatprep.mubr.msk.f32.mxu0 %vm4783_vm3, %v4781_v45 }
0x1604   :  { %v4651_v54 = vpop.eup %4650 }
0x1605   :  { %v3693_v9 = vmul.f32 %v4651_v54, %v3677_v57 }
0x1607   :  { %v3702_v59 = vmul.f32 %v5706_v58, %v3693_v9 }
0x1609   :  { %v3711_v3 = vadd.f32 %v5711_v24, %v3702_v59 }
0x160b   :  { %v3713_v30 = vmul.f32 %v3711_v3, %v3711_v3 }
0x160d   :  { %v3714_v21 = vsel %vm449_vm2, %v3713_v30, 0.0 }
0x160e   :  { %3715 = vadd.xlane.f32.xlu0 %v3714_v21 }
0x1614   :  { %v3495_v33 = vpop.f32.mrf.mxu1 }
0x1615   :  { %v3496_v37 = vadd.f32 %v5644_v28, %v3495_v33 }
0x1616   :  { %v4456_v11 = vpop.f32.mrf.mxu1 }
0x1617   :  { %v3507_v40 = vmul.f32 %v3496_v37, %v3496_v37 }
0x1619   :  { %v3512_v41 = vmul.f32 %v3507_v40, %v3496_v37 }
0x161b   :  { %v3517_v39 = vmul.f32 0.044715, %v3512_v41 }
0x161d   :  { %v3522_v36 = vadd.f32 %v3517_v39, %v3496_v37 }
0x161f   :  { %v3527_v6 = vmul.f32 0.7978846, %v3522_v36 }
0x1621   :  { %4652 = vtanh.f32 %v3527_v6 }
0x162d   :  { %v3651_v62 = vpop.f32.mrf.mxu0 }
0x162e   :  { %v4653_v42 = vpop.eup %4652 }
0x162f   :  { %v4481_v43 = vpop.f32.mrf.mxu0  ;;  %v3537_v44 = vadd.f32 1.0, %v4653_v42 }
0x1631   :  { %v3542_v46 = vmul.f32 0.5, %v3537_v44 }
0x1633   :  { %v3547_v49 = vmul.f32 %v3542_v46, %v3496_v37 }
0x1635   :  { %4486 = vmatmul.mubr.msk.f32.gmra.mxu0 %vm3564_vm10, %v3547_v49 }
0x1636   :  { %4488 = vmatprep.mubr.msk.f32.mxu0 %vm4783_vm3, %v4781_v45 }
0x1697   :  { %v3716_v50 = vpop.xlane.xlu0 %3715 }
0x1698   :  { %v3717_v14 = vmax.f32 %v3716_v50, 1e-24 }
0x169a   :  { %4654 = vrsqrt.f32 %v3717_v14 }
0x16a7   :  { %v4655_v18 = vpop.eup %4654 }
0x16a8   :  { %v3719_v34 = vmul.f32 %v4655_v18, %v3711_v3 }
0x16aa   :  { %3720 = vst.msk [vmem:[#allocation12] sm:$0x1] %vm449_vm2, %v3719_v34 }
0x16ad   :  { %v3500_v51 = vpop.f32.mrf.mxu1 }
0x16ae   :  { %v3501_v53 = vadd.f32 %v5644_v28, %v3500_v51 }
0x16af   :  { %v4459_v52 = vpop.f32.mrf.mxu1 }
0x16b0   :  { %v3508_v55 = vmul.f32 %v3501_v53, %v3501_v53 }
0x16b2   :  { %v3513_v57 = vmul.f32 %v3508_v55, %v3501_v53 }
0x16b4   :  { %v3518_v61 = vmul.f32 0.044715, %v3513_v57 }
0x16b6   :  { %v3523_v7 = vadd.f32 %v3518_v61, %v3501_v53 }
0x16b8   :  { %v3528_v12 = vmul.f32 0.7978846, %v3523_v7 }
0x16ba   :  { %4656 = vtanh.f32 %v3528_v12  ;;  %v3655_v29 = vpop.f32.mrf.mxu0 }
0x16bb   :  { %v3656_v45 = vadd.f32 %v5669_v22, %v3655_v29 }
0x16bc   :  { %v4484_v32 = vpop.f32.mrf.mxu0 }
0x16bd   :  { %v3668_v47 = vadd.f32 %v3656_v45, %v5677_v31 }
0x16bf   :  { %v3672_v38 = vsel %vm265_vm1, %v3668_v47, 0.0 }
0x16c0   :  { %3673 = vadd.xlane.f32.xlu1 %v3672_v38 }
0x16c7   :  { %v4657_v63 = vpop.eup %4656 }
0x16c8   :  { %v3538_v0 = vadd.f32 1.0, %v4657_v63 }
0x16ca   :  { %v3543_v1 = vmul.f32 0.5, %v3538_v0 }
0x16cc   :  { %v3548_v28 = vmul.f32 %v3543_v1, %v3501_v53 }
0x16ce   :  { %4489 = vmatmul.mubr.msk.f32.gmra.mxu0 %vm3564_vm10, %v3548_v28 }
0x16f5   :  { %v3660_v2 = vpop.f32.mrf.mxu0 }
0x16f7   :  { %v4487_v4 = vpop.f32.mrf.mxu0 }
0x1749   :  { %v3674_v35 = vpop.xlane.xlu1 %3673 }
0x174a   :  { %v3676_v5 = vmul.f32 0.03125, %v3674_v35 }
0x174c   :  { %v3678_v8 = vsub.f32 %v3668_v47, %v3676_v5 }
0x174e   :  { %v3680_v15 = vmul.f32 %v3678_v8, %v3678_v8 }
0x1750   :  { %v3684_v22 = vsel %vm265_vm1, %v3680_v15, 0.0 }
0x1751   :  { %3685 = vadd.xlane.f32.xlu1 %v3684_v22 }
0x178e   :  { %v3664_v10 = vpop.f32.mrf.mxu0 }
0x1790   :  { %v4490_v31 = vpop.f32.mrf.mxu0 }
0x17da   :  { %v3686_v13 = vpop.xlane.xlu1 %3685 }
0x17db   :  { %v3688_v16 = vmul.f32 0.03125, %v3686_v13 }
0x17dd   :  { %v3690_v17 = vadd.f32 1e-05, %v3688_v16 }
0x17df   :  { %4658 = vrsqrt.f32 %v3690_v17 }
0x17ec   :  { %v4659_v19 = vpop.eup %4658 }
0x17ed   :  { %v3694_v20 = vmul.f32 %v4659_v19, %v3678_v8 }
0x17ef   :  { %v3703_v56 = vmul.f32 %v5706_v58, %v3694_v20 }
0x17f1   :  { %v3712_v23 = vadd.f32 %v5711_v24, %v3703_v56 }
0x17f3   :  { %v3721_v48 = vmul.f32 %v3712_v23, %v3712_v23 }
0x17f5   :  { %v3723_v60 = vsel %vm3722_vm12, %v3721_v48, 0.0 }
0x17f6   :  { %3724 = vadd.xlane.f32.xlu1 %v3723_v60 }
0x187f   :  { %v3725_v25 = vpop.xlane.xlu1 %3724 }
0x1880   :  { %v3726_v26 = vmax.f32 %v3725_v25, 1e-24 }
0x1882   :  { %4660 = vrsqrt.f32 %v3726_v26 }
0x188f   :  { %v4661_v27 = vpop.eup %4660 }
0x1890   :  { %v3728_v54 = vmul.f32 %v4661_v27, %v3712_v23 }
0x1892   :  { %3729 = vst.msk [vmem:[#allocation12] sm:$0x2] %vm3722_vm12, %v3728_v54 }
0x1893   :  { %4758 = shalt.err (!%p4755_p10)
}
0x1894   :  { %3739 = dma.vmem_to_hbm [thread:$0]  %s3737_s18, 32, %s5751_s19, [#allocation6]  }
0x1895   :  { %4773 = dma.done.wait [#allocation6], 32  }
0x1896   :  { %4774 = vsyncadd [#allocation6], 4294967264 }
0x1897   :  { %3743 = vsyncpa [#allocation5], 1 }
0x1898   :  { %3744 = vsyncpa [#allocation8], 1 }
0x1899   :  { %3745 = vsyncpa [#allocation11], 1 }
0x189a   :  { %3746 = vsyncpa [#allocation6], 1 }

</bundles_post_ra>
